<compile_context>
chip_gen: v6e
topology: v6e:2x2x1
jax: 0.10.0
libtpu: 0.0.40
codegen_flags: <defaults>
</compile_context>

<pallas_src>
import functools

import numpy as np
import jax
import jax.numpy as jnp
from jax.experimental import pallas as pl
from jax.experimental.pallas import tpu as pltpu

INF8 = 255
NEG_INF = jnp.float32(-1e9)   # finite "-inf": exp underflows to 0 exactly, NaN-safe


# ----------------------------- fused Pallas kernel -----------------------------

def _mha_kernel(pidx_ref, x_ref, tbl_ref, wqkv_ref, bqkv_ref, wo_ref, bo_ref,
                o_ref, ctx_sc, *, nb, S, H, dk, hidden, T):
    f32, bf16 = jnp.float32, jnp.bfloat16

    # Loop-invariant loads / constants, hoisted out of the (b, h) loops.
    iota_c = jax.lax.broadcasted_iota(jnp.int32, (S, S, T), 2)   # bias-table index grid
    tbl = tbl_ref[...]                                           # [H, T]  f32
    wqkv = wqkv_ref[...]                                         # [3h,3h] bf16 (block-diag)
    bqkv = bqkv_ref[...]                                         # [1, 3h] f32
    wo = wo_ref[...]                                             # [h, h]  bf16
    bo = bo_ref[...]                                             # [1, h]  f32

    for b in range(nb):
        # Fused Q|K|V projection: one MXU pass per batch (scale folded into Q block).
        proj = jnp.dot(x_ref[b], wqkv, preferred_element_type=f32) + bqkv   # [S, 3h]
        proj = proj.astype(bf16)            # single cast, hoisted out of the head loop

        # In-kernel StructuralEmbedding: one-hot(index) against the extended table.
        # Row 255 = -1e9 (masked), rows 256.. = virtual-node bias -> no where/concat.
        oh = (pidx_ref[b] == iota_c).astype(f32)                            # [S, S, T]

        for h in range(H):
            c0 = h * dk
            qh = proj[:, c0:c0 + dk]                                        # scaled q
            kh = proj[:, hidden + c0:hidden + c0 + dk]
            vh = proj[:, 2 * hidden + c0:2 * hidden + c0 + dk]

            # scores = q @ k^T (contract dk), f32 accumulation on the MXU
            s = jax.lax.dot_general(qh, kh, (((1,), (1,)), ((), ())),
                                    preferred_element_type=f32)             # [S, S]
            s = s + jnp.sum(oh * tbl[h], axis=-1)                           # + struct bias

            # softmax over keys, in f32
            m = jnp.max(s, axis=-1, keepdims=True)
            p = jnp.exp(s - m)
            l = jnp.sum(p, axis=-1, keepdims=True)
            p = p * pl.reciprocal(l, approx=True)

            # per-head context written straight into the VMEM scratch (no concat)
            ctx_sc[b, :, c0:c0 + dk] = jnp.dot(p.astype(bf16), vh,
                                               preferred_element_type=f32)

        out_b = jnp.dot(ctx_sc[b].astype(bf16), wo, preferred_element_type=f32) + bo
        o_ref[b, :, :] = out_b.astype(o_ref.dtype)


# ----------------------------- host-side glue -----------------------------

def _tensorcores_per_chip():
    try:
        kind = jax.devices()[0].device_kind.lower()
    except Exception:
        return 1
    return 2 if ("v7" in kind or "7x" in kind) else 1


def _pidx_template(B, n_node, g, S):
    """Static index template: virtual-node rows/cols get index 256+i, real region
    is a placeholder overwritten with the runtime attn_bias indices."""
    i = np.arange(S)[:, None]
    j = np.arange(S)[None, :]
    t = np.zeros((S, S), np.int64)
    if g > 0:
        t = np.where(i >= n_node, 256 + (i - n_node), t)
        t = np.where(j >= n_node, 256 + (j - n_node), t)   # col rule last (matches torch)
    t = np.broadcast_to(t[None, :, :, None], (B, S, S, 1)).astype(np.int32)
    return jnp.asarray(t)


def prepare_params(raw, *, num_heads, num_global_node, hidden):
    """One-time init transform: block-diagonal fused QKV weight (bf16, scale folded
    into the Q block), bf16 output weight, and the extended structural-bias table."""
    f32, bf16 = jnp.float32, jnp.bfloat16
    dk = hidden // num_heads
    scale = dk ** (-0.5)
    g = num_global_node

    z = jnp.zeros((hidden, hidden), f32)
    wq_t = jnp.transpose(raw["wq"]) * scale
    wk_t = jnp.transpose(raw["wk"])
    wv_t = jnp.transpose(raw["wv"])
    wqkv_t = jnp.concatenate([
        jnp.concatenate([wq_t, z, z], axis=1),
        jnp.concatenate([z, wk_t, z], axis=1),
        jnp.concatenate([z, z, wv_t], axis=1)], axis=0).astype(bf16)      # [3h, 3h]
    bqkv = jnp.concatenate([raw["bq"] * scale, raw["bk"], raw["bv"]]
                           ).reshape(1, -1).astype(f32)                    # [1, 3h]

    T = ((256 + g + 127) // 128) * 128 if g > 0 else 256
    tbl = jnp.zeros((T, num_heads), f32)
    tbl = tbl.at[:256].set(raw["linear_bias"].astype(f32))
    tbl = tbl.at[INF8].set(NEG_INF)                     # padding index -> -inf (finite)
    if g > 0:
        tbl = tbl.at[256:256 + g].set(raw["virtual_bias"].astype(f32))

    return dict(
        wqkv_t=wqkv_t, bqkv=bqkv,
        wo_t=jnp.transpose(raw["wo"]).astype(bf16),
        bo=raw["bo"].reshape(1, -1).astype(f32),
        tbl_t=jnp.transpose(tbl),                        # [H, T] f32
    )


@functools.partial(jax.jit, static_argnames=("num_heads", "num_global_node"))
def mha_forward(q, k, v, attn_bias, params, *, num_heads, num_global_node):
    B, S, hidden = q.shape
    n_node = attn_bias.shape[1]
    g = num_global_node
    assert S == n_node + g
    H = num_heads
    dk = hidden // H
    T = params["tbl_t"].shape[1]

    # Only two tiny host ops per call: (1) drop runtime indices into the static
    # template, (2) concat q|k|v for the fused block-diagonal projection.
    template = _pidx_template(B, n_node, g, S)
    pidx = jax.lax.dynamic_update_slice(template, attn_bias.astype(jnp.int32),
                                        (0, 0, 0, 0))                      # [B,S,S,1]
    xqkv = jnp.concatenate([q, k, v], axis=-1).astype(jnp.bfloat16)         # [B,S,3h]

    # Grid over batch only where a second TensorCore exists (v7x); otherwise a
    # single step to avoid per-step overhead on single-TC chips.
    n_steps = min(_tensorcores_per_chip(), B)
    if n_steps < 1 or B % n_steps:
        n_steps = 1
    nb = B // n_steps

    kernel = functools.partial(_mha_kernel, nb=nb, S=S, H=H, dk=dk,
                               hidden=hidden, T=T)

    out = pl.pallas_call(
        kernel,
        out_shape=jax.ShapeDtypeStruct((B, S, hidden), q.dtype),
        grid=(n_steps,),
        in_specs=[
            pl.BlockSpec((nb, S, S, 1), lambda i: (i, 0, 0, 0)),            # pidx
            pl.BlockSpec((nb, S, 3 * hidden), lambda i: (i, 0, 0)),         # q|k|v
            pl.BlockSpec((H, T), lambda i: (0, 0)),                         # bias table
            pl.BlockSpec((3 * hidden, 3 * hidden), lambda i: (0, 0)),       # wqkv
            pl.BlockSpec((1, 3 * hidden), lambda i: (0, 0)),                # bqkv
            pl.BlockSpec((hidden, hidden), lambda i: (0, 0)),               # wo
            pl.BlockSpec((1, hidden), lambda i: (0, 0)),                    # bo
        ],
        out_specs=pl.BlockSpec((nb, S, hidden), lambda i: (i, 0, 0)),
        scratch_shapes=[pltpu.VMEM((nb, S, hidden), jnp.float32)],
        compiler_params=pltpu.CompilerParams(
            dimension_semantics=(("parallel",) if n_steps > 1 else ("arbitrary",))),
    )(pidx, xqkv, params["tbl_t"], params["wqkv_t"], params["bqkv"],
      params["wo_t"], params["bo"])
    return out


# ----------------------------- pure-JAX reference -----------------------------

def structural_embedding_ref(attn_bias, linear_bias_w, virtual_bias_w, num_global_node):
    ab = attn_bias[..., 0]                                  # [B, N, N]
    B, N = ab.shape[0], ab.shape[1]
    H = linear_bias_w.shape[1]
    mask_off = ab == INF8
    emb = jnp.take(linear_bias_w, ab, axis=0)               # [B, N, N, H]
    emb = jnp.where(mask_off[..., None], -jnp.inf, emb)
    if num_global_node > 0:
        g = num_global_node
        vb = virtual_bias_w
        vrows = jnp.broadcast_to(vb[None, :, None, :], (B, g, N, H))
        emb = jnp.concatenate([emb, vrows], axis=1)
        vcols = jnp.broadcast_to(vb[None, None, :, :], (B, N + g, g, H))
        emb = jnp.concatenate([emb, vcols], axis=2)
    return jnp.transpose(emb, (0, 3, 1, 2))                 # [B, H, S, S]


def mha_reference(q, k, v, attn_bias, raw, num_heads, num_global_node):
    B, S, hidden = q.shape
    dk = hidden // num_heads
    scale = dk ** (-0.5)

    def lin(x, w, b):
        return x @ w.T + b

    qp = lin(q, raw["wq"], raw["bq"]).reshape(B, S, num_heads, dk).transpose(0, 2, 1, 3) * scale
    kp = lin(k, raw["wk"], raw["bk"]).reshape(B, S, num_heads, dk).transpose(0, 2, 1, 3)
    vp = lin(v, raw["wv"], raw["bv"]).reshape(B, S, num_heads, dk).transpose(0, 2, 1, 3)
    bias = structural_embedding_ref(attn_bias, raw["linear_bias"], raw["virtual_bias"],
                                    num_global_node)
    s = jnp.einsum("bhqd,bhkd->bhqk", qp, kp) + bias
    p = jax.nn.softmax(s, axis=-1)
    ctx = jnp.einsum("bhqk,bhkd->bhqd", p, vp)
    ctx = ctx.transpose(0, 2, 1, 3).reshape(B, S, hidden)
    return lin(ctx, raw["wo"], raw["bo"])


# ----------------------------- main -----------------------------

if __name__ == "__main__":
    # TODO(synk): attention dropout / dp_bias dropout (train-time) and the
    # get_score=True branch are not implemented (eval-mode forward only).
    B, n_node, num_global_node = 2, 8, 1
    hidden, num_heads = 32, 4
    S = n_node + num_global_node                 # 9

    key = jax.random.PRNGKey(0)
    ks = jax.random.split(key, 14)

    def init_w(k, shape, sc=0.1):
        return jax.random.normal(k, shape, jnp.float32) * sc

    linear_bias_w = init_w(ks[8], (INF8 + 1, num_heads))
    linear_bias_w = linear_bias_w.at[INF8].set(0.0)      # padding_idx row = 0

    raw = dict(
        wq=init_w(ks[0], (hidden, hidden)), bq=init_w(ks[1], (hidden,)),
        wk=init_w(ks[2], (hidden, hidden)), bk=init_w(ks[3], (hidden,)),
        wv=init_w(ks[4], (hidden, hidden)), bv=init_w(ks[5], (hidden,)),
        wo=init_w(ks[6], (hidden, hidden)), bo=init_w(ks[7], (hidden,)),
        linear_bias=linear_bias_w,
        virtual_bias=init_w(ks[9], (num_global_node, num_heads)),
    )

    params = prepare_params(raw, num_heads=num_heads,
                            num_global_node=num_global_node, hidden=hidden)

    # inputs
    q_in = jax.random.normal(ks[10], (B, S, hidden), jnp.float32)
    k_in = jax.random.normal(ks[11], (B, S, hidden), jnp.float32)
    v_in = jax.random.normal(ks[12], (B, S, hidden), jnp.float32)
    attn_bias_in = jax.random.randint(ks[13], (B, n_node, n_node, 1), 0, 16, jnp.int32)
    attn_bias_in = attn_bias_in.at[:, :, -1, :].set(INF8)   # some padded (-inf) entries

    out = mha_forward(q_in, k_in, v_in, attn_bias_in, params,
                      num_heads=num_heads, num_global_node=num_global_node)
    jax.block_until_ready(out)
    assert out.shape == (B, S, hidden)

    ref = mha_reference(q_in, k_in, v_in, attn_bias_in, raw, num_heads, num_global_node)
    assert jnp.allclose(out, ref, rtol=5e-2, atol=5e-2), (
        float(jnp.max(jnp.abs(out - ref))))

    print("KERNEL_OK")
</pallas_src>

<mosaic_0001>
module attributes {stable_mosaic.version = 11 : i64} {
  func.func @_mha_kernel(%arg0: i32, %arg1: memref<2x9x9x1xi32, #tpu.memory_space<vmem>>, %arg2: memref<2x9x96xbf16, #tpu.memory_space<vmem>>, %arg3: memref<4x384xf32, #tpu.memory_space<vmem>>, %arg4: memref<96x96xbf16, #tpu.memory_space<vmem>>, %arg5: memref<1x96xf32, #tpu.memory_space<vmem>>, %arg6: memref<32x32xbf16, #tpu.memory_space<vmem>>, %arg7: memref<1x32xf32, #tpu.memory_space<vmem>>, %arg8: memref<2x9x32xf32, #tpu.memory_space<vmem>>, %arg9: memref<2x9x32xf32, #tpu.memory_space<vmem>>) attributes {dimension_semantics = [#tpu.dimension_semantics<arbitrary>], iteration_bounds = array<i64: 1>, scalar_prefetch = 0 : i64, scratch_operands = 1 : i64, tpu.core_type = #tpu.core_type<tc>, window_params = [{transform_indices = @transform_0, window_bounds = array<i64: 2, 9, 9, 1>}, {transform_indices = @transform_1, window_bounds = array<i64: 2, 9, 96>}, {pipeline_mode = #tpu.pipeline_mode<synchronous>, transform_indices = @transform_2, window_bounds = array<i64: 4, 384>}, {pipeline_mode = #tpu.pipeline_mode<synchronous>, transform_indices = @transform_3, window_bounds = array<i64: 96, 96>}, {pipeline_mode = #tpu.pipeline_mode<synchronous>, transform_indices = @transform_4, window_bounds = array<i64: 1, 96>}, {pipeline_mode = #tpu.pipeline_mode<synchronous>, transform_indices = @transform_5, window_bounds = array<i64: 32, 32>}, {pipeline_mode = #tpu.pipeline_mode<synchronous>, transform_indices = @transform_6, window_bounds = array<i64: 1, 32>}, {transform_indices = @transform_7, window_bounds = array<i64: 2, 9, 32>}]} {
    %0 = tpu.iota {dimensions = array<i32: 2>} : vector<9x9x384xi32>
    %c0 = arith.constant 0 : index
    %c0_0 = arith.constant 0 : index
    %1 = vector.load %arg3[%c0, %c0_0] : memref<4x384xf32, #tpu.memory_space<vmem>>, vector<4x384xf32>
    %c0_1 = arith.constant 0 : index
    %c0_2 = arith.constant 0 : index
    %2 = vector.load %arg4[%c0_1, %c0_2] : memref<96x96xbf16, #tpu.memory_space<vmem>>, vector<96x96xbf16>
    %c0_3 = arith.constant 0 : index
    %c0_4 = arith.constant 0 : index
    %3 = vector.load %arg5[%c0_3, %c0_4] : memref<1x96xf32, #tpu.memory_space<vmem>>, vector<1x96xf32>
    %c0_5 = arith.constant 0 : index
    %c0_6 = arith.constant 0 : index
    %4 = vector.load %arg6[%c0_5, %c0_6] : memref<32x32xbf16, #tpu.memory_space<vmem>>, vector<32x32xbf16>
    %c0_7 = arith.constant 0 : index
    %c0_8 = arith.constant 0 : index
    %5 = vector.load %arg7[%c0_7, %c0_8] : memref<1x32xf32, #tpu.memory_space<vmem>>, vector<1x32xf32>
    %c0_9 = arith.constant 0 : index
    %c0_10 = arith.constant 0 : index
    %c0_11 = arith.constant 0 : index
    %6 = vector.load %arg2[%c0_9, %c0_10, %c0_11] : memref<2x9x96xbf16, #tpu.memory_space<vmem>>, vector<1x9x96xbf16>
    %7 = vector.shape_cast %6 : vector<1x9x96xbf16> to vector<9x96xbf16>
    %cst = arith.constant dense<0.000000e+00> : vector<9x96xf32>
    %8 = tpu.matmul %7, %2, %cst {dimension_numbers = #tpu.dot_dimension_numbers<[1], [0], [0], [1], [0, 0, 1, 1], [], []>} : vector<9x96xbf16>, vector<96x96xbf16>, vector<9x96xf32> -> vector<9x96xf32>
    %9 = vector.broadcast %3 : vector<1x96xf32> to vector<9x96xf32>
    %10 = arith.addf %8, %9 : vector<9x96xf32>
    %11 = arith.truncf %10 : vector<9x96xf32> to vector<9x96xbf16>
    %c0_12 = arith.constant 0 : index
    %c0_13 = arith.constant 0 : index
    %c0_14 = arith.constant 0 : index
    %c0_15 = arith.constant 0 : index
    %12 = vector.load %arg1[%c0_12, %c0_13, %c0_14, %c0_15] : memref<2x9x9x1xi32, #tpu.memory_space<vmem>>, vector<1x9x9x1xi32>
    %13 = vector.shape_cast %12 : vector<1x9x9x1xi32> to vector<9x9x1xi32>
    %14 = vector.broadcast %13 : vector<9x9x1xi32> to vector<9x9x384xi32>
    %15 = arith.cmpi eq, %14, %0 : vector<9x9x384xi32>
    %16 = arith.extui %15 : vector<9x9x384xi1> to vector<9x9x384xi32>
    %17 = arith.sitofp %16 : vector<9x9x384xi32> to vector<9x9x384xf32>
    %18 = vector.extract_strided_slice %11 {offsets = [0, 0], sizes = [9, 8], strides = [1, 1]} : vector<9x96xbf16> to vector<9x8xbf16>
    %19 = vector.extract_strided_slice %11 {offsets = [0, 32], sizes = [9, 8], strides = [1, 1]} : vector<9x96xbf16> to vector<9x8xbf16>
    %20 = vector.extract_strided_slice %11 {offsets = [0, 64], sizes = [9, 8], strides = [1, 1]} : vector<9x96xbf16> to vector<9x8xbf16>
    %cst_16 = arith.constant dense<0.000000e+00> : vector<9x9xf32>
    %21 = tpu.matmul %18, %19, %cst_16 {dimension_numbers = #tpu.dot_dimension_numbers<[1], [1], [0], [0], [0, 0, 1, 0], [], []>} : vector<9x8xbf16>, vector<9x8xbf16>, vector<9x9xf32> -> vector<9x9xf32>
    %22 = vector.extract_strided_slice %1 {offsets = [0, 0], sizes = [1, 384], strides = [1, 1]} : vector<4x384xf32> to vector<1x384xf32>
    %23 = vector.shape_cast %22 : vector<1x384xf32> to vector<384xf32>
    %24 = vector.shape_cast %23 : vector<384xf32> to vector<1x1x384xf32>
    %25 = vector.broadcast %24 : vector<1x1x384xf32> to vector<9x9x384xf32>
    %26 = arith.mulf %17, %25 : vector<9x9x384xf32>
    %cst_17 = arith.constant dense<0.000000e+00> : vector<9x9xf32>
    %27 = vector.multi_reduction <add>, %26, %cst_17 [2] : vector<9x9x384xf32> to vector<9x9xf32>
    %28 = arith.addf %21, %27 : vector<9x9xf32>
    %cst_18 = arith.constant dense<0xFF800000> : vector<9xf32>
    %29 = vector.multi_reduction <maximumf>, %28, %cst_18 [1] : vector<9x9xf32> to vector<9xf32>
    %30 = vector.shape_cast %29 : vector<9xf32> to vector<9x1xf32>
    %31 = vector.broadcast %30 : vector<9x1xf32> to vector<9x9xf32>
    %32 = arith.subf %28, %31 : vector<9x9xf32>
    %33 = math.exp %32 : vector<9x9xf32>
    %cst_19 = arith.constant dense<0.000000e+00> : vector<9xf32>
    %34 = vector.multi_reduction <add>, %33, %cst_19 [1] : vector<9x9xf32> to vector<9xf32>
    %35 = vector.shape_cast %34 : vector<9xf32> to vector<9x1xf32>
    %36 = tpu.reciprocal %35 {approx = true} : vector<9x1xf32> -> vector<9x1xf32>
    %37 = vector.broadcast %36 : vector<9x1xf32> to vector<9x9xf32>
    %38 = arith.mulf %33, %37 : vector<9x9xf32>
    %39 = arith.truncf %38 : vector<9x9xf32> to vector<9x9xbf16>
    %cst_20 = arith.constant dense<0.000000e+00> : vector<9x8xf32>
    %40 = tpu.matmul %39, %20, %cst_20 {dimension_numbers = #tpu.dot_dimension_numbers<[1], [0], [0], [1], [0, 0, 1, 1], [], []>} : vector<9x9xbf16>, vector<9x8xbf16>, vector<9x8xf32> -> vector<9x8xf32>
    %c0_21 = arith.constant 0 : index
    %c0_22 = arith.constant 0 : index
    %c0_23 = arith.constant 0 : index
    %41 = vector.load %arg9[%c0_21, %c0_22, %c0_23] : memref<2x9x32xf32, #tpu.memory_space<vmem>>, vector<1x9x8xf32>
    %42 = vector.shape_cast %41 : vector<1x9x8xf32> to vector<9x8xf32>
    %43 = vector.shape_cast %40 : vector<9x8xf32> to vector<1x9x8xf32>
    tpu.vector_store %arg9[%c0_21, %c0_22, %c0_23], %43 {strides = array<i32>} : memref<2x9x32xf32, #tpu.memory_space<vmem>>, vector<1x9x8xf32>,
    %44 = vector.extract_strided_slice %11 {offsets = [0, 8], sizes = [9, 8], strides = [1, 1]} : vector<9x96xbf16> to vector<9x8xbf16>
    %45 = vector.extract_strided_slice %11 {offsets = [0, 40], sizes = [9, 8], strides = [1, 1]} : vector<9x96xbf16> to vector<9x8xbf16>
    %46 = vector.extract_strided_slice %11 {offsets = [0, 72], sizes = [9, 8], strides = [1, 1]} : vector<9x96xbf16> to vector<9x8xbf16>
    %cst_24 = arith.constant dense<0.000000e+00> : vector<9x9xf32>
    %47 = tpu.matmul %44, %45, %cst_24 {dimension_numbers = #tpu.dot_dimension_numbers<[1], [1], [0], [0], [0, 0, 1, 0], [], []>} : vector<9x8xbf16>, vector<9x8xbf16>, vector<9x9xf32> -> vector<9x9xf32>
    %48 = vector.extract_strided_slice %1 {offsets = [1, 0], sizes = [1, 384], strides = [1, 1]} : vector<4x384xf32> to vector<1x384xf32>
    %49 = vector.shape_cast %48 : vector<1x384xf32> to vector<384xf32>
    %50 = vector.shape_cast %49 : vector<384xf32> to vector<1x1x384xf32>
    %51 = vector.broadcast %50 : vector<1x1x384xf32> to vector<9x9x384xf32>
    %52 = arith.mulf %17, %51 : vector<9x9x384xf32>
    %cst_25 = arith.constant dense<0.000000e+00> : vector<9x9xf32>
    %53 = vector.multi_reduction <add>, %52, %cst_25 [2] : vector<9x9x384xf32> to vector<9x9xf32>
    %54 = arith.addf %47, %53 : vector<9x9xf32>
    %cst_26 = arith.constant dense<0xFF800000> : vector<9xf32>
    %55 = vector.multi_reduction <maximumf>, %54, %cst_26 [1] : vector<9x9xf32> to vector<9xf32>
    %56 = vector.shape_cast %55 : vector<9xf32> to vector<9x1xf32>
    %57 = vector.broadcast %56 : vector<9x1xf32> to vector<9x9xf32>
    %58 = arith.subf %54, %57 : vector<9x9xf32>
    %59 = math.exp %58 : vector<9x9xf32>
    %cst_27 = arith.constant dense<0.000000e+00> : vector<9xf32>
    %60 = vector.multi_reduction <add>, %59, %cst_27 [1] : vector<9x9xf32> to vector<9xf32>
    %61 = vector.shape_cast %60 : vector<9xf32> to vector<9x1xf32>
    %62 = tpu.reciprocal %61 {approx = true} : vector<9x1xf32> -> vector<9x1xf32>
    %63 = vector.broadcast %62 : vector<9x1xf32> to vector<9x9xf32>
    %64 = arith.mulf %59, %63 : vector<9x9xf32>
    %65 = arith.truncf %64 : vector<9x9xf32> to vector<9x9xbf16>
    %cst_28 = arith.constant dense<0.000000e+00> : vector<9x8xf32>
    %66 = tpu.matmul %65, %46, %cst_28 {dimension_numbers = #tpu.dot_dimension_numbers<[1], [0], [0], [1], [0, 0, 1, 1], [], []>} : vector<9x9xbf16>, vector<9x8xbf16>, vector<9x8xf32> -> vector<9x8xf32>
    %c0_29 = arith.constant 0 : index
    %c0_30 = arith.constant 0 : index
    %c8 = arith.constant 8 : index
    %67 = vector.load %arg9[%c0_29, %c0_30, %c8] : memref<2x9x32xf32, #tpu.memory_space<vmem>>, vector<1x9x8xf32>
    %68 = vector.shape_cast %67 : vector<1x9x8xf32> to vector<9x8xf32>
    %69 = vector.shape_cast %66 : vector<9x8xf32> to vector<1x9x8xf32>
    tpu.vector_store %arg9[%c0_29, %c0_30, %c8], %69 {strides = array<i32>} : memref<2x9x32xf32, #tpu.memory_space<vmem>>, vector<1x9x8xf32>,
    %70 = vector.extract_strided_slice %11 {offsets = [0, 16], sizes = [9, 8], strides = [1, 1]} : vector<9x96xbf16> to vector<9x8xbf16>
    %71 = vector.extract_strided_slice %11 {offsets = [0, 48], sizes = [9, 8], strides = [1, 1]} : vector<9x96xbf16> to vector<9x8xbf16>
    %72 = vector.extract_strided_slice %11 {offsets = [0, 80], sizes = [9, 8], strides = [1, 1]} : vector<9x96xbf16> to vector<9x8xbf16>
    %cst_31 = arith.constant dense<0.000000e+00> : vector<9x9xf32>
    %73 = tpu.matmul %70, %71, %cst_31 {dimension_numbers = #tpu.dot_dimension_numbers<[1], [1], [0], [0], [0, 0, 1, 0], [], []>} : vector<9x8xbf16>, vector<9x8xbf16>, vector<9x9xf32> -> vector<9x9xf32>
    %74 = vector.extract_strided_slice %1 {offsets = [2, 0], sizes = [1, 384], strides = [1, 1]} : vector<4x384xf32> to vector<1x384xf32>
    %75 = vector.shape_cast %74 : vector<1x384xf32> to vector<384xf32>
    %76 = vector.shape_cast %75 : vector<384xf32> to vector<1x1x384xf32>
    %77 = vector.broadcast %76 : vector<1x1x384xf32> to vector<9x9x384xf32>
    %78 = arith.mulf %17, %77 : vector<9x9x384xf32>
    %cst_32 = arith.constant dense<0.000000e+00> : vector<9x9xf32>
    %79 = vector.multi_reduction <add>, %78, %cst_32 [2] : vector<9x9x384xf32> to vector<9x9xf32>
    %80 = arith.addf %73, %79 : vector<9x9xf32>
    %cst_33 = arith.constant dense<0xFF800000> : vector<9xf32>
    %81 = vector.multi_reduction <maximumf>, %80, %cst_33 [1] : vector<9x9xf32> to vector<9xf32>
    %82 = vector.shape_cast %81 : vector<9xf32> to vector<9x1xf32>
    %83 = vector.broadcast %82 : vector<9x1xf32> to vector<9x9xf32>
    %84 = arith.subf %80, %83 : vector<9x9xf32>
    %85 = math.exp %84 : vector<9x9xf32>
    %cst_34 = arith.constant dense<0.000000e+00> : vector<9xf32>
    %86 = vector.multi_reduction <add>, %85, %cst_34 [1] : vector<9x9xf32> to vector<9xf32>
    %87 = vector.shape_cast %86 : vector<9xf32> to vector<9x1xf32>
    %88 = tpu.reciprocal %87 {approx = true} : vector<9x1xf32> -> vector<9x1xf32>
    %89 = vector.broadcast %88 : vector<9x1xf32> to vector<9x9xf32>
    %90 = arith.mulf %85, %89 : vector<9x9xf32>
    %91 = arith.truncf %90 : vector<9x9xf32> to vector<9x9xbf16>
    %cst_35 = arith.constant dense<0.000000e+00> : vector<9x8xf32>
    %92 = tpu.matmul %91, %72, %cst_35 {dimension_numbers = #tpu.dot_dimension_numbers<[1], [0], [0], [1], [0, 0, 1, 1], [], []>} : vector<9x9xbf16>, vector<9x8xbf16>, vector<9x8xf32> -> vector<9x8xf32>
    %c0_36 = arith.constant 0 : index
    %c0_37 = arith.constant 0 : index
    %c16 = arith.constant 16 : index
    %93 = vector.load %arg9[%c0_36, %c0_37, %c16] : memref<2x9x32xf32, #tpu.memory_space<vmem>>, vector<1x9x8xf32>
    %94 = vector.shape_cast %93 : vector<1x9x8xf32> to vector<9x8xf32>
    %95 = vector.shape_cast %92 : vector<9x8xf32> to vector<1x9x8xf32>
    tpu.vector_store %arg9[%c0_36, %c0_37, %c16], %95 {strides = array<i32>} : memref<2x9x32xf32, #tpu.memory_space<vmem>>, vector<1x9x8xf32>,
    %96 = vector.extract_strided_slice %11 {offsets = [0, 24], sizes = [9, 8], strides = [1, 1]} : vector<9x96xbf16> to vector<9x8xbf16>
    %97 = vector.extract_strided_slice %11 {offsets = [0, 56], sizes = [9, 8], strides = [1, 1]} : vector<9x96xbf16> to vector<9x8xbf16>
    %98 = vector.extract_strided_slice %11 {offsets = [0, 88], sizes = [9, 8], strides = [1, 1]} : vector<9x96xbf16> to vector<9x8xbf16>
    %cst_38 = arith.constant dense<0.000000e+00> : vector<9x9xf32>
    %99 = tpu.matmul %96, %97, %cst_38 {dimension_numbers = #tpu.dot_dimension_numbers<[1], [1], [0], [0], [0, 0, 1, 0], [], []>} : vector<9x8xbf16>, vector<9x8xbf16>, vector<9x9xf32> -> vector<9x9xf32>
    %100 = vector.extract_strided_slice %1 {offsets = [3, 0], sizes = [1, 384], strides = [1, 1]} : vector<4x384xf32> to vector<1x384xf32>
    %101 = vector.shape_cast %100 : vector<1x384xf32> to vector<384xf32>
    %102 = vector.shape_cast %101 : vector<384xf32> to vector<1x1x384xf32>
    %103 = vector.broadcast %102 : vector<1x1x384xf32> to vector<9x9x384xf32>
    %104 = arith.mulf %17, %103 : vector<9x9x384xf32>
    %cst_39 = arith.constant dense<0.000000e+00> : vector<9x9xf32>
    %105 = vector.multi_reduction <add>, %104, %cst_39 [2] : vector<9x9x384xf32> to vector<9x9xf32>
    %106 = arith.addf %99, %105 : vector<9x9xf32>
    %cst_40 = arith.constant dense<0xFF800000> : vector<9xf32>
    %107 = vector.multi_reduction <maximumf>, %106, %cst_40 [1] : vector<9x9xf32> to vector<9xf32>
    %108 = vector.shape_cast %107 : vector<9xf32> to vector<9x1xf32>
    %109 = vector.broadcast %108 : vector<9x1xf32> to vector<9x9xf32>
    %110 = arith.subf %106, %109 : vector<9x9xf32>
    %111 = math.exp %110 : vector<9x9xf32>
    %cst_41 = arith.constant dense<0.000000e+00> : vector<9xf32>
    %112 = vector.multi_reduction <add>, %111, %cst_41 [1] : vector<9x9xf32> to vector<9xf32>
    %113 = vector.shape_cast %112 : vector<9xf32> to vector<9x1xf32>
    %114 = tpu.reciprocal %113 {approx = true} : vector<9x1xf32> -> vector<9x1xf32>
    %115 = vector.broadcast %114 : vector<9x1xf32> to vector<9x9xf32>
    %116 = arith.mulf %111, %115 : vector<9x9xf32>
    %117 = arith.truncf %116 : vector<9x9xf32> to vector<9x9xbf16>
    %cst_42 = arith.constant dense<0.000000e+00> : vector<9x8xf32>
    %118 = tpu.matmul %117, %98, %cst_42 {dimension_numbers = #tpu.dot_dimension_numbers<[1], [0], [0], [1], [0, 0, 1, 1], [], []>} : vector<9x9xbf16>, vector<9x8xbf16>, vector<9x8xf32> -> vector<9x8xf32>
    %c0_43 = arith.constant 0 : index
    %c0_44 = arith.constant 0 : index
    %c24 = arith.constant 24 : index
    %119 = vector.load %arg9[%c0_43, %c0_44, %c24] : memref<2x9x32xf32, #tpu.memory_space<vmem>>, vector<1x9x8xf32>
    %120 = vector.shape_cast %119 : vector<1x9x8xf32> to vector<9x8xf32>
    %121 = vector.shape_cast %118 : vector<9x8xf32> to vector<1x9x8xf32>
    tpu.vector_store %arg9[%c0_43, %c0_44, %c24], %121 {strides = array<i32>} : memref<2x9x32xf32, #tpu.memory_space<vmem>>, vector<1x9x8xf32>,
    %c0_45 = arith.constant 0 : index
    %c0_46 = arith.constant 0 : index
    %c0_47 = arith.constant 0 : index
    %122 = vector.load %arg9[%c0_45, %c0_46, %c0_47] : memref<2x9x32xf32, #tpu.memory_space<vmem>>, vector<1x9x32xf32>
    %123 = vector.shape_cast %122 : vector<1x9x32xf32> to vector<9x32xf32>
    %124 = arith.truncf %123 : vector<9x32xf32> to vector<9x32xbf16>
    %cst_48 = arith.constant dense<0.000000e+00> : vector<9x32xf32>
    %125 = tpu.matmul %124, %4, %cst_48 {dimension_numbers = #tpu.dot_dimension_numbers<[1], [0], [0], [1], [0, 0, 1, 1], [], []>} : vector<9x32xbf16>, vector<32x32xbf16>, vector<9x32xf32> -> vector<9x32xf32>
    %126 = vector.broadcast %5 : vector<1x32xf32> to vector<9x32xf32>
    %127 = arith.addf %125, %126 : vector<9x32xf32>
    %c0_49 = arith.constant 0 : index
    %c0_50 = arith.constant 0 : index
    %c0_51 = arith.constant 0 : index
    %128 = vector.load %arg8[%c0_49, %c0_50, %c0_51] : memref<2x9x32xf32, #tpu.memory_space<vmem>>, vector<1x9x32xf32>
    %129 = vector.shape_cast %128 : vector<1x9x32xf32> to vector<9x32xf32>
    %130 = vector.shape_cast %127 : vector<9x32xf32> to vector<1x9x32xf32>
    tpu.vector_store %arg8[%c0_49, %c0_50, %c0_51], %130 {strides = array<i32>} : memref<2x9x32xf32, #tpu.memory_space<vmem>>, vector<1x9x32xf32>,
    %c1 = arith.constant 1 : index
    %c0_52 = arith.constant 0 : index
    %c0_53 = arith.constant 0 : index
    %131 = vector.load %arg2[%c1, %c0_52, %c0_53] : memref<2x9x96xbf16, #tpu.memory_space<vmem>>, vector<1x9x96xbf16>
    %132 = vector.shape_cast %131 : vector<1x9x96xbf16> to vector<9x96xbf16>
    %cst_54 = arith.constant dense<0.000000e+00> : vector<9x96xf32>
    %133 = tpu.matmul %132, %2, %cst_54 {dimension_numbers = #tpu.dot_dimension_numbers<[1], [0], [0], [1], [0, 0, 1, 1], [], []>} : vector<9x96xbf16>, vector<96x96xbf16>, vector<9x96xf32> -> vector<9x96xf32>
    %134 = vector.broadcast %3 : vector<1x96xf32> to vector<9x96xf32>
    %135 = arith.addf %133, %134 : vector<9x96xf32>
    %136 = arith.truncf %135 : vector<9x96xf32> to vector<9x96xbf16>
    %c1_55 = arith.constant 1 : index
    %c0_56 = arith.constant 0 : index
    %c0_57 = arith.constant 0 : index
    %c0_58 = arith.constant 0 : index
    %137 = vector.load %arg1[%c1_55, %c0_56, %c0_57, %c0_58] : memref<2x9x9x1xi32, #tpu.memory_space<vmem>>, vector<1x9x9x1xi32>
    %138 = vector.shape_cast %137 : vector<1x9x9x1xi32> to vector<9x9x1xi32>
    %139 = vector.broadcast %138 : vector<9x9x1xi32> to vector<9x9x384xi32>
    %140 = arith.cmpi eq, %139, %0 : vector<9x9x384xi32>
    %141 = arith.extui %140 : vector<9x9x384xi1> to vector<9x9x384xi32>
    %142 = arith.sitofp %141 : vector<9x9x384xi32> to vector<9x9x384xf32>
    %143 = vector.extract_strided_slice %136 {offsets = [0, 0], sizes = [9, 8], strides = [1, 1]} : vector<9x96xbf16> to vector<9x8xbf16>
    %144 = vector.extract_strided_slice %136 {offsets = [0, 32], sizes = [9, 8], strides = [1, 1]} : vector<9x96xbf16> to vector<9x8xbf16>
    %145 = vector.extract_strided_slice %136 {offsets = [0, 64], sizes = [9, 8], strides = [1, 1]} : vector<9x96xbf16> to vector<9x8xbf16>
    %cst_59 = arith.constant dense<0.000000e+00> : vector<9x9xf32>
    %146 = tpu.matmul %143, %144, %cst_59 {dimension_numbers = #tpu.dot_dimension_numbers<[1], [1], [0], [0], [0, 0, 1, 0], [], []>} : vector<9x8xbf16>, vector<9x8xbf16>, vector<9x9xf32> -> vector<9x9xf32>
    %147 = vector.extract_strided_slice %1 {offsets = [0, 0], sizes = [1, 384], strides = [1, 1]} : vector<4x384xf32> to vector<1x384xf32>
    %148 = vector.shape_cast %147 : vector<1x384xf32> to vector<384xf32>
    %149 = vector.shape_cast %148 : vector<384xf32> to vector<1x1x384xf32>
    %150 = vector.broadcast %149 : vector<1x1x384xf32> to vector<9x9x384xf32>
    %151 = arith.mulf %142, %150 : vector<9x9x384xf32>
    %cst_60 = arith.constant dense<0.000000e+00> : vector<9x9xf32>
    %152 = vector.multi_reduction <add>, %151, %cst_60 [2] : vector<9x9x384xf32> to vector<9x9xf32>
    %153 = arith.addf %146, %152 : vector<9x9xf32>
    %cst_61 = arith.constant dense<0xFF800000> : vector<9xf32>
    %154 = vector.multi_reduction <maximumf>, %153, %cst_61 [1] : vector<9x9xf32> to vector<9xf32>
    %155 = vector.shape_cast %154 : vector<9xf32> to vector<9x1xf32>
    %156 = vector.broadcast %155 : vector<9x1xf32> to vector<9x9xf32>
    %157 = arith.subf %153, %156 : vector<9x9xf32>
    %158 = math.exp %157 : vector<9x9xf32>
    %cst_62 = arith.constant dense<0.000000e+00> : vector<9xf32>
    %159 = vector.multi_reduction <add>, %158, %cst_62 [1] : vector<9x9xf32> to vector<9xf32>
    %160 = vector.shape_cast %159 : vector<9xf32> to vector<9x1xf32>
    %161 = tpu.reciprocal %160 {approx = true} : vector<9x1xf32> -> vector<9x1xf32>
    %162 = vector.broadcast %161 : vector<9x1xf32> to vector<9x9xf32>
    %163 = arith.mulf %158, %162 : vector<9x9xf32>
    %164 = arith.truncf %163 : vector<9x9xf32> to vector<9x9xbf16>
    %cst_63 = arith.constant dense<0.000000e+00> : vector<9x8xf32>
    %165 = tpu.matmul %164, %145, %cst_63 {dimension_numbers = #tpu.dot_dimension_numbers<[1], [0], [0], [1], [0, 0, 1, 1], [], []>} : vector<9x9xbf16>, vector<9x8xbf16>, vector<9x8xf32> -> vector<9x8xf32>
    %c1_64 = arith.constant 1 : index
    %c0_65 = arith.constant 0 : index
    %c0_66 = arith.constant 0 : index
    %166 = vector.load %arg9[%c1_64, %c0_65, %c0_66] : memref<2x9x32xf32, #tpu.memory_space<vmem>>, vector<1x9x8xf32>
    %167 = vector.shape_cast %166 : vector<1x9x8xf32> to vector<9x8xf32>
    %168 = vector.shape_cast %165 : vector<9x8xf32> to vector<1x9x8xf32>
    tpu.vector_store %arg9[%c1_64, %c0_65, %c0_66], %168 {strides = array<i32>} : memref<2x9x32xf32, #tpu.memory_space<vmem>>, vector<1x9x8xf32>,
    %169 = vector.extract_strided_slice %136 {offsets = [0, 8], sizes = [9, 8], strides = [1, 1]} : vector<9x96xbf16> to vector<9x8xbf16>
    %170 = vector.extract_strided_slice %136 {offsets = [0, 40], sizes = [9, 8], strides = [1, 1]} : vector<9x96xbf16> to vector<9x8xbf16>
    %171 = vector.extract_strided_slice %136 {offsets = [0, 72], sizes = [9, 8], strides = [1, 1]} : vector<9x96xbf16> to vector<9x8xbf16>
    %cst_67 = arith.constant dense<0.000000e+00> : vector<9x9xf32>
    %172 = tpu.matmul %169, %170, %cst_67 {dimension_numbers = #tpu.dot_dimension_numbers<[1], [1], [0], [0], [0, 0, 1, 0], [], []>} : vector<9x8xbf16>, vector<9x8xbf16>, vector<9x9xf32> -> vector<9x9xf32>
    %173 = vector.extract_strided_slice %1 {offsets = [1, 0], sizes = [1, 384], strides = [1, 1]} : vector<4x384xf32> to vector<1x384xf32>
    %174 = vector.shape_cast %173 : vector<1x384xf32> to vector<384xf32>
    %175 = vector.shape_cast %174 : vector<384xf32> to vector<1x1x384xf32>
    %176 = vector.broadcast %175 : vector<1x1x384xf32> to vector<9x9x384xf32>
    %177 = arith.mulf %142, %176 : vector<9x9x384xf32>
    %cst_68 = arith.constant dense<0.000000e+00> : vector<9x9xf32>
    %178 = vector.multi_reduction <add>, %177, %cst_68 [2] : vector<9x9x384xf32> to vector<9x9xf32>
    %179 = arith.addf %172, %178 : vector<9x9xf32>
    %cst_69 = arith.constant dense<0xFF800000> : vector<9xf32>
    %180 = vector.multi_reduction <maximumf>, %179, %cst_69 [1] : vector<9x9xf32> to vector<9xf32>
    %181 = vector.shape_cast %180 : vector<9xf32> to vector<9x1xf32>
    %182 = vector.broadcast %181 : vector<9x1xf32> to vector<9x9xf32>
    %183 = arith.subf %179, %182 : vector<9x9xf32>
    %184 = math.exp %183 : vector<9x9xf32>
    %cst_70 = arith.constant dense<0.000000e+00> : vector<9xf32>
    %185 = vector.multi_reduction <add>, %184, %cst_70 [1] : vector<9x9xf32> to vector<9xf32>
    %186 = vector.shape_cast %185 : vector<9xf32> to vector<9x1xf32>
    %187 = tpu.reciprocal %186 {approx = true} : vector<9x1xf32> -> vector<9x1xf32>
    %188 = vector.broadcast %187 : vector<9x1xf32> to vector<9x9xf32>
    %189 = arith.mulf %184, %188 : vector<9x9xf32>
    %190 = arith.truncf %189 : vector<9x9xf32> to vector<9x9xbf16>
    %cst_71 = arith.constant dense<0.000000e+00> : vector<9x8xf32>
    %191 = tpu.matmul %190, %171, %cst_71 {dimension_numbers = #tpu.dot_dimension_numbers<[1], [0], [0], [1], [0, 0, 1, 1], [], []>} : vector<9x9xbf16>, vector<9x8xbf16>, vector<9x8xf32> -> vector<9x8xf32>
    %c1_72 = arith.constant 1 : index
    %c0_73 = arith.constant 0 : index
    %c8_74 = arith.constant 8 : index
    %192 = vector.load %arg9[%c1_72, %c0_73, %c8_74] : memref<2x9x32xf32, #tpu.memory_space<vmem>>, vector<1x9x8xf32>
    %193 = vector.shape_cast %192 : vector<1x9x8xf32> to vector<9x8xf32>
    %194 = vector.shape_cast %191 : vector<9x8xf32> to vector<1x9x8xf32>
    tpu.vector_store %arg9[%c1_72, %c0_73, %c8_74], %194 {strides = array<i32>} : memref<2x9x32xf32, #tpu.memory_space<vmem>>, vector<1x9x8xf32>,
    %195 = vector.extract_strided_slice %136 {offsets = [0, 16], sizes = [9, 8], strides = [1, 1]} : vector<9x96xbf16> to vector<9x8xbf16>
    %196 = vector.extract_strided_slice %136 {offsets = [0, 48], sizes = [9, 8], strides = [1, 1]} : vector<9x96xbf16> to vector<9x8xbf16>
    %197 = vector.extract_strided_slice %136 {offsets = [0, 80], sizes = [9, 8], strides = [1, 1]} : vector<9x96xbf16> to vector<9x8xbf16>
    %cst_75 = arith.constant dense<0.000000e+00> : vector<9x9xf32>
    %198 = tpu.matmul %195, %196, %cst_75 {dimension_numbers = #tpu.dot_dimension_numbers<[1], [1], [0], [0], [0, 0, 1, 0], [], []>} : vector<9x8xbf16>, vector<9x8xbf16>, vector<9x9xf32> -> vector<9x9xf32>
    %199 = vector.extract_strided_slice %1 {offsets = [2, 0], sizes = [1, 384], strides = [1, 1]} : vector<4x384xf32> to vector<1x384xf32>
    %200 = vector.shape_cast %199 : vector<1x384xf32> to vector<384xf32>
    %201 = vector.shape_cast %200 : vector<384xf32> to vector<1x1x384xf32>
    %202 = vector.broadcast %201 : vector<1x1x384xf32> to vector<9x9x384xf32>
    %203 = arith.mulf %142, %202 : vector<9x9x384xf32>
    %cst_76 = arith.constant dense<0.000000e+00> : vector<9x9xf32>
    %204 = vector.multi_reduction <add>, %203, %cst_76 [2] : vector<9x9x384xf32> to vector<9x9xf32>
    %205 = arith.addf %198, %204 : vector<9x9xf32>
    %cst_77 = arith.constant dense<0xFF800000> : vector<9xf32>
    %206 = vector.multi_reduction <maximumf>, %205, %cst_77 [1] : vector<9x9xf32> to vector<9xf32>
    %207 = vector.shape_cast %206 : vector<9xf32> to vector<9x1xf32>
    %208 = vector.broadcast %207 : vector<9x1xf32> to vector<9x9xf32>
    %209 = arith.subf %205, %208 : vector<9x9xf32>
    %210 = math.exp %209 : vector<9x9xf32>
    %cst_78 = arith.constant dense<0.000000e+00> : vector<9xf32>
    %211 = vector.multi_reduction <add>, %210, %cst_78 [1] : vector<9x9xf32> to vector<9xf32>
    %212 = vector.shape_cast %211 : vector<9xf32> to vector<9x1xf32>
    %213 = tpu.reciprocal %212 {approx = true} : vector<9x1xf32> -> vector<9x1xf32>
    %214 = vector.broadcast %213 : vector<9x1xf32> to vector<9x9xf32>
    %215 = arith.mulf %210, %214 : vector<9x9xf32>
    %216 = arith.truncf %215 : vector<9x9xf32> to vector<9x9xbf16>
    %cst_79 = arith.constant dense<0.000000e+00> : vector<9x8xf32>
    %217 = tpu.matmul %216, %197, %cst_79 {dimension_numbers = #tpu.dot_dimension_numbers<[1], [0], [0], [1], [0, 0, 1, 1], [], []>} : vector<9x9xbf16>, vector<9x8xbf16>, vector<9x8xf32> -> vector<9x8xf32>
    %c1_80 = arith.constant 1 : index
    %c0_81 = arith.constant 0 : index
    %c16_82 = arith.constant 16 : index
    %218 = vector.load %arg9[%c1_80, %c0_81, %c16_82] : memref<2x9x32xf32, #tpu.memory_space<vmem>>, vector<1x9x8xf32>
    %219 = vector.shape_cast %218 : vector<1x9x8xf32> to vector<9x8xf32>
    %220 = vector.shape_cast %217 : vector<9x8xf32> to vector<1x9x8xf32>
    tpu.vector_store %arg9[%c1_80, %c0_81, %c16_82], %220 {strides = array<i32>} : memref<2x9x32xf32, #tpu.memory_space<vmem>>, vector<1x9x8xf32>,
    %221 = vector.extract_strided_slice %136 {offsets = [0, 24], sizes = [9, 8], strides = [1, 1]} : vector<9x96xbf16> to vector<9x8xbf16>
    %222 = vector.extract_strided_slice %136 {offsets = [0, 56], sizes = [9, 8], strides = [1, 1]} : vector<9x96xbf16> to vector<9x8xbf16>
    %223 = vector.extract_strided_slice %136 {offsets = [0, 88], sizes = [9, 8], strides = [1, 1]} : vector<9x96xbf16> to vector<9x8xbf16>
    %cst_83 = arith.constant dense<0.000000e+00> : vector<9x9xf32>
    %224 = tpu.matmul %221, %222, %cst_83 {dimension_numbers = #tpu.dot_dimension_numbers<[1], [1], [0], [0], [0, 0, 1, 0], [], []>} : vector<9x8xbf16>, vector<9x8xbf16>, vector<9x9xf32> -> vector<9x9xf32>
    %225 = vector.extract_strided_slice %1 {offsets = [3, 0], sizes = [1, 384], strides = [1, 1]} : vector<4x384xf32> to vector<1x384xf32>
    %226 = vector.shape_cast %225 : vector<1x384xf32> to vector<384xf32>
    %227 = vector.shape_cast %226 : vector<384xf32> to vector<1x1x384xf32>
    %228 = vector.broadcast %227 : vector<1x1x384xf32> to vector<9x9x384xf32>
    %229 = arith.mulf %142, %228 : vector<9x9x384xf32>
    %cst_84 = arith.constant dense<0.000000e+00> : vector<9x9xf32>
    %230 = vector.multi_reduction <add>, %229, %cst_84 [2] : vector<9x9x384xf32> to vector<9x9xf32>
    %231 = arith.addf %224, %230 : vector<9x9xf32>
    %cst_85 = arith.constant dense<0xFF800000> : vector<9xf32>
    %232 = vector.multi_reduction <maximumf>, %231, %cst_85 [1] : vector<9x9xf32> to vector<9xf32>
    %233 = vector.shape_cast %232 : vector<9xf32> to vector<9x1xf32>
    %234 = vector.broadcast %233 : vector<9x1xf32> to vector<9x9xf32>
    %235 = arith.subf %231, %234 : vector<9x9xf32>
    %236 = math.exp %235 : vector<9x9xf32>
    %cst_86 = arith.constant dense<0.000000e+00> : vector<9xf32>
    %237 = vector.multi_reduction <add>, %236, %cst_86 [1] : vector<9x9xf32> to vector<9xf32>
    %238 = vector.shape_cast %237 : vector<9xf32> to vector<9x1xf32>
    %239 = tpu.reciprocal %238 {approx = true} : vector<9x1xf32> -> vector<9x1xf32>
    %240 = vector.broadcast %239 : vector<9x1xf32> to vector<9x9xf32>
    %241 = arith.mulf %236, %240 : vector<9x9xf32>
    %242 = arith.truncf %241 : vector<9x9xf32> to vector<9x9xbf16>
    %cst_87 = arith.constant dense<0.000000e+00> : vector<9x8xf32>
    %243 = tpu.matmul %242, %223, %cst_87 {dimension_numbers = #tpu.dot_dimension_numbers<[1], [0], [0], [1], [0, 0, 1, 1], [], []>} : vector<9x9xbf16>, vector<9x8xbf16>, vector<9x8xf32> -> vector<9x8xf32>
    %c1_88 = arith.constant 1 : index
    %c0_89 = arith.constant 0 : index
    %c24_90 = arith.constant 24 : index
    %244 = vector.load %arg9[%c1_88, %c0_89, %c24_90] : memref<2x9x32xf32, #tpu.memory_space<vmem>>, vector<1x9x8xf32>
    %245 = vector.shape_cast %244 : vector<1x9x8xf32> to vector<9x8xf32>
    %246 = vector.shape_cast %243 : vector<9x8xf32> to vector<1x9x8xf32>
    tpu.vector_store %arg9[%c1_88, %c0_89, %c24_90], %246 {strides = array<i32>} : memref<2x9x32xf32, #tpu.memory_space<vmem>>, vector<1x9x8xf32>,
    %c1_91 = arith.constant 1 : index
    %c0_92 = arith.constant 0 : index
    %c0_93 = arith.constant 0 : index
    %247 = vector.load %arg9[%c1_91, %c0_92, %c0_93] : memref<2x9x32xf32, #tpu.memory_space<vmem>>, vector<1x9x32xf32>
    %248 = vector.shape_cast %247 : vector<1x9x32xf32> to vector<9x32xf32>
    %249 = arith.truncf %248 : vector<9x32xf32> to vector<9x32xbf16>
    %cst_94 = arith.constant dense<0.000000e+00> : vector<9x32xf32>
    %250 = tpu.matmul %249, %4, %cst_94 {dimension_numbers = #tpu.dot_dimension_numbers<[1], [0], [0], [1], [0, 0, 1, 1], [], []>} : vector<9x32xbf16>, vector<32x32xbf16>, vector<9x32xf32> -> vector<9x32xf32>
    %251 = vector.broadcast %5 : vector<1x32xf32> to vector<9x32xf32>
    %252 = arith.addf %250, %251 : vector<9x32xf32>
    %c1_95 = arith.constant 1 : index
    %c0_96 = arith.constant 0 : index
    %c0_97 = arith.constant 0 : index
    %253 = vector.load %arg8[%c1_95, %c0_96, %c0_97] : memref<2x9x32xf32, #tpu.memory_space<vmem>>, vector<1x9x32xf32>
    %254 = vector.shape_cast %253 : vector<1x9x32xf32> to vector<9x32xf32>
    %255 = vector.shape_cast %252 : vector<9x32xf32> to vector<1x9x32xf32>
    tpu.vector_store %arg8[%c1_95, %c0_96, %c0_97], %255 {strides = array<i32>} : memref<2x9x32xf32, #tpu.memory_space<vmem>>, vector<1x9x32xf32>,
    return
  }
  func.func @transform_0(%arg0: i32) -> (i32, i32, i32, i32) {
    %c0_i32 = arith.constant 0 : i32
    %c0_i32_0 = arith.constant 0 : i32
    %c0_i32_1 = arith.constant 0 : i32
    %c0_i32_2 = arith.constant 0 : i32
    return %arg0, %c0_i32, %c0_i32_0, %c0_i32_1 : i32, i32, i32, i32
  }
  func.func @transform_1(%arg0: i32) -> (i32, i32, i32) {
    %c0_i32 = arith.constant 0 : i32
    %c0_i32_0 = arith.constant 0 : i32
    %c0_i32_1 = arith.constant 0 : i32
    return %arg0, %c0_i32, %c0_i32_0 : i32, i32, i32
  }
  func.func @transform_2(%arg0: i32) -> (i32, i32) {
    %c0_i32 = arith.constant 0 : i32
    %c0_i32_0 = arith.constant 0 : i32
    %c0_i32_1 = arith.constant 0 : i32
    return %c0_i32, %c0_i32_0 : i32, i32
  }
  func.func @transform_3(%arg0: i32) -> (i32, i32) {
    %c0_i32 = arith.constant 0 : i32
    %c0_i32_0 = arith.constant 0 : i32
    %c0_i32_1 = arith.constant 0 : i32
    return %c0_i32, %c0_i32_0 : i32, i32
  }
  func.func @transform_4(%arg0: i32) -> (i32, i32) {
    %c0_i32 = arith.constant 0 : i32
    %c0_i32_0 = arith.constant 0 : i32
    %c0_i32_1 = arith.constant 0 : i32
    return %c0_i32, %c0_i32_0 : i32, i32
  }
  func.func @transform_5(%arg0: i32) -> (i32, i32) {
    %c0_i32 = arith.constant 0 : i32
    %c0_i32_0 = arith.constant 0 : i32
    %c0_i32_1 = arith.constant 0 : i32
    return %c0_i32, %c0_i32_0 : i32, i32
  }
  func.func @transform_6(%arg0: i32) -> (i32, i32) {
    %c0_i32 = arith.constant 0 : i32
    %c0_i32_0 = arith.constant 0 : i32
    %c0_i32_1 = arith.constant 0 : i32
    return %c0_i32, %c0_i32_0 : i32, i32
  }
  func.func @transform_7(%arg0: i32) -> (i32, i32, i32) {
    %c0_i32 = arith.constant 0 : i32
    %c0_i32_0 = arith.constant 0 : i32
    %c0_i32_1 = arith.constant 0 : i32
    return %arg0, %c0_i32, %c0_i32_0 : i32, i32, i32
  }
}

</mosaic_0001>

<bundles_post_ra>
// kernel: mha_forward.1
= control target key start
LH: loop header
LB: loop body
LE: loop exit
PB: predicated region body
PF: predicated region fallthrough
CT: control target
= control target key end

     0   :  { %v7345_v0 = vmov 0.0   ;;  %vm7396_vm0 = vmmov 0   ;;  %v4523_v2 = vmov 0   ;;  %vm100_vm1 = vcmask 785408   ;;  %s4524_s14 = smov 96   ;;  %s4525_s11 = smov 64   ;;  %s7337_s3 = inlined_call_operand.vmem [shape: bf16[96,96], index: 3, kind: input, shape index: {}]   ;;  %s7338_s0 = inlined_call_operand.vmem [shape: s32[2,9,9,1], index: 0, kind: input, shape index: {}]   ;;  %s7339_s1 = inlined_call_operand.vmem [shape: bf16[2,9,96], index: 1, kind: input, shape index: {}]   ;;  %s7340_s4 = inlined_call_operand.vmem [shape: f32[1,96], index: 4, kind: input, shape index: {}]   ;;  %s7341_s2 = inlined_call_operand.vmem [shape: f32[4,384], index: 2, kind: input, shape index: {}]   ;;  %s7342_s5 = inlined_call_operand.vmem [shape: bf16[32,32], index: 5, kind: input, shape index: {}]   ;;  %s7343_s6 = inlined_call_operand.vmem [shape: f32[1,32], index: 6, kind: input, shape index: {}]   ;;  %s7344_s7 = inlined_call_operand.vmem [shape: f32[2,9,32], index: 7, kind: output, shape index: {}]  }
   0x1   :  { %4273 = vmatprep.subr.bf16.mxu0 %v7345_v0  ;;  %v4437_v1 = vld [vmem:[%s7337_s3 + $0x28] sm:$0xff]   ;;  %4285 = vmatprep.mubr.msk.bf16.mxu0 %vm7396_vm0, %v7345_v0  ;;  %v4438_v3 = vld [vmem:[%s7337_s3 + $0x20] sm:$0xff]   ;;  %v4439_v4 = vld [vmem:[%s7337_s3 + $0x18] sm:$0xff]   ;;  %v27_v25 = vlaneseq  ;;  %s4527_s12 = smov 120   ;;  %s4528_s13 = smov 80  }
   0x2   :  { %4436 = vset.pattern.permute.xlu1 %v4523_v2  ;;  %4435 = vset.pattern.permute.xlu0 %v4523_v2  ;;  %v149_v5 = vld [vmem:[%s7338_s0 + $0x18] sm:$0x1]  ;;  %v146_v6 = vld [vmem:[%s7338_s0] sm:$0xff]  ;;  %v4440_v7 = vld [vmem:[%s7337_s3 + $0x10] sm:$0xff]   ;;  %s4529_s15 = smov 72   ;;  %s4530_s16 = smov 88  }
   0x3   :  { %4274 = vmatpush3.bf16.msra.mxu0 %v4437_v1  ;;  %4289 = vmatprep.subr.bf16.mxu1 %v7345_v0  ;;  %v148_v8 = vld [vmem:[%s7338_s0 + $0x10] sm:$0xff]  ;;  %v4441_v9 = vld [vmem:[%s7337_s3 + $0x8] sm:$0xff]   ;;  %v150_v10 = vld [vmem:[%s7338_s0 + $0x20] sm:$0xff]  ;;  %v4651_v26 = vand.u32 127, %v27_v25  ;;  %v4668_v37 = vshrl.u32 %v27_v25, 7  ;;  %s4531_s17 = smov 112  }
   0x4   :  { %4275 = vmatprep.subr.bf16.mxu0 %v7345_v0  ;;  %4291 = vmatprep.mubr.msk.bf16.mxu1 %vm7396_vm0, %v7345_v0  ;;  %v4442_v11 = vld [vmem:[%s7337_s3] sm:$0xff]   ;;  %v152_v13 = vld [vmem:[%s7338_s0 + $0x30] sm:$0xff]  ;;  %v147_v46 = vld [vmem:[%s7338_s0 + $0x8] sm:$0x1]  ;;  %s4532_s18 = smov 104   ;;  %s4533_s19 = smov 48  }
   0x5   :  { %174 = vperm.xlu1 %4436, %v149_v5   ;;  %v4443_v12 = vld [vmem:[%s7339_s1] sm:$0x1f]   ;;  %v156_v15 = vld [vmem:[%s7338_s0 + $0x50] sm:$0xff]  ;;  %7466 = vst [vmem:[#allocation3_spill] sm:$0xff] %v4651_v26  ;;  %v4659_v31 = vadd.s32 128, %v4651_v26  ;;  %v4662_v32 = vadd.s32 256, %v4651_v26 }
   0x6   :  { %v154_v14 = vld [vmem:[%s7338_s0 + $0x40] sm:$0xff]  ;;  %v160_v17 = vld [vmem:[%s7338_s0 + $0x70] sm:$0xff]  ;;  %7469 = vst [vmem:[#allocation6_spill] sm:$0xff] %v4668_v37  ;;  %v4694_v44 = vsub.s32 1, %v4668_v37  ;;  %v818_v45 = vsub.s32 5, %v4668_v37  ;;  %v384_v47 = vsub.s32 0, %v4668_v37 }
   0x7   :  { %4276 = vmatpush3.bf16.msra.mxu0 %v4438_v3  ;;  %v158_v16 = vld [vmem:[%s7338_s0 + $0x60] sm:$0xff]  ;;  %7467 = vst [vmem:[#allocation4_spill] sm:$0xff] %v4659_v31  ;;  %7468 = vst [vmem:[#allocation5_spill] sm:$0xff] %v4662_v32  ;;  %v388_v48 = vsub.s32 4, %v4668_v37  ;;  %v4749_v58 = vld [vmem:[%s7341_s2 + $0x8] sm:$0xf] }
   0x8   :  { %4277 = vmatprep.subr.bf16.mxu0 %v7345_v0  ;;  %v162_v18 = vld [vmem:[%s7338_s0 + $0x80] sm:$0xff]  ;;  %v151_v61 = vld [vmem:[%s7338_s0 + $0x28] sm:$0x1]  ;;  %v823_v25 = vrot.slane %v4749_v58, %v4694_v44  ;;  %s4534_s20 = smov 56   ;;  %s4535_s21 = smov 40  }
   0x9   :  { %165 = vperm.xlu1 %4436, %v146_v6   ;;  %v4059_v29 = vld [vmem:[%s7340_s4] ss:$0 sm:$0xff]  ;;  %s4538_s26 = smov 24  }
   0xa   :  { %v4729_v53 = vld [vmem:[%s7341_s2] sm:$0xff]  ;;  %s4536_s2 = smov 8  }
   0xb   :  { %4278 = vmatpush3.bf16.msra.mxu0 %v4439_v4  ;;  %v815_v59 = vrot.slane %v4729_v53, %v4694_v44  ;;  %v819_v60 = vrot.slane %v4729_v53, %v818_v45  ;;  %v385_v62 = vrot.slane %v4729_v53, %v384_v47  ;;  %v389_v63 = vrot.slane %v4729_v53, %v388_v48 }
   0xc   :  { %4279 = vmatprep.subr.bf16.mxu0 %v7345_v0  ;;  %v393_v4 = vrot.slane %v4749_v58, %v384_v47 }
   0xd   :  { %171 = vperm.xlu1 %4436, %v148_v8   ;;  %v4798_v8 = vrot.slane %v385_v62, %v384_v47 }
   0xf   :  { %4280 = vmatpush3.bf16.msra.mxu0 %v4440_v7  ;;  %v153_v7 = vld [vmem:[%s7338_s0 + $0x38] sm:$0x1]  ;;  %7474 = vst [vmem:[#allocation11_spill] sm:$0xff] %v4798_v8 }
  0x10   :  { %4281 = vmatprep.subr.bf16.mxu0 %v7345_v0 }
  0x11   :  { %177 = vperm.xlu1 %4436, %v150_v10  }
  0x13   :  { %4282 = vmatpush3.bf16.msra.mxu0 %v4441_v9  ;;  %v4800_v9 = vrot.slane %v389_v63, %v384_v47 }
  0x14   :  { %4283 = vmatprep.subr.bf16.mxu0 %v7345_v0 }
  0x15   :  { %183 = vperm.xlu1 %4436, %v152_v13   ;;  %7475 = vst [vmem:[#allocation12_spill] sm:$0xff] %v4800_v9 }
  0x17   :  { %4284 = vmatpush3.bf16.msra.mxu0 %v4442_v11 }
  0x18   :  { %4307 = vmatprep.subr.bf16.mxu0 %v7345_v0 }
  0x19   :  { %189 = vperm.xlu1 %4436, %v154_v14  }
  0x1a   :  { %4286 = vmatmul.mubr.msk.bf16.vlgmr.msra.gmra.mxu0 %vm100_vm1, %v4443_v12 }
  0x1b   :  { %4309 = vmatprep.mubr.msk.bf16.mxu0 %vm7396_vm0, %v7345_v0 }
  0x1d   :  { %195 = vperm.xlu1 %4436, %v156_v15  }
  0x21   :  { %201 = vperm.xlu1 %4436, %v158_v16   ;;  %v4819_v16 = vrot.slane %v393_v4, %v384_v47 }
  0x23   :  { %7476 = vst [vmem:[#allocation13_spill] sm:$0xff] %v4819_v16 }
  0x25   :  { %207 = vperm.xlu1 %4436, %v160_v17  }
  0x29   :  { %213 = vperm.xlu1 %4436, %v162_v18  }
  0x80   :  { %v175_v19 = vpop.permute.xlu1 %174 }
  0x81   :  { %vm227_vm2 = vcmp.eq.s32.totalorder %v175_v19, %v4651_v26  ;;  %vm228_vm3 = vcmp.eq.s32.totalorder %v175_v19, %v4659_v31  ;;  %vm229_vm4 = vcmp.eq.s32.totalorder %v175_v19, %v4662_v32 }
  0x82   :  { %v4673_v39 = vsel %vm227_vm2, 1.0, %v7345_v0  ;;  %v4676_v40 = vsel %vm228_vm3, 1.0, %v7345_v0  ;;  %v4682_v42 = vsel %vm229_vm4, 1.0, %v7345_v0 }
  0x84   :  { %v166_v20 = vpop.permute.xlu1 %165 }
  0x85   :  { %vm218_vm5 = vcmp.eq.s32.totalorder %v166_v20, %v4651_v26  ;;  %vm219_vm6 = vcmp.eq.s32.totalorder %v166_v20, %v4659_v31  ;;  %vm220_vm7 = vcmp.eq.s32.totalorder %v166_v20, %v4662_v32  ;;  %v155_v20 = vld [vmem:[%s7338_s0 + $0x48] sm:$0x1] }
  0x86   :  { %v4690_v43 = vsel %vm218_vm5, 1.0, %v7345_v0  ;;  %v4709_v49 = vsel %vm219_vm6, 1.0, %v7345_v0  ;;  %v4714_v50 = vsel %vm220_vm7, 1.0, %v7345_v0 }
  0x87   :  { %7471 = vst [vmem:[#allocation8_spill] sm:$0xff] %v4714_v50 }
  0x88   :  { %v172_v21 = vpop.permute.xlu1 %171 }
  0x89   :  { %vm224_vm8 = vcmp.eq.s32.totalorder %v172_v21, %v4651_v26  ;;  %vm225_vm9 = vcmp.eq.s32.totalorder %v172_v21, %v4659_v31  ;;  %vm226_vm10 = vcmp.eq.s32.totalorder %v172_v21, %v4662_v32  ;;  %v4841_v21 = vmul.f32 %v4690_v43, %v4798_v8 }
  0x8a   :  { %v4719_v51 = vsel %vm224_vm8, 1.0, %v7345_v0  ;;  %v4724_v52 = vsel %vm225_vm9, 1.0, %v7345_v0  ;;  %v4732_v54 = vsel %vm226_vm10, 1.0, %v7345_v0 }
  0x8c   :  { %v4645_v22 = vpop.permute.xlu1 %177 }
  0x8d   :  { %vm230_vm11 = vcmp.eq.s32.totalorder %v4645_v22, %v4651_v26  ;;  %vm231_vm12 = vcmp.eq.s32.totalorder %v4645_v22, %v4659_v31  ;;  %vm232_vm13 = vcmp.eq.s32.totalorder %v4645_v22, %v4662_v32  ;;  %v4845_v22 = vmul.f32 %v4709_v49, %v4800_v9 }
  0x8e   :  { %v4741_v55 = vsel %vm230_vm11, 1.0, %v7345_v0  ;;  %v4744_v56 = vsel %vm231_vm12, 1.0, %v7345_v0  ;;  %v4764_v1 = vsel %vm232_vm13, 1.0, %v7345_v0 }
  0x8f   :  { %7472 = vst [vmem:[#allocation9_spill] sm:$0xff] %v4741_v55  ;;  %7473 = vst [vmem:[#allocation10_spill] sm:$0xff] %v4744_v56 }
  0x90   :  { %v4647_v23 = vpop.permute.xlu1 %183 }
  0x91   :  { %vm236_vm14 = vcmp.eq.s32.totalorder %v4647_v23, %v4651_v26  ;;  %vm237_vm15 = vcmp.eq.s32.totalorder %v4647_v23, %v4659_v31  ;;  %vm238_vm2 = vcmp.eq.s32.totalorder %v4647_v23, %v4662_v32 }
  0x92   :  { %v4767_v2 = vsel %vm236_vm14, 1.0, %v7345_v0  ;;  %v4770_v3 = vsel %vm237_vm15, 1.0, %v7345_v0  ;;  %v4782_v5 = vsel %vm238_vm2, 1.0, %v7345_v0 }
  0x94   :  { %v4649_v24 = vpop.permute.xlu1 %189 }
  0x95   :  { %vm242_vm3 = vcmp.eq.s32.totalorder %v4649_v24, %v4651_v26  ;;  %vm243_vm4 = vcmp.eq.s32.totalorder %v4649_v24, %v4659_v31  ;;  %vm244_vm5 = vcmp.eq.s32.totalorder %v4649_v24, %v4662_v32 }
  0x96   :  { %v4785_v6 = vsel %vm242_vm3, 1.0, %v7345_v0  ;;  %v4803_v10 = vsel %vm243_vm4, 1.0, %v7345_v0  ;;  %v4806_v11 = vsel %vm244_vm5, 1.0, %v7345_v0  ;;  %vm467_vm4 = vcmask 1040384  }
  0x97   :  { %vm7398_vm5 = vcmask 64512  }
  0x98   :  { %v4653_v28 = vpop.permute.xlu1 %195 }
  0x99   :  { %vm248_vm6 = vcmp.eq.s32.totalorder %v4653_v28, %v4651_v26  ;;  %vm249_vm7 = vcmp.eq.s32.totalorder %v4653_v28, %v4659_v31  ;;  %vm250_vm8 = vcmp.eq.s32.totalorder %v4653_v28, %v4662_v32  ;;  %v4861_v28 = vmul.f32 %v4714_v50, %v4819_v16 }
  0x9a   :  { %v4809_v12 = vsel %vm248_vm6, 1.0, %v7345_v0  ;;  %v4812_v13 = vsel %vm249_vm7, 1.0, %v7345_v0  ;;  %v4815_v15 = vsel %vm250_vm8, 1.0, %v7345_v0 }
  0x9c   :  { %v4679_v41 = vpop.permute.xlu1 %201 }
  0x9d   :  { %vm254_vm9 = vcmp.eq.s32.totalorder %v4679_v41, %v4651_v26  ;;  %vm255_vm10 = vcmp.eq.s32.totalorder %v4679_v41, %v4659_v31  ;;  %vm256_vm11 = vcmp.eq.s32.totalorder %v4679_v41, %v4662_v32 }
  0x9e   :  { %v4825_v17 = vsel %vm254_vm9, 1.0, %v7345_v0  ;;  %v4828_v18 = vsel %vm255_vm10, 1.0, %v7345_v0  ;;  %v4831_v19 = vsel %vm256_vm11, 1.0, %v7345_v0 }
  0xa0   :  { %v208_v57 = vpop.permute.xlu1 %207 }
  0xa1   :  { %vm260_vm12 = vcmp.eq.s32.totalorder %v208_v57, %v4651_v26  ;;  %vm261_vm13 = vcmp.eq.s32.totalorder %v208_v57, %v4659_v31  ;;  %vm262_vm14 = vcmp.eq.s32.totalorder %v208_v57, %v4662_v32 }
  0xa2   :  { %v4848_v23 = vsel %vm260_vm12, 1.0, %v7345_v0  ;;  %v4851_v24 = vsel %vm261_vm13, 1.0, %v7345_v0 }
  0xa4   :  { %v214_v14 = vpop.permute.xlu1 %213 }
  0xa5   :  { %vm266_vm15 = vcmp.eq.s32.totalorder %v214_v14, %v4651_v26  ;;  %vm267_vm2 = vcmp.eq.s32.totalorder %v214_v14, %v4659_v31  ;;  %vm268_vm3 = vcmp.eq.s32.totalorder %v214_v14, %v4662_v32  ;;  %v1236_v32 = vsub.s32 2, %v4668_v37 }
  0xa6   :  { %v4882_v41 = vsel %vm268_vm3, 1.0, %v7345_v0 }
  0xda   :  { %v138_v27 = vpop.f32.mrf.mxu0 }
  0xdb   :  { %v139_v34 = vadd.f32 %v4059_v29, %v138_v27  ;;  %v4857_v27 = vsel %vm262_vm14, 1.0, %v7345_v0 }
  0xdc   :  { %v4287_v30 = vpop.f32.mrf.mxu0 }
  0xdd   :  { %v4867_v30 = vrot.slane %v819_v60, %v4694_v44 }
  0xde   :  { %v141_v33 = vpop.f32.mrf.mxu0 }
  0xdf   :  { %v142_v35 = vadd.f32 %v4059_v29, %v141_v33  ;;  %v4864_v29 = vrot.slane %v815_v59, %v4694_v44  ;;  %7478 = vst [vmem:[#allocation15_spill] sm:$0xff] %v4867_v30  ;;  %v4870_v33 = vsel %vm266_vm15, 1.0, %v7345_v0  ;;  %v849_v48 = vmul.f32 %v4676_v40, %v4867_v30 }
  0xe0   :  { %v4288_v36 = vpop.f32.mrf.mxu0  ;;  %v846_v62 = vmul.f32 %v4724_v52, %v4867_v30 }
  0xe1   :  { %v4670_v38 = vpack.c.bf16 %v142_v35, %v139_v34  ;;  %7477 = vst [vmem:[#allocation14_spill] sm:$0xff] %v4864_v29  ;;  %v4873_v34 = vsel %vm267_vm2, 1.0, %v7345_v0  ;;  %v4876_v35 = vrot.slane %v823_v25, %v4694_v44  ;;  %v157_v36 = vld [vmem:[%s7338_s0 + $0x58] sm:$0x1]  ;;  %v839_v45 = vmul.f32 %v4690_v43, %v4864_v29  ;;  %v159_v25 = vld [vmem:[%s7338_s0 + $0x68] sm:$0x1] }
  0xe2   :  { %v848_v47 = vmul.f32 %v4673_v39, %v4864_v29  ;;  %v845_v59 = vmul.f32 %v4719_v51, %v4864_v29  ;;  %v909_v4 = vsel %vm467_vm4, %v849_v48, 0.0  ;;  %v851_v14 = vmul.f32 %v4741_v55, %v4864_v29 }
  0xe3   :  { %7470 = vst [vmem:[#allocation7_spill] sm:$0xff] %v4670_v38  ;;  %564 = vrot.lane.b32.xlu0 %v4670_v38, %s4524_s14  ;;  %7479 = vst [vmem:[#allocation16_spill] sm:$0xff] %v4876_v35  ;;  %v841_v44 = vmul.f32 %v4714_v50, %v4876_v35  ;;  %v850_v57 = vmul.f32 %v4682_v42, %v4876_v35  ;;  %v847_v63 = vmul.f32 %v4732_v54, %v4876_v35 }
  0xe4   :  { %v858_v0 = vmul.f32 %v4770_v3, %v4867_v30 }
  0xe7   :  { %168 = vperm.xlu0 %4435, %v147_v46   ;;  %v840_v46 = vmul.f32 %v4709_v49, %v4867_v30 }
  0xe9   :  { %v893_v60 = vadd.f32 %v840_v46, %v839_v45 }
  0xeb   :  { %180 = vperm.xlu0 %4435, %v151_v61   ;;  %v908_v61 = vsel %vm467_vm4, %v848_v47, 0.0  ;;  %v4912_v45 = vadd.f32 %v893_v60, %v841_v44  ;;  %v904_v47 = vadd.f32 %v846_v62, %v845_v59  ;;  %v859_v44 = vmul.f32 %v4782_v5, %v4876_v35 }
  0xec   :  { %v910_v46 = vadd.f32 %v909_v4, %v908_v61  ;;  %v863_v59 = vmul.f32 %v4785_v6, %v4864_v29  ;;  %v864_v62 = vmul.f32 %v4803_v10, %v4867_v30  ;;  %v869_v4 = vmul.f32 %v4809_v12, %v4864_v29 }
  0xed   :  { %7480 = vst [vmem:[#allocation17_spill] sm:$0xff] %v4912_v45  ;;  %v4923_v26 = vadd.f32 %v904_v47, %v847_v63  ;;  %v161_v63 = vld [vmem:[%s7338_s0 + $0x78] sm:$0x1]  ;;  %v876_v47 = vmul.f32 %v4828_v18, %v4867_v30 }
  0xef   :  { %186 = vperm.xlu0 %4435, %v153_v7   ;;  %v911_v7 = vsel %vm467_vm4, %v850_v57, 0.0  ;;  %v857_v57 = vmul.f32 %v4767_v2, %v4864_v29  ;;  %7482 = vst [vmem:[#allocation19_spill] sm:$0xff] %v4923_v26  ;;  %v883_v26 = vmul.f32 %v4857_v27, %v4876_v35 }
  0xf0   :  { %v4921_v31 = vadd.f32 %v911_v7, %v910_v46  ;;  %v865_v7 = vmul.f32 %v4806_v11, %v4876_v35  ;;  %v937_v46 = vadd.f32 %v864_v62, %v863_v59  ;;  %v888_v62 = vmul.f32 %v4873_v34, %v4867_v30 }
  0xf1   :  { %v926_v61 = vadd.f32 %v858_v0, %v857_v57  ;;  %v875_v0 = vmul.f32 %v4825_v17, %v4864_v29  ;;  %v881_v57 = vmul.f32 %v4848_v23, %v4864_v29 }
  0xf2   :  { %7481 = vst [vmem:[#allocation18_spill] sm:$0xff] %v4921_v31  ;;  %v889_v31 = vmul.f32 %v4882_v41, %v4876_v35 }
  0xf3   :  { %192 = vperm.xlu0 %4435, %v155_v20   ;;  %v852_v20 = vmul.f32 %v4744_v56, %v4867_v30  ;;  %v959_v59 = vadd.f32 %v876_v47, %v875_v0  ;;  %v1245_v47 = vrot.slane %v4749_v58, %v1236_v32 }
  0xf5   :  { %v915_v48 = vadd.f32 %v852_v20, %v851_v14  ;;  %v870_v14 = vmul.f32 %v4812_v13, %v4867_v30  ;;  %v871_v20 = vmul.f32 %v4815_v15, %v4876_v35 }
  0xf7   :  { %198 = vperm.xlu0 %4435, %v157_v36   ;;  %v853_v36 = vmul.f32 %v4764_v1, %v4876_v35 }
  0xf9   :  { %v4929_v60 = vadd.f32 %v915_v48, %v853_v36  ;;  %v877_v36 = vmul.f32 %v4831_v19, %v4876_v35  ;;  %v948_v48 = vadd.f32 %v870_v14, %v869_v4  ;;  %v163_v4 = vld [vmem:[%s7338_s0 + $0x88] sm:$0x1] }
  0xfb   :  { %204 = vperm.xlu0 %4435, %v159_v25   ;;  %7483 = vst [vmem:[#allocation20_spill] sm:$0xff] %v4929_v60  ;;  %v4946_v25 = vadd.f32 %v926_v61, %v859_v44  ;;  %v882_v60 = vmul.f32 %v4851_v24, %v4867_v30  ;;  %v4958_v44 = vadd.f32 %v937_v46, %v865_v7  ;;  %v1240_v46 = vsub.s32 6, %v4668_v37 }
  0xfc   :  { %v887_v61 = vmul.f32 %v4870_v33, %v4864_v29  ;;  %v4967_v14 = vadd.f32 %v948_v48, %v871_v20  ;;  %v4972_v7 = vadd.f32 %v959_v59, %v877_v36  ;;  %v4982_v20 = vmul.f32 %v4719_v51, %v4798_v8 }
  0xfd   :  { %7484 = vst [vmem:[#allocation21_spill] sm:$0xff] %v4946_v25  ;;  %7485 = vst [vmem:[#allocation22_spill] sm:$0xff] %v4958_v44  ;;  %v970_v25 = vadd.f32 %v882_v60, %v881_v57  ;;  %v4978_v44 = vadd.f32 %v4845_v22, %v4841_v21  ;;  %v4990_v36 = vmul.f32 %v4724_v52, %v4800_v9 }
  0xfe   :  { %7486 = vst [vmem:[#allocation23_spill] sm:$0xff] %v4967_v14  ;;  %7487 = vst [vmem:[#allocation24_spill] sm:$0xff] %v4972_v7  ;;  %v981_v0 = vadd.f32 %v888_v62, %v887_v61  ;;  %v1241_v59 = vrot.slane %v4729_v53, %v1240_v46  ;;  %v4995_v61 = vrot.slane %v1245_v47, %v1236_v32  ;;  %v1659_v47 = vsub.s32 3, %v4668_v37 }
  0xff   :  { %210 = vperm.xlu0 %4435, %v161_v63   ;;  %v1237_v63 = vrot.slane %v4729_v53, %v1236_v32  ;;  %v4984_v60 = vadd.f32 %v970_v25, %v883_v26  ;;  %v4999_v21 = vmul.f32 %v4673_v39, %v4798_v8  ;;  %v5003_v26 = vmul.f32 %v4676_v40, %v4800_v9 }
 0x100   :  { %v4992_v57 = vadd.f32 %v981_v0, %v889_v31  ;;  %7491 = vst [vmem:[#allocation28_spill] sm:$0xff] %v4995_v61  ;;  %v5009_v31 = vrot.slane %v1241_v59, %v1236_v32  ;;  %v1263_v62 = vmul.f32 %v4714_v50, %v4995_v61  ;;  %v1269_v46 = vmul.f32 %v4732_v54, %v4995_v61 }
 0x101   :  { %7488 = vst [vmem:[#allocation25_spill] sm:$0xff] %v4984_v60  ;;  %v4986_v48 = vrot.slane %v1237_v63, %v1236_v32  ;;  %v1660_v45 = vrot.slane %v4729_v53, %v1659_v47 }
 0x102   :  { %7490 = vst [vmem:[#allocation27_spill] sm:$0xff] %v4992_v57  ;;  %7492 = vst [vmem:[#allocation29_spill] sm:$0xff] %v5009_v31  ;;  %v1663_v57 = vsub.s32 7, %v4668_v37  ;;  %v1262_v32 = vmul.f32 %v4709_v49, %v5009_v31  ;;  %v1271_v59 = vmul.f32 %v4676_v40, %v5009_v31  ;;  %v1268_v7 = vmul.f32 %v4724_v52, %v5009_v31 }
 0x103   :  { %7489 = vst [vmem:[#allocation26_spill] sm:$0xff] %v4986_v48  ;;  %216 = vperm.xlu0 %4435, %v163_v4   ;;  %v1261_v22 = vmul.f32 %v4690_v43, %v4986_v48  ;;  %v1270_v25 = vmul.f32 %v4673_v39, %v4986_v48  ;;  %v1272_v4 = vmul.f32 %v4682_v42, %v4995_v61 }
 0x104   :  { %v1267_v63 = vmul.f32 %v4719_v51, %v4986_v48  ;;  %v1274_v14 = vmul.f32 %v4744_v56, %v5009_v31  ;;  %v1664_v37 = vrot.slane %v4729_v53, %v1663_v57  ;;  %v1331_v30 = vsel %vm467_vm4, %v1271_v59, 0.0 }
 0x105   :  { %v1330_v0 = vsel %vm467_vm4, %v1270_v25, 0.0  ;;  %v1333_v60 = vsel %vm467_vm4, %v1272_v4, 0.0  ;;  %v1273_v25 = vmul.f32 %v4741_v55, %v4986_v48  ;;  %v1315_v35 = vadd.f32 %v1262_v32, %v1261_v22 }
 0x106   :  { %v1326_v29 = vadd.f32 %v1268_v7, %v1267_v63  ;;  %v1275_v4 = vmul.f32 %v4764_v1, %v4995_v61  ;;  %v1332_v38 = vadd.f32 %v1331_v30, %v1330_v0  ;;  %v1279_v8 = vmul.f32 %v4767_v2, %v4986_v48 }
 0x107   :  { %v1337_v9 = vadd.f32 %v1274_v14, %v1273_v25  ;;  %v1280_v55 = vmul.f32 %v4770_v3, %v5009_v31  ;;  %v5042_v56 = vadd.f32 %v1315_v35, %v1263_v62  ;;  %v1281_v53 = vmul.f32 %v4782_v5, %v4995_v61 }
 0x108   :  { %v5044_v50 = vadd.f32 %v1326_v29, %v1269_v46  ;;  %v1285_v7 = vmul.f32 %v4785_v6, %v4986_v48  ;;  %v5050_v57 = vadd.f32 %v1333_v60, %v1332_v38  ;;  %v1286_v22 = vmul.f32 %v4803_v10, %v5009_v31 }
 0x109   :  { %v5052_v30 = vadd.f32 %v1337_v9, %v1275_v4  ;;  %v1348_v14 = vadd.f32 %v1280_v55, %v1279_v8  ;;  %v1287_v35 = vmul.f32 %v4806_v11, %v4995_v61  ;;  %v1291_v29 = vmul.f32 %v4809_v12, %v4986_v48 }
 0x10a   :  { %v1292_v62 = vmul.f32 %v4812_v13, %v5009_v31  ;;  %v1293_v63 = vmul.f32 %v4815_v15, %v4995_v61  ;;  %v1359_v9 = vadd.f32 %v1286_v22, %v1285_v7  ;;  %v1297_v55 = vmul.f32 %v4825_v17, %v4986_v48 }
 0x10b   :  { %v5064_v38 = vadd.f32 %v1348_v14, %v1281_v53  ;;  %v1298_v8 = vmul.f32 %v4828_v18, %v5009_v31  ;;  %v1299_v0 = vmul.f32 %v4831_v19, %v4995_v61  ;;  %v1303_v46 = vmul.f32 %v4848_v23, %v4986_v48 }
 0x10c   :  { %v1370_v60 = vadd.f32 %v1292_v62, %v1291_v29  ;;  %v1304_v32 = vmul.f32 %v4851_v24, %v5009_v31  ;;  %v5076_v59 = vadd.f32 %v1359_v9, %v1287_v35  ;;  %v1305_v4 = vmul.f32 %v4857_v27, %v4995_v61 }
 0x10d   :  { %7493 = vst [vmem:[#allocation30_spill] sm:$0xff] %v5064_v38  ;;  %v1381_v25 = vadd.f32 %v1298_v8, %v1297_v55  ;;  %v1309_v53 = vmul.f32 %v4870_v33, %v4986_v48  ;;  %v1310_v22 = vmul.f32 %v4873_v34, %v5009_v31  ;;  %v1311_v29 = vmul.f32 %v4882_v41, %v4995_v61 }
 0x10e   :  { %7494 = vst [vmem:[#allocation31_spill] sm:$0xff] %v5076_v59  ;;  %v5082_v7 = vadd.f32 %v1370_v60, %v1293_v63  ;;  %v1392_v14 = vadd.f32 %v1304_v32, %v1303_v46  ;;  %v1668_v35 = vrot.slane %v4749_v58, %v1659_v47  ;;  %v5091_v9 = vrot.slane %v1660_v45, %v1659_v47 }
 0x10f   :  { %v5088_v62 = vadd.f32 %v1381_v25, %v1299_v0  ;;  %v5093_v55 = vrot.slane %v1664_v37, %v1659_v47  ;;  %v464_v8 = vadd.f32 %v4978_v44, %v4861_v28  ;;  %v417_v63 = vmul.f32 %v4732_v54, %v4819_v16 }
 0x110   :  { %7495 = vst [vmem:[#allocation32_spill] sm:$0xff] %v5082_v7  ;;  %7497 = vst [vmem:[#allocation34_spill] sm:$0xff] %v5091_v9  ;;  %v5099_v60 = vadd.f32 %v1392_v14, %v1305_v4  ;;  %v1403_v46 = vadd.f32 %v1310_v22, %v1309_v53  ;;  %v475_v32 = vadd.f32 %v4990_v36, %v4982_v20  ;;  %v479_v58 = vsel %vm467_vm4, %v4999_v21, 0.0 }
 0x111   :  { %7496 = vst [vmem:[#allocation33_spill] sm:$0xff] %v5088_v62  ;;  %7498 = vst [vmem:[#allocation35_spill] sm:$0xff] %v5093_v55  ;;  %v420_v0 = vmul.f32 %v4682_v42, %v4819_v16  ;;  %v5107_v37 = vrot.slane %v1668_v35, %v1659_v47  ;;  %v1684_v28 = vmul.f32 %v4690_v43, %v5091_v9  ;;  %v480_v20 = vsel %vm467_vm4, %v5003_v26, 0.0  ;;  %v7502_v43 = vld [vmem:[#allocation8_spill] sm:$0xff] }
 0x112   :  { %7499 = vst [vmem:[#allocation36_spill] sm:$0xff] %v5099_v60  ;;  %v5109_v45 = vadd.f32 %v1403_v46, %v1311_v29  ;;  %v1685_v44 = vmul.f32 %v4709_v49, %v5093_v55  ;;  %v1693_v25 = vmul.f32 %v4673_v39, %v5091_v9  ;;  %v1694_v36 = vmul.f32 %v4676_v40, %v5093_v55  ;;  %v7505_v46 = vld [vmem:[#allocation10_spill] sm:$0xff] }
 0x113   :  { %7500 = vst [vmem:[#allocation37_spill] sm:$0xff] %v5107_v37  ;;  %v1690_v21 = vmul.f32 %v4719_v51, %v5091_v9  ;;  %v1691_v47 = vmul.f32 %v4724_v52, %v5093_v55  ;;  %v1686_v4 = vmul.f32 %v7502_v43, %v5107_v37  ;;  %v1695_v49 = vmul.f32 %v4682_v42, %v5107_v37  ;;  %v7503_v51 = vld [vmem:[#allocation9_spill] sm:$0xff] }
 0x114   :  { %7501 = vst [vmem:[#allocation38_spill] sm:$0xff] %v5109_v45  ;;  %v1738_v53 = vadd.f32 %v1685_v44, %v1684_v28  ;;  %v1753_v39 = vsel %vm467_vm4, %v1693_v25, 0.0  ;;  %v1754_v26 = vsel %vm467_vm4, %v1694_v36, 0.0  ;;  %v1692_v40 = vmul.f32 %v4732_v54, %v5107_v37 }
 0x115   :  { %v1749_v14 = vadd.f32 %v1691_v47, %v1690_v21  ;;  %v1696_v22 = vmul.f32 %v7503_v51, %v5091_v9  ;;  %v1755_v52 = vadd.f32 %v1754_v26, %v1753_v39  ;;  %v1756_v35 = vsel %vm467_vm4, %v1695_v49, 0.0 }
 0x116   :  { %v5135_v29 = vadd.f32 %v1738_v53, %v1686_v4  ;;  %v1697_v28 = vmul.f32 %v7505_v46, %v5093_v55  ;;  %v1698_v44 = vmul.f32 %v4764_v1, %v5107_v37  ;;  %v1702_v54 = vmul.f32 %v4767_v2, %v5091_v9 }
 0x117   :  { %v5140_v42 = vadd.f32 %v1749_v14, %v1692_v40  ;;  %v1703_v25 = vmul.f32 %v4770_v3, %v5093_v55  ;;  %v5148_v36 = vadd.f32 %v1756_v35, %v1755_v52  ;;  %v1704_v47 = vmul.f32 %v4782_v5, %v5107_v37 }
 0x118   :  { %7504 = vst [vmem:[#allocation8_spill] sm:$0xff] %v5135_v29  ;;  %v1760_v21 = vadd.f32 %v1697_v28, %v1696_v22  ;;  %v1708_v43 = vmul.f32 %v4785_v6, %v5091_v9  ;;  %v1709_v53 = vmul.f32 %v4803_v10, %v5093_v55  ;;  %v1714_v49 = vmul.f32 %v4809_v12, %v5091_v9 }
 0x119   :  { %7506 = vst [vmem:[#allocation9_spill] sm:$0xff] %v5140_v42  ;;  %7507 = vst [vmem:[#allocation10_spill] sm:$0xff] %v5148_v36  ;;  %v1771_v4 = vadd.f32 %v1703_v25, %v1702_v54  ;;  %v1715_v39 = vmul.f32 %v4812_v13, %v5093_v55  ;;  %v1710_v40 = vmul.f32 %v4806_v11, %v5107_v37 }
 0x11a   :  { %v5160_v26 = vadd.f32 %v1760_v21, %v1698_v44  ;;  %v1716_v14 = vmul.f32 %v4815_v15, %v5107_v37  ;;  %v1720_v22 = vmul.f32 %v4825_v17, %v5091_v9  ;;  %v1782_v35 = vadd.f32 %v1709_v53, %v1708_v43 }
 0x11b   :  { %v5168_v52 = vadd.f32 %v1771_v4, %v1704_v47  ;;  %v1793_v28 = vadd.f32 %v1715_v39, %v1714_v49  ;;  %v1721_v54 = vmul.f32 %v4828_v18, %v5093_v55  ;;  %v1722_v44 = vmul.f32 %v4831_v19, %v5107_v37 }
 0x11c   :  { %7508 = vst [vmem:[#allocation39_spill] sm:$0xff] %v5160_v26  ;;  %v1726_v25 = vmul.f32 %v4848_v23, %v5091_v9  ;;  %v1727_v21 = vmul.f32 %v4851_v24, %v5093_v55  ;;  %v1728_v26 = vmul.f32 %v4857_v27, %v5107_v37  ;;  %v5180_v42 = vadd.f32 %v1782_v35, %v1710_v40 }
 0x11d   :  { %7509 = vst [vmem:[#allocation40_spill] sm:$0xff] %v5168_v52  ;;  %v5182_v47 = vadd.f32 %v1793_v28, %v1716_v14  ;;  %v1804_v43 = vadd.f32 %v1721_v54, %v1720_v22  ;;  %v1732_v4 = vmul.f32 %v4870_v33, %v5091_v9  ;;  %v1733_v49 = vmul.f32 %v4873_v34, %v5093_v55 }
 0x11e   :  { %7510 = vst [vmem:[#allocation41_spill] sm:$0xff] %v5180_v42  ;;  %v1815_v53 = vadd.f32 %v1727_v21, %v1726_v25  ;;  %v1734_v39 = vmul.f32 %v4882_v41, %v5107_v37  ;;  %v476_v52 = vadd.f32 %v475_v32, %v417_v63  ;;  %v481_v36 = vadd.f32 %v480_v20, %v479_v58  ;;  %v7516_v32 = vld [vmem:[#allocation12_spill] sm:$0xff] }
 0x11f   :  { %7511 = vst [vmem:[#allocation42_spill] sm:$0xff] %v5182_v47  ;;  %v5190_v29 = vadd.f32 %v1804_v43, %v1722_v44  ;;  %v482_v40 = vsel %vm467_vm4, %v420_v0, 0.0  ;;  %v1826_v22 = vadd.f32 %v1733_v49, %v1732_v4  ;;  %v422_v58 = vmul.f32 %v7505_v46, %v7516_v32  ;;  %v7518_v4 = vld [vmem:[#allocation7_spill] sm:$0xff] }
 0x120   :  { %v5193_v14 = vadd.f32 %v1815_v53, %v1728_v26  ;;  %v483_v28 = vadd.f32 %v482_v40, %v481_v36  ;;  %v428_v20 = vmul.f32 %v4770_v3, %v7516_v32  ;;  %v7517_v26 = vmov 0.0  }
 0x121   :  { %7512 = vst [vmem:[#allocation43_spill] sm:$0xff] %v5190_v29  ;;  %v5195_v35 = vadd.f32 %v1826_v22, %v1734_v39  ;;  %v440_v46 = vmul.f32 %v4812_v13, %v7516_v32  ;;  %v429_v3 = vmul.f32 %v4782_v5, %v4819_v16  ;;  %v452_v5 = vmul.f32 %v4851_v24, %v7516_v32 }
 0x122   :  { %465 = vadd.xlane.f32.xlu0 %v464_v8  ;;  %7513 = vst [vmem:[#allocation44_spill] sm:$0xff] %v5193_v14  ;;  %v7515_v8 = vld [vmem:[#allocation11_spill] sm:$0xff]  ;;  %v441_v13 = vmul.f32 %v4815_v15, %v4819_v16  ;;  %v447_v49 = vmul.f32 %v4831_v19, %v4819_v16  ;;  %v453_v24 = vmul.f32 %v4857_v27, %v4819_v16 }
 0x123   :  { %7514 = vst [vmem:[#allocation45_spill] sm:$0xff] %v5195_v35  ;;  %v421_v63 = vmul.f32 %v7503_v51, %v7515_v8  ;;  %v427_v0 = vmul.f32 %v4767_v2, %v7515_v8  ;;  %v433_v36 = vmul.f32 %v4785_v6, %v7515_v8  ;;  %v439_v51 = vmul.f32 %v4809_v12, %v7515_v8 }
 0x124   :  { %v423_v2 = vmul.f32 %v4764_v1, %v4819_v16  ;;  %v435_v6 = vmul.f32 %v4806_v11, %v4819_v16  ;;  %v446_v12 = vmul.f32 %v4828_v18, %v7516_v32  ;;  %v451_v1 = vmul.f32 %v4848_v23, %v7515_v8 }
 0x125   :  { %v486_v44 = vadd.f32 %v422_v58, %v421_v63  ;;  %v497_v21 = vadd.f32 %v428_v20, %v427_v0  ;;  %v519_v11 = vadd.f32 %v440_v46, %v439_v51  ;;  %v457_v15 = vmul.f32 %v4870_v33, %v7515_v8 }
 0x126   :  { %477 = vadd.xlane.f32.xlu0 %v476_v52  ;;  %v434_v52 = vmul.f32 %v4803_v10, %v7516_v32  ;;  %v445_v10 = vmul.f32 %v4825_v17, %v7515_v8  ;;  %v541_v40 = vadd.f32 %v452_v5, %v451_v1  ;;  %v458_v22 = vmul.f32 %v4873_v34, %v7516_v32 }
 0x127   :  { %v5235_v17 = vadd.f32 %v486_v44, %v423_v2  ;;  %v5237_v53 = vadd.f32 %v497_v21, %v429_v3  ;;  %v5252_v63 = vadd.f32 %v519_v11, %v441_v13  ;;  %v5265_v33 = vmul.f32 %v4882_v41, %v4819_v16  ;;  %v7522_v2 = vld [vmem:[#allocation14_spill] sm:$0xff]  ;;  %v7523_v44 = vld [vmem:[#allocation15_spill] sm:$0xff] }
 0x128   :  { %v508_v43 = vadd.f32 %v434_v52, %v433_v36  ;;  %v530_v23 = vadd.f32 %v446_v12, %v445_v10  ;;  %v5275_v51 = vadd.f32 %v541_v40, %v453_v24  ;;  %v5277_v46 = vadd.f32 %v458_v22, %v457_v15 }
 0x12a   :  { %484 = vadd.xlane.f32.xlu0 %v483_v28  ;;  %v5239_v18 = vadd.f32 %v508_v43, %v435_v6  ;;  %v7519_v28 = vld [vmem:[#allocation3_spill] sm:$0xff]  ;;  %v5273_v36 = vadd.f32 %v530_v23, %v447_v49 }
 0x155   :  { %v565_v54 = vpop.permute.xlu0 %564 }
 0x156   :  { %v688_v25 = vsel %vm7398_vm5, %v565_v54, 0  ;;  %v7520_v54 = vld [vmem:[#allocation4_spill] sm:$0xff] }
 0x157   :  { %4290 = vmatpush3.bf16.xpose.msra.mxu1 %v688_v25  ;;  %v7521_v25 = vld [vmem:[#allocation5_spill] sm:$0xff] }
 0x158   :  { %4295 = vmatprep.subr.bf16.mxu1 %v7517_v26 }
 0x15e   :  { %4292 = vmatmul.mubr.msk.bf16.vlgmr.msra.gmra.mxu1 %vm7398_vm5, %v7518_v4 }
 0x15f   :  { %4297 = vmatprep.mubr.msk.bf16.mxu1 %vm7396_vm0, %v7517_v26 }
 0x162   :  { %v169_v39 = vpop.permute.xlu0 %168 }
 0x163   :  { %vm221_vm6 = vcmp.eq.s32.totalorder %v169_v39, %v7519_v28  ;;  %vm222_vm7 = vcmp.eq.s32.totalorder %v169_v39, %v7520_v54  ;;  %vm223_vm8 = vcmp.eq.s32.totalorder %v169_v39, %v7521_v25  ;;  %v7524_v39 = vld [vmem:[#allocation16_spill] sm:$0xff] }
 0x164   :  { %v5255_v19 = vsel %vm221_vm6, 1.0, %v7517_v26  ;;  %v5258_v27 = vsel %vm222_vm7, 1.0, %v7517_v26  ;;  %v5261_v58 = vsel %vm223_vm8, 1.0, %v7517_v26 }
 0x165   :  { %v412_v34 = vmul.f32 %v5255_v19, %v7515_v8  ;;  %v413_v0 = vmul.f32 %v5258_v27, %v7516_v32  ;;  %v414_v20 = vmul.f32 %v5261_v58, %v4819_v16  ;;  %v842_v41 = vmul.f32 %v5255_v19, %v7522_v2 }
 0x166   :  { %v181_v52 = vpop.permute.xlu0 %180  ;;  %v843_v3 = vmul.f32 %v5258_v27, %v7523_v44  ;;  %v844_v24 = vmul.f32 %v5261_v58, %v7524_v39 }
 0x167   :  { %vm233_vm9 = vcmp.eq.s32.totalorder %v181_v52, %v7519_v28  ;;  %vm234_vm10 = vcmp.eq.s32.totalorder %v181_v52, %v7520_v54  ;;  %vm235_vm11 = vcmp.eq.s32.totalorder %v181_v52, %v7521_v25  ;;  %v468_v21 = vsel %vm467_vm4, %v412_v34, 0.0 }
 0x168   :  { %v5288_v6 = vsel %vm233_vm9, 1.0, %v7517_v26  ;;  %v5291_v43 = vsel %vm234_vm10, 1.0, %v7517_v26  ;;  %v5294_v10 = vsel %vm235_vm11, 1.0, %v7517_v26  ;;  %v469_v12 = vsel %vm467_vm4, %v413_v0, 0.0 }
 0x169   :  { %v470_v1 = vadd.f32 %v469_v12, %v468_v21  ;;  %v471_v5 = vsel %vm467_vm4, %v414_v20, 0.0  ;;  %v424_v13 = vmul.f32 %v5288_v6, %v7515_v8  ;;  %v425_v11 = vmul.f32 %v5291_v43, %v7516_v32 }
 0x16a   :  { %v187_v49 = vpop.permute.xlu0 %186  ;;  %v426_v23 = vmul.f32 %v5294_v10, %v4819_v16  ;;  %v897_v40 = vsel %vm467_vm4, %v842_v41, 0.0  ;;  %v898_v15 = vsel %vm467_vm4, %v843_v3, 0.0  ;;  %v900_v14 = vsel %vm467_vm4, %v844_v24, 0.0 }
 0x16b   :  { %vm239_vm12 = vcmp.eq.s32.totalorder %v187_v49, %v7519_v28  ;;  %vm240_vm13 = vcmp.eq.s32.totalorder %v187_v49, %v7520_v54  ;;  %vm241_vm14 = vcmp.eq.s32.totalorder %v187_v49, %v7521_v25  ;;  %v472_v22 = vadd.f32 %v471_v5, %v470_v1 }
 0x16c   :  { %v5312_v34 = vsel %vm239_vm12, 1.0, %v7517_v26  ;;  %v5315_v0 = vsel %vm240_vm13, 1.0, %v7517_v26  ;;  %v5318_v20 = vsel %vm241_vm14, 1.0, %v7517_v26  ;;  %v490_v52 = vsel %vm467_vm4, %v424_v13, 0.0 }
 0x16d   :  { %473 = vadd.xlane.f32.xlu1 %v472_v22  ;;  %v491_v41 = vsel %vm467_vm4, %v425_v11, 0.0  ;;  %v493_v3 = vsel %vm467_vm4, %v426_v23, 0.0  ;;  %v430_v21 = vmul.f32 %v5312_v34, %v7515_v8  ;;  %v431_v12 = vmul.f32 %v5315_v0, %v7516_v32 }
 0x16e   :  { %v193_v1 = vpop.permute.xlu0 %192  ;;  %v492_v5 = vadd.f32 %v491_v41, %v490_v52  ;;  %v432_v49 = vmul.f32 %v5318_v20, %v4819_v16  ;;  %v899_v35 = vadd.f32 %v898_v15, %v897_v40 }
 0x16f   :  { %vm245_vm15 = vcmp.eq.s32.totalorder %v193_v1, %v7519_v28  ;;  %vm246_vm2 = vcmp.eq.s32.totalorder %v193_v1, %v7520_v54  ;;  %vm247_vm3 = vcmp.eq.s32.totalorder %v193_v1, %v7521_v25  ;;  %v501_v13 = vsel %vm467_vm4, %v430_v21, 0.0 }
 0x170   :  { %v5335_v11 = vsel %vm245_vm15, 1.0, %v7517_v26  ;;  %v5338_v23 = vsel %vm246_vm2, 1.0, %v7517_v26  ;;  %v5341_v22 = vsel %vm247_vm3, 1.0, %v7517_v26  ;;  %v494_v40 = vadd.f32 %v493_v3, %v492_v5 }
 0x171   :  { %488 = vadd.xlane.f32.xlu1 %v5235_v17  ;;  %v502_v24 = vsel %vm467_vm4, %v431_v12, 0.0  ;;  %v504_v15 = vsel %vm467_vm4, %v432_v49, 0.0  ;;  %v436_v52 = vmul.f32 %v5335_v11, %v7515_v8  ;;  %v437_v41 = vmul.f32 %v5338_v23, %v7516_v32 }
 0x172   :  { %495 = vadd.xlane.f32.xlu0 %v494_v40  ;;  %v199_v21 = vpop.permute.xlu0 %198  ;;  %v503_v1 = vadd.f32 %v502_v24, %v501_v13  ;;  %v438_v29 = vmul.f32 %v5341_v22, %v4819_v16  ;;  %v5352_v47 = vadd.f32 %v900_v14, %v899_v35  ;;  %v854_v17 = vmul.f32 %v5288_v6, %v7522_v2 }
 0x173   :  { %vm251_vm6 = vcmp.eq.s32.totalorder %v199_v21, %v7519_v28  ;;  %vm252_vm7 = vcmp.eq.s32.totalorder %v199_v21, %v7520_v54  ;;  %vm253_vm8 = vcmp.eq.s32.totalorder %v199_v21, %v7521_v25  ;;  %v512_v3 = vsel %vm467_vm4, %v436_v52, 0.0 }
 0x174   :  { %v5361_v12 = vsel %vm251_vm6, 1.0, %v7517_v26  ;;  %v5364_v5 = vsel %vm252_vm7, 1.0, %v7517_v26  ;;  %v5367_v14 = vsel %vm253_vm8, 1.0, %v7517_v26  ;;  %v505_v35 = vadd.f32 %v504_v15, %v503_v1 }
 0x175   :  { %499 = vadd.xlane.f32.xlu1 %v5237_v53  ;;  %v513_v49 = vsel %vm467_vm4, %v437_v41, 0.0  ;;  %v515_v13 = vsel %vm467_vm4, %v438_v29, 0.0  ;;  %v442_v40 = vmul.f32 %v5361_v12, %v7515_v8  ;;  %v443_v24 = vmul.f32 %v5364_v5, %v7516_v32 }
 0x176   :  { %506 = vadd.xlane.f32.xlu0 %v505_v35  ;;  %v205_v52 = vpop.permute.xlu0 %204  ;;  %v514_v21 = vadd.f32 %v513_v49, %v512_v3  ;;  %v444_v42 = vmul.f32 %v5367_v14, %v4819_v16  ;;  %v855_v15 = vmul.f32 %v5291_v43, %v7523_v44  ;;  %v856_v53 = vmul.f32 %v5294_v10, %v7524_v39 }
 0x177   :  { %vm257_vm9 = vcmp.eq.s32.totalorder %v205_v52, %v7519_v28  ;;  %vm258_vm10 = vcmp.eq.s32.totalorder %v205_v52, %v7520_v54  ;;  %vm259_vm11 = vcmp.eq.s32.totalorder %v205_v52, %v7521_v25  ;;  %v523_v29 = vsel %vm467_vm4, %v442_v40, 0.0 }
 0x178   :  { %v5387_v41 = vsel %vm257_vm9, 1.0, %v7517_v26  ;;  %v5390_v1 = vsel %vm258_vm10, 1.0, %v7517_v26  ;;  %v5393_v3 = vsel %vm259_vm11, 1.0, %v7517_v26  ;;  %v516_v35 = vadd.f32 %v515_v13, %v514_v21 }
 0x179   :  { %510 = vadd.xlane.f32.xlu1 %v5239_v18  ;;  %v524_v49 = vsel %vm467_vm4, %v443_v24, 0.0  ;;  %v448_v45 = vmul.f32 %v5387_v41, %v7515_v8  ;;  %v449_v40 = vmul.f32 %v5390_v1, %v7516_v32  ;;  %v919_v52 = vsel %vm467_vm4, %v854_v17, 0.0 }
 0x17a   :  { %517 = vadd.xlane.f32.xlu0 %v516_v35  ;;  %v211_v60 = vpop.permute.xlu0 %210  ;;  %v525_v62 = vadd.f32 %v524_v49, %v523_v29  ;;  %v526_v7 = vsel %vm467_vm4, %v444_v42, 0.0  ;;  %v450_v13 = vmul.f32 %v5393_v3, %v4819_v16  ;;  %v920_v18 = vsel %vm467_vm4, %v855_v15, 0.0 }
 0x17b   :  { %vm263_vm12 = vcmp.eq.s32.totalorder %v211_v60, %v7519_v28  ;;  %vm264_vm13 = vcmp.eq.s32.totalorder %v211_v60, %v7520_v54  ;;  %vm265_vm14 = vcmp.eq.s32.totalorder %v211_v60, %v7521_v25  ;;  %v534_v24 = vsel %vm467_vm4, %v448_v45, 0.0 }
 0x17c   :  { %v5411_v17 = vsel %vm263_vm12, 1.0, %v7517_v26  ;;  %v5414_v21 = vsel %vm264_vm13, 1.0, %v7517_v26  ;;  %v5417_v42 = vsel %vm265_vm14, 1.0, %v7517_v26  ;;  %v527_v29 = vadd.f32 %v526_v7, %v525_v62 }
 0x17d   :  { %521 = vadd.xlane.f32.xlu1 %v5252_v63  ;;  %v535_v15 = vsel %vm467_vm4, %v449_v40, 0.0  ;;  %v454_v35 = vmul.f32 %v5411_v17, %v7515_v8  ;;  %v455_v60 = vmul.f32 %v5414_v21, %v7516_v32  ;;  %v922_v45 = vsel %vm467_vm4, %v856_v53, 0.0 }
 0x17e   :  { %528 = vadd.xlane.f32.xlu0 %v527_v29  ;;  %v217_v49 = vpop.permute.xlu0 %216  ;;  %v536_v59 = vadd.f32 %v535_v15, %v534_v24  ;;  %v537_v38 = vsel %vm467_vm4, %v450_v13, 0.0  ;;  %v456_v7 = vmul.f32 %v5417_v42, %v4819_v16  ;;  %v921_v62 = vadd.f32 %v920_v18, %v919_v52 }
 0x17f   :  { %vm269_vm15 = vcmp.eq.s32.totalorder %v217_v49, %v7519_v28  ;;  %vm270_vm2 = vcmp.eq.s32.totalorder %v217_v49, %v7520_v54  ;;  %vm271_vm3 = vcmp.eq.s32.totalorder %v217_v49, %v7521_v25  ;;  %v545_v63 = vsel %vm467_vm4, %v454_v35, 0.0 }
 0x180   :  { %v5434_v40 = vsel %vm269_vm15, 1.0, %v7517_v26  ;;  %v5437_v53 = vsel %vm270_vm2, 1.0, %v7517_v26  ;;  %v5440_v13 = vsel %vm271_vm3, 1.0, %v7517_v26  ;;  %v538_v24 = vadd.f32 %v537_v38, %v536_v59 }
 0x181   :  { %532 = vadd.xlane.f32.xlu1 %v5273_v36  ;;  %v546_v52 = vsel %vm467_vm4, %v455_v60, 0.0  ;;  %v460_v18 = vmul.f32 %v5434_v40, %v7515_v8  ;;  %v461_v29 = vmul.f32 %v5437_v53, %v7516_v32  ;;  %v553_v15 = vadd.f32 %v5277_v46, %v5265_v33 }
 0x182   :  { %539 = vadd.xlane.f32.xlu0 %v538_v24  ;;  %v547_v35 = vadd.f32 %v546_v52, %v545_v63  ;;  %v548_v49 = vsel %vm467_vm4, %v456_v7, 0.0  ;;  %v462_v38 = vmul.f32 %v5440_v13, %v4819_v16  ;;  %v5453_v59 = vadd.f32 %v922_v45, %v921_v62 }
 0x183   :  { %v556_v36 = vsel %vm467_vm4, %v460_v18, 0.0  ;;  %v557_v60 = vsel %vm467_vm4, %v461_v29, 0.0  ;;  %v860_v8 = vmul.f32 %v5312_v34, %v7522_v2  ;;  %v861_v32 = vmul.f32 %v5315_v0, %v7523_v44 }
 0x184   :  { %v549_v33 = vadd.f32 %v548_v49, %v547_v35  ;;  %v558_v46 = vadd.f32 %v557_v60, %v556_v36  ;;  %v559_v63 = vsel %vm467_vm4, %v462_v38, 0.0  ;;  %v862_v7 = vmul.f32 %v5318_v20, %v7524_v39 }
 0x185   :  { %543 = vadd.xlane.f32.xlu1 %v5275_v51  ;;  %v930_v45 = vsel %vm467_vm4, %v860_v8, 0.0  ;;  %v931_v62 = vsel %vm467_vm4, %v861_v32, 0.0  ;;  %v866_v24 = vmul.f32 %v5335_v11, %v7522_v2  ;;  %v867_v52 = vmul.f32 %v5338_v23, %v7523_v44 }
 0x186   :  { %550 = vadd.xlane.f32.xlu0 %v549_v33  ;;  %v560_v18 = vadd.f32 %v559_v63, %v558_v46  ;;  %v932_v29 = vadd.f32 %v931_v62, %v930_v45  ;;  %v933_v35 = vsel %vm467_vm4, %v862_v7, 0.0  ;;  %v1264_v49 = vmul.f32 %v5255_v19, %v4986_v48 }
 0x187   :  { %v868_v51 = vmul.f32 %v5341_v22, %v7524_v39  ;;  %v941_v8 = vsel %vm467_vm4, %v866_v24, 0.0  ;;  %v942_v32 = vsel %vm467_vm4, %v867_v52, 0.0  ;;  %v872_v38 = vmul.f32 %v5361_v12, %v7522_v2 }
 0x188   :  { %v5480_v36 = vadd.f32 %v933_v35, %v932_v29  ;;  %v943_v60 = vadd.f32 %v942_v32, %v941_v8  ;;  %v873_v33 = vmul.f32 %v5364_v5, %v7523_v44  ;;  %v874_v46 = vmul.f32 %v5367_v14, %v7524_v39 }
 0x189   :  { %554 = vadd.xlane.f32.xlu1 %v553_v15  ;;  %v944_v63 = vsel %vm467_vm4, %v868_v51, 0.0  ;;  %v952_v7 = vsel %vm467_vm4, %v872_v38, 0.0  ;;  %v878_v45 = vmul.f32 %v5387_v41, %v7522_v2  ;;  %v879_v62 = vmul.f32 %v5390_v1, %v7523_v44 }
 0x18a   :  { %561 = vadd.xlane.f32.xlu0 %v560_v18  ;;  %v5492_v24 = vadd.f32 %v944_v63, %v943_v60  ;;  %v953_v52 = vsel %vm467_vm4, %v873_v33, 0.0  ;;  %v955_v29 = vsel %vm467_vm4, %v874_v46, 0.0  ;;  %v1265_v15 = vmul.f32 %v5258_v27, %v5009_v31 }
 0x18b   :  { %v954_v35 = vadd.f32 %v953_v52, %v952_v7  ;;  %v880_v51 = vmul.f32 %v5393_v3, %v7524_v39  ;;  %v963_v8 = vsel %vm467_vm4, %v878_v45, 0.0  ;;  %v964_v32 = vsel %vm467_vm4, %v879_v62, 0.0 }
 0x18c   :  { %v965_v38 = vadd.f32 %v964_v32, %v963_v8  ;;  %v884_v18 = vmul.f32 %v5411_v17, %v7522_v2  ;;  %v885_v60 = vmul.f32 %v5414_v21, %v7523_v44  ;;  %v886_v33 = vmul.f32 %v5417_v42, %v7524_v39 }
 0x18d   :  { %v5508_v46 = vadd.f32 %v955_v29, %v954_v35  ;;  %v966_v63 = vsel %vm467_vm4, %v880_v51, 0.0  ;;  %v890_v7 = vmul.f32 %v5434_v40, %v7522_v2  ;;  %v891_v45 = vmul.f32 %v5437_v53, %v7523_v44 }
 0x18e   :  { %v5515_v62 = vadd.f32 %v966_v63, %v965_v38  ;;  %v974_v52 = vsel %vm467_vm4, %v884_v18, 0.0  ;;  %v975_v8 = vsel %vm467_vm4, %v885_v60, 0.0  ;;  %v977_v16 = vsel %vm467_vm4, %v886_v33, 0.0 }
 0x18f   :  { %v976_v32 = vadd.f32 %v975_v8, %v974_v52  ;;  %v892_v29 = vmul.f32 %v5440_v13, %v7524_v39  ;;  %v985_v35 = vsel %vm467_vm4, %v890_v7, 0.0  ;;  %v986_v51 = vsel %vm467_vm4, %v891_v45, 0.0 }
 0x190   :  { %v1266_v2 = vmul.f32 %v5261_v58, %v4995_v61  ;;  %v1319_v38 = vsel %vm467_vm4, %v1264_v49, 0.0  ;;  %v1320_v63 = vsel %vm467_vm4, %v1265_v15, 0.0  ;;  %v987_v60 = vadd.f32 %v986_v51, %v985_v35 }
 0x191   :  { %v5528_v18 = vadd.f32 %v977_v16, %v976_v32  ;;  %v1321_v52 = vadd.f32 %v1320_v63, %v1319_v38  ;;  %v988_v33 = vsel %vm467_vm4, %v892_v29, 0.0  ;;  %v1276_v7 = vmul.f32 %v5288_v6, %v4986_v48 }
 0x192   :  { %v1322_v8 = vsel %vm467_vm4, %v1266_v2, 0.0  ;;  %v1277_v45 = vmul.f32 %v5291_v43, %v5009_v31  ;;  %v5536_v39 = vadd.f32 %v988_v33, %v987_v60  ;;  %v1278_v16 = vmul.f32 %v5294_v10, %v4995_v61 }
 0x193   :  { %v5538_v44 = vadd.f32 %v1322_v8, %v1321_v52  ;;  %v1282_v49 = vmul.f32 %v5312_v34, %v4986_v48  ;;  %v1341_v15 = vsel %vm467_vm4, %v1276_v7, 0.0  ;;  %v1283_v32 = vmul.f32 %v5315_v0, %v5009_v31 }
 0x194   :  { %v1342_v2 = vsel %vm467_vm4, %v1277_v45, 0.0  ;;  %v1284_v29 = vmul.f32 %v5318_v20, %v4995_v61  ;;  %v1344_v51 = vsel %vm467_vm4, %v1278_v16, 0.0  ;;  %v1288_v63 = vmul.f32 %v5335_v11, %v4986_v48 }
 0x195   :  { %v1343_v35 = vadd.f32 %v1342_v2, %v1341_v15  ;;  %v1352_v38 = vsel %vm467_vm4, %v1282_v49, 0.0  ;;  %v1353_v60 = vsel %vm467_vm4, %v1283_v32, 0.0  ;;  %v1289_v33 = vmul.f32 %v5338_v23, %v5009_v31 }
 0x196   :  { %v1355_v52 = vsel %vm467_vm4, %v1284_v29, 0.0  ;;  %v1290_v8 = vmul.f32 %v5341_v22, %v4995_v61  ;;  %v1354_v45 = vadd.f32 %v1353_v60, %v1352_v38  ;;  %v1363_v16 = vsel %vm467_vm4, %v1288_v63, 0.0 }
 0x197   :  { %v5560_v7 = vadd.f32 %v1344_v51, %v1343_v35  ;;  %v1294_v49 = vmul.f32 %v5361_v12, %v4986_v48  ;;  %v1364_v15 = vsel %vm467_vm4, %v1289_v33, 0.0  ;;  %v1295_v32 = vmul.f32 %v5364_v5, %v5009_v31 }
 0x198   :  { %v1366_v2 = vsel %vm467_vm4, %v1290_v8, 0.0  ;;  %v1296_v29 = vmul.f32 %v5367_v14, %v4995_v61  ;;  %v5571_v25 = vadd.f32 %v1355_v52, %v1354_v45  ;;  %v1365_v35 = vadd.f32 %v1364_v15, %v1363_v16 }
 0x199   :  { %v1374_v51 = vsel %vm467_vm4, %v1294_v49, 0.0  ;;  %v1300_v38 = vmul.f32 %v5387_v41, %v4986_v48  ;;  %v1375_v63 = vsel %vm467_vm4, %v1295_v32, 0.0  ;;  %v1301_v60 = vmul.f32 %v5390_v1, %v5009_v31 }
 0x19a   :  { %7525 = vst [vmem:[#allocation7_spill] sm:$0xff] %v5571_v25  ;;  %v1302_v33 = vmul.f32 %v5393_v3, %v4995_v61  ;;  %v5581_v8 = vadd.f32 %v1366_v2, %v1365_v35  ;;  %v1376_v54 = vadd.f32 %v1375_v63, %v1374_v51  ;;  %v1306_v45 = vmul.f32 %v5411_v17, %v4986_v48 }
 0x19b   :  { %v1385_v52 = vsel %vm467_vm4, %v1300_v38, 0.0  ;;  %v1377_v16 = vsel %vm467_vm4, %v1296_v29, 0.0  ;;  %v1386_v49 = vsel %vm467_vm4, %v1301_v60, 0.0  ;;  %v1307_v15 = vmul.f32 %v5414_v21, %v5009_v31 }
 0x19c   :  { %7526 = vst [vmem:[#allocation3_spill] sm:$0xff] %v5581_v8  ;;  %v1308_v32 = vmul.f32 %v5417_v42, %v4995_v61  ;;  %v5592_v25 = vadd.f32 %v1377_v16, %v1376_v54  ;;  %v1387_v2 = vadd.f32 %v1386_v49, %v1385_v52  ;;  %v1396_v35 = vsel %vm467_vm4, %v1306_v45, 0.0 }
 0x19d   :  { %v1312_v51 = vmul.f32 %v5434_v40, %v4986_v48  ;;  %v1388_v38 = vsel %vm467_vm4, %v1302_v33, 0.0  ;;  %v1397_v29 = vsel %vm467_vm4, %v1307_v15, 0.0  ;;  %v1313_v63 = vmul.f32 %v5437_v53, %v5009_v31 }
 0x19e   :  { %v1314_v60 = vmul.f32 %v5440_v13, %v4995_v61  ;;  %v5603_v8 = vadd.f32 %v1388_v38, %v1387_v2  ;;  %v1398_v54 = vadd.f32 %v1397_v29, %v1396_v35  ;;  %v1687_v45 = vmul.f32 %v5255_v19, %v5091_v9 }
 0x19f   :  { %v1407_v52 = vsel %vm467_vm4, %v1312_v51, 0.0  ;;  %v1399_v16 = vsel %vm467_vm4, %v1308_v32, 0.0  ;;  %v1408_v33 = vsel %vm467_vm4, %v1313_v63, 0.0  ;;  %v1688_v49 = vmul.f32 %v5258_v27, %v5093_v55 }
 0x1a0   :  { %v1689_v15 = vmul.f32 %v5261_v58, %v5107_v37  ;;  %v5614_v31 = vadd.f32 %v1399_v16, %v1398_v54  ;;  %v1409_v2 = vadd.f32 %v1408_v33, %v1407_v52  ;;  %v1742_v35 = vsel %vm467_vm4, %v1687_v45, 0.0 }
 0x1a1   :  { %v1699_v51 = vmul.f32 %v5288_v6, %v5091_v9  ;;  %v1410_v19 = vsel %vm467_vm4, %v1314_v60, 0.0  ;;  %v1743_v32 = vsel %vm467_vm4, %v1688_v49, 0.0  ;;  %v1700_v27 = vmul.f32 %v5291_v43, %v5093_v55 }
 0x1a2   :  { %v1745_v38 = vsel %vm467_vm4, %v1689_v15, 0.0  ;;  %v5624_v29 = vadd.f32 %v1410_v19, %v1409_v2  ;;  %v1744_v58 = vadd.f32 %v1743_v32, %v1742_v35  ;;  %v1701_v63 = vmul.f32 %v5294_v10, %v5107_v37 }
 0x1a3   :  { %v1764_v54 = vsel %vm467_vm4, %v1699_v51, 0.0  ;;  %v1765_v52 = vsel %vm467_vm4, %v1700_v27, 0.0  ;;  %v1705_v6 = vmul.f32 %v5312_v34, %v5091_v9  ;;  %v1706_v60 = vmul.f32 %v5315_v0, %v5093_v55 }
 0x1a4   :  { %v5634_v45 = vadd.f32 %v1745_v38, %v1744_v58  ;;  %v1766_v16 = vadd.f32 %v1765_v52, %v1764_v54  ;;  %v1767_v43 = vsel %vm467_vm4, %v1701_v63, 0.0  ;;  %v1707_v33 = vmul.f32 %v5318_v20, %v5107_v37 }
 0x1a5   :  { %v1775_v10 = vsel %vm467_vm4, %v1705_v6, 0.0  ;;  %v1776_v49 = vsel %vm467_vm4, %v1706_v60, 0.0  ;;  %v1711_v15 = vmul.f32 %v5335_v11, %v5091_v9  ;;  %v1712_v34 = vmul.f32 %v5338_v23, %v5093_v55 }
 0x1a6   :  { %v5645_v2 = vadd.f32 %v1767_v43, %v1766_v16  ;;  %v1777_v0 = vadd.f32 %v1776_v49, %v1775_v10  ;;  %v1778_v35 = vsel %vm467_vm4, %v1707_v33, 0.0  ;;  %v1713_v51 = vmul.f32 %v5341_v22, %v5107_v37 }
 0x1a7   :  { %v1786_v20 = vsel %vm467_vm4, %v1711_v15, 0.0  ;;  %v1787_v19 = vsel %vm467_vm4, %v1712_v34, 0.0  ;;  %v1717_v32 = vmul.f32 %v5361_v12, %v5091_v9  ;;  %v1718_v11 = vmul.f32 %v5364_v5, %v5093_v55 }
 0x1a8   :  { %v5656_v38 = vadd.f32 %v1778_v35, %v1777_v0  ;;  %v1788_v23 = vadd.f32 %v1787_v19, %v1786_v20  ;;  %v1789_v27 = vsel %vm467_vm4, %v1713_v51, 0.0  ;;  %v1719_v58 = vmul.f32 %v5367_v14, %v5107_v37 }
 0x1a9   :  { %v1797_v22 = vsel %vm467_vm4, %v1717_v32, 0.0  ;;  %v1798_v63 = vsel %vm467_vm4, %v1718_v11, 0.0  ;;  %v1723_v54 = vmul.f32 %v5387_v41, %v5091_v9  ;;  %v1724_v12 = vmul.f32 %v5390_v1, %v5093_v55 }
 0x1aa   :  { %v5667_v52 = vadd.f32 %v1789_v27, %v1788_v23  ;;  %v1799_v5 = vadd.f32 %v1798_v63, %v1797_v22  ;;  %v1725_v6 = vmul.f32 %v5393_v3, %v5107_v37  ;;  %v1800_v60 = vsel %vm467_vm4, %v1719_v58, 0.0 }
 0x1ab   :  { %v1808_v14 = vsel %vm467_vm4, %v1723_v54, 0.0  ;;  %v1809_v16 = vsel %vm467_vm4, %v1724_v12, 0.0  ;;  %v1729_v43 = vmul.f32 %v5411_v17, %v5091_v9  ;;  %v1730_v10 = vmul.f32 %v5414_v21, %v5093_v55  ;;  %v466_v11 = vpop.xlane.xlu0 %465 }
 0x1ac   :  { %v5676_v33 = vadd.f32 %v1800_v60, %v1799_v5  ;;  %v1810_v41 = vadd.f32 %v1809_v16, %v1808_v14  ;;  %v1811_v1 = vsel %vm467_vm4, %v1725_v6, 0.0  ;;  %v1731_v3 = vmul.f32 %v5417_v42, %v5107_v37  ;;  %v7527_v16 = vld [vmem:[#allocation6_spill] sm:$0xff] }
 0x1ad   :  { %v1819_v49 = vsel %vm467_vm4, %v1729_v43, 0.0  ;;  %v1735_v15 = vmul.f32 %v5434_v40, %v5091_v9  ;;  %v1736_v34 = vmul.f32 %v5437_v53, %v5093_v55  ;;  %v1820_v0 = vsel %vm467_vm4, %v1730_v10, 0.0 }
 0x1ae   :  { %v5688_v17 = vadd.f32 %v1811_v1, %v1810_v41  ;;  %v1737_v35 = vmul.f32 %v5440_v13, %v5107_v37  ;;  %v1821_v51 = vadd.f32 %v1820_v0, %v1819_v49  ;;  %v1822_v42 = vsel %vm467_vm4, %v1731_v3, 0.0 }
 0x1af   :  { %v1830_v21 = vsel %vm467_vm4, %v1735_v15, 0.0  ;;  %v1831_v20 = vsel %vm467_vm4, %v1736_v34, 0.0  ;;  %v478_v23 = vpop.xlane.xlu0 %477  ;;  %v588_v14 = vadd.s32 4294967288, %v7519_v28  ;;  %v5704_v43 = vsub.s32 %v7519_v28, %v7527_v16 }
 0x1b0   :  { %v5696_v19 = vadd.f32 %v1822_v42, %v1821_v51  ;;  %v1832_v40 = vadd.f32 %v1831_v20, %v1830_v21  ;;  %v1833_v32 = vsel %vm467_vm4, %v1737_v35, 0.0  ;;  %vm593_vm6 = vcmask 130112  }
 0x1b1   :  { %7528 = vst [vmem:[#allocation6_spill] sm:$0xff] %v5704_v43  ;;  %v5707_v41 = vsub.s32 %v588_v14, %v7527_v16  ;;  %v587_v3 = vrot.slane %v466_v11, %v5704_v43  ;;  %v598_v49 = vrot.slane %v478_v23, %v5704_v43  ;;  %vm667_vm7 = vcmask 1041409  }
 0x1b2   :  { %v5699_v53 = vadd.f32 %v1833_v32, %v1832_v40  ;;  %vm669_vm8 = vcmask 1042434   ;;  %vm671_vm9 = vcmask 1043459   ;;  %vm673_vm10 = vcmask 1044484  }
 0x1b3   :  { %v485_v27 = vpop.xlane.xlu0 %484  ;;  %7529 = vst [vmem:[#allocation46_spill] sm:$0xff] %v5707_v41  ;;  %vm675_vm11 = vcmask 1045509   ;;  %vm677_vm12 = vcmask 1046534   ;;  %vm7395_vm13 = vcmask 1047559   ;;  %vm7392_vm14 = vcmask 72704  }
 0x1b4   :  { %v602_v15 = vrot.slane %v485_v27, %v5707_v41  ;;  %vm7388_vm15 = vcmask 65536   ;;  %vm761_vm2 = vcmask 1043456   ;;  %vm762_vm3 = vcmask 1044480  }
 0x1b6   :  { %v603_v11 = vsel %vm593_vm6, %v602_v15, %v598_v49 }
 0x1f6   :  { %v474_v58 = vpop.xlane.xlu1 %473 }
 0x1f7   :  { %v592_v34 = vrot.slane %v474_v58, %v5707_v41 }
 0x1f9   :  { %v594_v23 = vsel %vm593_vm6, %v592_v34, %v587_v3 }
 0x1fa   :  { %v489_v22 = vpop.xlane.xlu1 %488  ;;  %v668_v14 = vsel %vm667_vm7, %v603_v11, %v594_v23 }
 0x1fb   :  { %v496_v13 = vpop.xlane.xlu0 %495  ;;  %v607_v35 = vrot.slane %v489_v22, %v5704_v43 }
 0x1fc   :  { %v611_v0 = vrot.slane %v496_v13, %v5707_v41 }
 0x1fe   :  { %v500_v63 = vpop.xlane.xlu1 %499  ;;  %v612_v22 = vsel %vm593_vm6, %v611_v0, %v607_v35 }
 0x1ff   :  { %v507_v54 = vpop.xlane.xlu0 %506  ;;  %v616_v21 = vrot.slane %v500_v63, %v5704_v43 }
 0x200   :  { %v620_v51 = vrot.slane %v507_v54, %v5707_v41 }
 0x202   :  { %v511_v12 = vpop.xlane.xlu1 %510  ;;  %v621_v54 = vsel %vm593_vm6, %v620_v51, %v616_v21 }
 0x203   :  { %v518_v5 = vpop.xlane.xlu0 %517  ;;  %v625_v20 = vrot.slane %v511_v12, %v5704_v43 }
 0x204   :  { %v629_v42 = vrot.slane %v518_v5, %v5707_v41 }
 0x206   :  { %v522_v60 = vpop.xlane.xlu1 %521 }
 0x207   :  { %v529_v6 = vpop.xlane.xlu0 %528  ;;  %v634_v58 = vrot.slane %v522_v60, %v5704_v43  ;;  %v670_v60 = vsel %vm669_vm8, %v612_v22, %v668_v14 }
 0x208   :  { %v638_v27 = vrot.slane %v529_v6, %v5707_v41  ;;  %v630_v6 = vsel %vm593_vm6, %v629_v42, %v625_v20 }
 0x20a   :  { %v533_v10 = vpop.xlane.xlu1 %532  ;;  %v639_v16 = vsel %vm593_vm6, %v638_v27, %v634_v58 }
 0x20b   :  { %v540_v1 = vpop.xlane.xlu0 %539  ;;  %v643_v63 = vrot.slane %v533_v10, %v5704_v43 }
 0x20c   :  { %v647_v13 = vrot.slane %v540_v1, %v5707_v41  ;;  %v672_v1 = vsel %vm671_vm9, %v621_v54, %v670_v60 }
 0x20d   :  { %v674_v34 = vsel %vm673_vm10, %v630_v6, %v672_v1 }
 0x20e   :  { %v544_v32 = vpop.xlane.xlu1 %543  ;;  %v648_v10 = vsel %vm593_vm6, %v647_v13, %v643_v63  ;;  %v676_v0 = vsel %vm675_vm11, %v639_v16, %v674_v34  ;;  %v4526_v63 = vmov 65535  }
 0x20f   :  { %v551_v40 = vpop.xlane.xlu0 %550  ;;  %v652_v5 = vrot.slane %v544_v32, %v5704_v43  ;;  %v678_v35 = vsel %vm677_vm12, %v648_v10, %v676_v0  ;;  %v763_v54 = vsel %vm761_vm2, 4294967295, %v4526_v63  ;;  %vm7387_vm2 = vcmask 57344  }
 0x210   :  { %v656_v12 = vrot.slane %v551_v40, %v5707_v41  ;;  %v5747_v14 = vsel %vm762_vm3, %v763_v54, 0  ;;  %v7557_v54 = vld [vmem:[#allocation44_spill] sm:$0xff]  ;;  %vm7390_vm3 = vcmask 195712  }
 0x211   :  { %7530 = vst [vmem:[#allocation47_spill] sm:$0xff] %v5747_v14 }
 0x212   :  { %v555_v49 = vpop.xlane.xlu1 %554  ;;  %v657_v15 = vsel %vm593_vm6, %v656_v12, %v652_v5 }
 0x213   :  { %v562_v3 = vpop.xlane.xlu0 %561  ;;  %v661_v21 = vrot.slane %v555_v49, %v5704_v43  ;;  %v680_v42 = vsel %vm7395_vm13, %v657_v15, %v678_v35  ;;  %v7531_v35 = vld [vmem:[#allocation17_spill] sm:$0xff] }
 0x214   :  { %v665_v51 = vrot.slane %v562_v3, %v5707_v41 }
 0x216   :  { %v666_v23 = vsel %vm593_vm6, %v665_v51, %v661_v21  ;;  %v7532_v51 = vld [vmem:[#allocation18_spill] sm:$0xff]  ;;  %v7533_v21 = vld [vmem:[#allocation19_spill] sm:$0xff] }
 0x21e   :  { %v724_v20 = vpop.f32.mrf.mxu1 }
 0x21f   :  { %v725_v40 = vadd.f32 %v724_v20, %v680_v42  ;;  %v7534_v42 = vld [vmem:[#allocation20_spill] sm:$0xff]  ;;  %v7535_v20 = vld [vmem:[#allocation21_spill] sm:$0xff] }
 0x220   :  { %v4293_v32 = vpop.f32.mrf.mxu1 }
 0x221   :  { %v732_v11 = vsel %vm7392_vm14, %v725_v40, -inf  ;;  %v7537_v32 = vld [vmem:[#allocation23_spill] sm:$0xff] }
 0x222   :  { %v727_v27 = vpop.f32.mrf.mxu1  ;;  %733 = vmax.xlane.f32.xlu1 %v732_v11  ;;  %v7554_v11 = vld [vmem:[#allocation41_spill] sm:$0xff] }
 0x223   :  { %v728_v58 = vadd.f32 %v727_v27, %v666_v23 }
 0x224   :  { %v4294_v22 = vpop.f32.mrf.mxu1 }
 0x225   :  { %v736_v13 = vsel %vm7388_vm15, %v728_v58, -inf  ;;  %v7555_v22 = vld [vmem:[#allocation42_spill] sm:$0xff] }
 0x226   :  { %737 = vmax.xlane.f32.xlu0 %v736_v13 }
 0x233   :  { %756 = vrot.lane.b32.xlu1 %v7518_v4, %s4525_s11 }
 0x2ab   :  { %v734_v12 = vpop.xlane.xlu1 %733 }
 0x2ac   :  { %v739_v5 = vsub.f32 %v725_v40, %v734_v12  ;;  %v7536_v40 = vld [vmem:[#allocation22_spill] sm:$0xff]  ;;  %v7558_v12 = vld [vmem:[#allocation45_spill] sm:$0xff] }
 0x2ae   :  { %v741_v6 = vmul.f32 1.442695, %v739_v5 }
 0x2af   :  { %v738_v60 = vpop.xlane.xlu0 %737  ;;  %v757_v16 = vpop.permute.xlu1 %756 }
 0x2b0   :  { %4447 = vpow2.f32 %v741_v6  ;;  %v740_v1 = vsub.f32 %v728_v58, %v738_v60  ;;  %v766_v10 = vand.u32 %v5747_v14, %v757_v16 }
 0x2b2   :  { %v743_v3 = vmul.f32 1.442695, %v740_v1  ;;  %4296 = vmatpush3.bf16.msra.mxu1 %v766_v10 }
 0x2b3   :  { %4301 = vmatprep.subr.bf16.mxu1 %v7517_v26 }
 0x2b4   :  { %4449 = vpow2.f32 %v743_v3 }
 0x2bd   :  { %v5751_v49 = vpop.eup %4447 }
 0x2be   :  { %v745_v15 = vsel %vm7392_vm14, %v5751_v49, 0.0 }
 0x2bf   :  { %746 = vadd.xlane.f32.xlu1 %v745_v15 }
 0x2c1   :  { %v5755_v34 = vpop.eup %4449 }
 0x2c2   :  { %v748_v0 = vsel %vm7388_vm15, %v5755_v34, 0.0 }
 0x2c3   :  { %749 = vadd.xlane.f32.xlu0 %v748_v0 }
 0x2d0   :  { %992 = vrot.lane.b32.xlu1 %v7518_v4, %s4527_s12 }
 0x2d4   :  { %1416 = vrot.lane.b32.xlu1 %v7518_v4, %s4528_s13 }
 0x2d8   :  { %1839 = vrot.lane.b32.xlu1 %v7518_v4, %s4529_s15 }
 0x2d9   :  { %994 = vrot.lane.b32.xlu0 %v7518_v4, %s4530_s16 }
 0x2dd   :  { %1414 = vrot.lane.b32.xlu0 %v7518_v4, %s4531_s17 }
 0x2e1   :  { %1837 = vrot.lane.b32.xlu0 %v7518_v4, %s4532_s18 }
 0x2fc   :  { %895 = vadd.xlane.f32.xlu1 %v7531_v35 }
 0x300   :  { %902 = vadd.xlane.f32.xlu0 %v5352_v47  ;;  %913 = vadd.xlane.f32.xlu1 %v7532_v51  ;;  %v7538_v47 = vld [vmem:[#allocation24_spill] sm:$0xff] }
 0x304   :  { %906 = vadd.xlane.f32.xlu0 %v7533_v21  ;;  %924 = vadd.xlane.f32.xlu1 %v5453_v59  ;;  %v7539_v59 = vld [vmem:[#allocation25_spill] sm:$0xff] }
 0x308   :  { %917 = vadd.xlane.f32.xlu0 %v7534_v42  ;;  %935 = vadd.xlane.f32.xlu1 %v5480_v36  ;;  %v7540_v36 = vld [vmem:[#allocation27_spill] sm:$0xff] }
 0x30c   :  { %928 = vadd.xlane.f32.xlu0 %v7535_v20  ;;  %946 = vadd.xlane.f32.xlu1 %v5492_v24  ;;  %v7541_v24 = vld [vmem:[#allocation7_spill] sm:$0xff] }
 0x310   :  { %939 = vadd.xlane.f32.xlu0 %v7536_v40  ;;  %957 = vadd.xlane.f32.xlu1 %v5508_v46  ;;  %v7542_v46 = vld [vmem:[#allocation30_spill] sm:$0xff] }
 0x314   :  { %950 = vadd.xlane.f32.xlu0 %v7537_v32  ;;  %968 = vadd.xlane.f32.xlu1 %v5515_v62  ;;  %v7543_v62 = vld [vmem:[#allocation3_spill] sm:$0xff] }
 0x318   :  { %961 = vadd.xlane.f32.xlu0 %v7538_v47  ;;  %979 = vadd.xlane.f32.xlu1 %v5528_v18  ;;  %v7550_v18 = vld [vmem:[#allocation10_spill] sm:$0xff] }
 0x31c   :  { %972 = vadd.xlane.f32.xlu0 %v7539_v59  ;;  %990 = vadd.xlane.f32.xlu1 %v5536_v39  ;;  %v7544_v39 = vld [vmem:[#allocation31_spill] sm:$0xff] }
 0x320   :  { %983 = vadd.xlane.f32.xlu0 %v7540_v36  ;;  %1324 = vadd.xlane.f32.xlu1 %v5538_v44  ;;  %v7545_v44 = vld [vmem:[#allocation32_spill] sm:$0xff] }
 0x324   :  { %1317 = vadd.xlane.f32.xlu0 %v5042_v56  ;;  %1335 = vadd.xlane.f32.xlu1 %v5050_v57  ;;  %v7546_v56 = vld [vmem:[#allocation33_spill] sm:$0xff]  ;;  %v7548_v57 = vld [vmem:[#allocation38_spill] sm:$0xff] }
 0x328   :  { %1328 = vadd.xlane.f32.xlu0 %v5044_v50  ;;  %1346 = vadd.xlane.f32.xlu1 %v5560_v7  ;;  %v7547_v50 = vld [vmem:[#allocation36_spill] sm:$0xff]  ;;  %v7551_v7 = vld [vmem:[#allocation9_spill] sm:$0xff] }
 0x32c   :  { %1339 = vadd.xlane.f32.xlu0 %v5052_v30  ;;  %1357 = vadd.xlane.f32.xlu1 %v7541_v24  ;;  %v7549_v30 = vld [vmem:[#allocation8_spill] sm:$0xff] }
 0x330   :  { %1350 = vadd.xlane.f32.xlu0 %v7542_v46  ;;  %1368 = vadd.xlane.f32.xlu1 %v7543_v62 }
 0x334   :  { %1361 = vadd.xlane.f32.xlu0 %v7544_v39  ;;  %1379 = vadd.xlane.f32.xlu1 %v5592_v25 }
 0x338   :  { %1372 = vadd.xlane.f32.xlu0 %v7545_v44  ;;  %1390 = vadd.xlane.f32.xlu1 %v5603_v8 }
 0x33c   :  { %1383 = vadd.xlane.f32.xlu0 %v7546_v56  ;;  %1401 = vadd.xlane.f32.xlu1 %v5614_v31  ;;  %v7552_v31 = vld [vmem:[#allocation39_spill] sm:$0xff] }
 0x340   :  { %1394 = vadd.xlane.f32.xlu0 %v7547_v50  ;;  %1412 = vadd.xlane.f32.xlu1 %v5624_v29  ;;  %v7553_v29 = vld [vmem:[#allocation40_spill] sm:$0xff] }
 0x344   :  { %1405 = vadd.xlane.f32.xlu0 %v7548_v57  ;;  %1747 = vadd.xlane.f32.xlu1 %v5634_v45 }
 0x348   :  { %1740 = vadd.xlane.f32.xlu0 %v7549_v30  ;;  %1758 = vadd.xlane.f32.xlu1 %v7550_v18  ;;  %v747_v25 = vpop.xlane.xlu1 %746 }
 0x349   :  { %4451 = vrcp.f32 %v747_v25 }
 0x34c   :  { %1751 = vadd.xlane.f32.xlu0 %v7551_v7  ;;  %v750_v8 = vpop.xlane.xlu0 %749  ;;  %1769 = vadd.xlane.f32.xlu1 %v5645_v2  ;;  %v993_v13 = vpop.permute.xlu1 %992 }
 0x34d   :  { %4453 = vrcp.f32 %v750_v8 }
 0x350   :  { %1762 = vadd.xlane.f32.xlu0 %v7552_v31  ;;  %1780 = vadd.xlane.f32.xlu1 %v5656_v38  ;;  %v995_v2 = vpop.permute.xlu0 %994 }
 0x351   :  { %v1108_v63 = vsel %vm7398_vm5, %v995_v2, 0 }
 0x354   :  { %1773 = vadd.xlane.f32.xlu0 %v7553_v29  ;;  %1791 = vadd.xlane.f32.xlu1 %v5667_v52  ;;  %v7556_v52 = vld [vmem:[#allocation43_spill] sm:$0xff]  ;;  %v1415_v5 = vpop.permute.xlu0 %1414 }
 0x356   :  { %v4452_v45 = vpop.eup %4451 }
 0x357   :  { %v753_v27 = vmul.f32 %v4452_v45, %v5751_v49 }
 0x358   :  { %1784 = vadd.xlane.f32.xlu0 %v7554_v11  ;;  %1802 = vadd.xlane.f32.xlu1 %v5676_v33  ;;  %v1417_v33 = vpop.permute.xlu1 %1416 }
 0x35a   :  { %v4454_v23 = vpop.eup %4453 }
 0x35b   :  { %v754_v58 = vmul.f32 %v4454_v23, %v5755_v34 }
 0x35c   :  { %1795 = vadd.xlane.f32.xlu0 %v7555_v22  ;;  %1813 = vadd.xlane.f32.xlu1 %v5688_v17  ;;  %v1530_v17 = vsel %vm7398_vm5, %v1417_v33, 0 }
 0x35d   :  { %v755_v38 = vpack.c.bf16 %v754_v58, %v753_v27 }
 0x35f   :  { %4298 = vmatmul.mubr.msk.bf16.vlgmr.msra.gmra.mxu1 %vm7392_vm14, %v755_v38 }
 0x360   :  { %4302 = vmatpush3.bf16.xpose.msra.mxu1 %v1108_v63  ;;  %1806 = vadd.xlane.f32.xlu0 %v7556_v52 }
 0x361   :  { %1824 = vadd.xlane.f32.xlu1 %v5696_v19  ;;  %4303 = vmatprep.mubr.msk.bf16.mxu1 %vm7396_vm0, %v7517_v26  ;;  %v1840_v19 = vpop.permute.xlu1 %1839 }
 0x362   :  { %4313 = vmatprep.subr.bf16.mxu1 %v7517_v26  ;;  %v1953_v6 = vsel %vm7398_vm5, %v1840_v19, 0 }
 0x364   :  { %1817 = vadd.xlane.f32.xlu0 %v7557_v54 }
 0x365   :  { %1835 = vadd.xlane.f32.xlu1 %v5699_v53  ;;  %v1838_v53 = vpop.permute.xlu0 %1837 }
 0x367   :  { %4304 = vmatmul.mubr.msk.bf16.vlgmr.msra.gmra.mxu1 %vm7398_vm5, %v993_v13 }
 0x368   :  { %4314 = vmatpush3.bf16.xpose.msra.mxu1 %v1530_v17  ;;  %1828 = vadd.xlane.f32.xlu0 %v7558_v12 }
 0x369   :  { %4315 = vmatprep.mubr.msk.bf16.mxu1 %vm7396_vm0, %v7517_v26  ;;  %4325 = vmatprep.subr.bf16.mxu1 %v7517_v26 }
 0x36f   :  { %4316 = vmatmul.mubr.msk.bf16.vlgmr.msra.gmra.mxu1 %vm7398_vm5, %v1415_v5 }
 0x370   :  { %4326 = vmatpush3.bf16.xpose.msra.mxu1 %v1953_v6  ;;  %4327 = vmatprep.mubr.msk.bf16.mxu1 %vm7396_vm0, %v7517_v26 }
 0x371   :  { %4337 = vmatprep.subr.bf16.mxu1 %v7517_v26 }
 0x377   :  { %4328 = vmatmul.mubr.msk.bf16.vlgmr.msra.gmra.mxu1 %vm7398_vm5, %v1838_v53 }
 0x378   :  { %4341 = vmatprep.mubr.msk.bf16.mxu1 %vm7396_vm0, %v7517_v26 }
 0x385   :  { %v896_v16 = vpop.xlane.xlu1 %895 }
 0x386   :  { %v1017_v6 = vrot.slane %v896_v16, %v5704_v43 }
 0x389   :  { %v903_v60 = vpop.xlane.xlu0 %902  ;;  %v914_v10 = vpop.xlane.xlu1 %913 }
 0x38a   :  { %v1021_v54 = vrot.slane %v903_v60, %v5707_v41  ;;  %v1030_v17 = vrot.slane %v914_v10, %v5707_v41 }
 0x38c   :  { %v1022_v10 = vsel %vm593_vm6, %v1021_v54, %v1017_v6 }
 0x38d   :  { %v907_v1 = vpop.xlane.xlu0 %906  ;;  %v925_v49 = vpop.xlane.xlu1 %924 }
 0x38e   :  { %v1026_v63 = vrot.slane %v907_v1, %v5704_v43  ;;  %v1039_v19 = vrot.slane %v925_v49, %v5707_v41 }
 0x390   :  { %v1031_v53 = vsel %vm593_vm6, %v1030_v17, %v1026_v63 }
 0x391   :  { %v918_v3 = vpop.xlane.xlu0 %917  ;;  %v936_v34 = vpop.xlane.xlu1 %935 }
 0x392   :  { %v1035_v52 = vrot.slane %v918_v3, %v5704_v43  ;;  %v1048_v1 = vrot.slane %v936_v34, %v5707_v41 }
 0x394   :  { %v1040_v3 = vsel %vm593_vm6, %v1039_v19, %v1035_v52 }
 0x395   :  { %v929_v15 = vpop.xlane.xlu0 %928  ;;  %v947_v35 = vpop.xlane.xlu1 %946 }
 0x396   :  { %v1044_v12 = vrot.slane %v929_v15, %v5704_v43  ;;  %v1057_v37 = vrot.slane %v947_v35, %v5707_v41  ;;  %v1095_v15 = vsel %vm667_vm7, %v1031_v53, %v1022_v10 }
 0x397   :  { %v1096_v35 = vsel %vm669_vm8, %v1040_v3, %v1095_v15 }
 0x398   :  { %v1049_v49 = vsel %vm593_vm6, %v1048_v1, %v1044_v12 }
 0x399   :  { %v940_v0 = vpop.xlane.xlu0 %939  ;;  %v958_v21 = vpop.xlane.xlu1 %957  ;;  %v1097_v52 = vsel %vm671_vm9, %v1049_v49, %v1096_v35 }
 0x39a   :  { %v1053_v5 = vrot.slane %v940_v0, %v5704_v43  ;;  %v1066_v0 = vrot.slane %v958_v21, %v5707_v41 }
 0x39c   :  { %v1058_v16 = vsel %vm593_vm6, %v1057_v37, %v1053_v5 }
 0x39d   :  { %v951_v51 = vpop.xlane.xlu0 %950  ;;  %v5847_v20 = vpop.xlane.xlu1 %968 }
 0x39e   :  { %v1062_v60 = vrot.slane %v951_v51, %v5704_v43  ;;  %v1075_v17 = vrot.slane %v5847_v20, %v5707_v41 }
 0x3a0   :  { %v1067_v54 = vsel %vm593_vm6, %v1066_v0, %v1062_v60 }
 0x3a1   :  { %v5845_v42 = vpop.xlane.xlu0 %961  ;;  %v5851_v32 = vpop.xlane.xlu1 %979 }
 0x3a2   :  { %v1071_v34 = vrot.slane %v5845_v42, %v5704_v43  ;;  %v1084_v42 = vrot.slane %v5851_v32, %v5707_v41 }
 0x3a4   :  { %v1076_v6 = vsel %vm593_vm6, %v1075_v17, %v1071_v34 }
 0x3a5   :  { %v5849_v40 = vpop.xlane.xlu0 %972  ;;  %v5855_v59 = vpop.xlane.xlu1 %990 }
 0x3a6   :  { %v1080_v51 = vrot.slane %v5849_v40, %v5704_v43  ;;  %v1098_v40 = vsel %vm673_vm10, %v1058_v16, %v1097_v52 }
 0x3a8   :  { %v1085_v1 = vsel %vm593_vm6, %v1084_v42, %v1080_v51 }
 0x3a9   :  { %v5853_v47 = vpop.xlane.xlu0 %983  ;;  %v5859_v24 = vpop.xlane.xlu1 %1324 }
 0x3aa   :  { %v1089_v52 = vrot.slane %v5853_v47, %v5704_v43 }
 0x3ad   :  { %v5857_v36 = vpop.xlane.xlu0 %1317  ;;  %v5863_v62 = vpop.xlane.xlu1 %1335 }
 0x3ae   :  { %v1439_v19 = vrot.slane %v5857_v36, %v5704_v43  ;;  %v1452_v20 = vrot.slane %v5863_v62, %v5707_v41  ;;  %v1099_v36 = vsel %vm675_vm11, %v1067_v54, %v1098_v40  ;;  %v1443_v62 = vrot.slane %v5859_v24, %v5707_v41 }
 0x3af   :  { %v1100_v24 = vsel %vm677_vm12, %v1076_v6, %v1099_v36 }
 0x3b0   :  { %v1101_v51 = vsel %vm7395_vm13, %v1085_v1, %v1100_v24 }
 0x3b1   :  { %v5861_v46 = vpop.xlane.xlu0 %1328  ;;  %v5867_v44 = vpop.xlane.xlu1 %1346 }
 0x3b2   :  { %v1448_v37 = vrot.slane %v5861_v46, %v5704_v43 }
 0x3b5   :  { %v5865_v39 = vpop.xlane.xlu0 %1339  ;;  %v5871_v50 = vpop.xlane.xlu1 %1357 }
 0x3b6   :  { %v1457_v12 = vrot.slane %v5865_v39, %v5704_v43  ;;  %v1461_v39 = vrot.slane %v5867_v44, %v5707_v41  ;;  %v1470_v3 = vrot.slane %v5871_v50, %v5707_v41  ;;  %v1444_v50 = vsel %vm593_vm6, %v1443_v62, %v1439_v19 }
 0x3b9   :  { %v5869_v56 = vpop.xlane.xlu0 %1350  ;;  %v5875_v30 = vpop.xlane.xlu1 %1368 }
 0x3ba   :  { %v1466_v46 = vrot.slane %v5869_v56, %v5704_v43  ;;  %v1453_v56 = vsel %vm593_vm6, %v1452_v20, %v1448_v37  ;;  %v1479_v49 = vrot.slane %v5875_v30, %v5707_v41 }
 0x3bb   :  { %v1517_v30 = vsel %vm667_vm7, %v1453_v56, %v1444_v50 }
 0x3bc   :  { %v1471_v16 = vsel %vm593_vm6, %v1470_v3, %v1466_v46 }
 0x3bd   :  { %v5873_v57 = vpop.xlane.xlu0 %1361  ;;  %v5879_v25 = vpop.xlane.xlu1 %1379 }
 0x3be   :  { %v1475_v53 = vrot.slane %v5873_v57, %v5704_v43  ;;  %v1462_v57 = vsel %vm593_vm6, %v1461_v39, %v1457_v12  ;;  %v1093_v12 = vrot.slane %v5855_v59, %v5707_v41 }
 0x3bf   :  { %v1518_v54 = vsel %vm669_vm8, %v1462_v57, %v1517_v30 }
 0x3c0   :  { %v1480_v35 = vsel %vm593_vm6, %v1479_v49, %v1475_v53  ;;  %v1094_v39 = vsel %vm593_vm6, %v1093_v12, %v1089_v52 }
 0x3c1   :  { %v5877_v18 = vpop.xlane.xlu0 %1372  ;;  %v5883_v8 = vpop.xlane.xlu1 %1390 }
 0x3c2   :  { %v1484_v60 = vrot.slane %v5877_v18, %v5704_v43  ;;  %v1488_v18 = vrot.slane %v5879_v25, %v5707_v41 }
 0x3c4   :  { %v1489_v25 = vsel %vm593_vm6, %v1488_v18, %v1484_v60 }
 0x3c5   :  { %v5881_v7 = vpop.xlane.xlu0 %1383  ;;  %v5887_v29 = vpop.xlane.xlu1 %1401 }
 0x3c6   :  { %v1493_v15 = vrot.slane %v5881_v7, %v5704_v43  ;;  %v1497_v7 = vrot.slane %v5883_v8, %v5707_v41 }
 0x3c8   :  { %v1498_v8 = vsel %vm593_vm6, %v1497_v7, %v1493_v15 }
 0x3c9   :  { %v5885_v31 = vpop.xlane.xlu0 %1394  ;;  %v5891_v11 = vpop.xlane.xlu1 %1412 }
 0x3ca   :  { %v1502_v0 = vrot.slane %v5885_v31, %v5704_v43  ;;  %v1506_v31 = vrot.slane %v5887_v29, %v5707_v41 }
 0x3cc   :  { %v1507_v19 = vsel %vm593_vm6, %v1506_v31, %v1502_v0  ;;  %v1515_v0 = vrot.slane %v5891_v11, %v5707_v41 }
 0x3cd   :  { %v5889_v45 = vpop.xlane.xlu0 %1405  ;;  %v5895_v27 = vpop.xlane.xlu1 %1747 }
 0x3d1   :  { %v5893_v23 = vpop.xlane.xlu0 %1740  ;;  %v5899_v2 = vpop.xlane.xlu1 %1758 }
 0x3d2   :  { %v1862_v6 = vrot.slane %v5893_v23, %v5704_v43  ;;  %v1511_v23 = vrot.slane %v5889_v45, %v5704_v43 }
 0x3d5   :  { %v5897_v58 = vpop.xlane.xlu0 %1751  ;;  %v5903_v38 = vpop.xlane.xlu1 %1769 }
 0x3d6   :  { %v1871_v29 = vrot.slane %v5897_v58, %v5704_v43  ;;  %v1875_v58 = vrot.slane %v5899_v2, %v5707_v41  ;;  %v1884_v3 = vrot.slane %v5903_v38, %v5707_v41 }
 0x3d9   :  { %v5901_v22 = vpop.xlane.xlu0 %1762  ;;  %v5909_v33 = vpop.xlane.xlu1 %1780 }
 0x3da   :  { %v1880_v59 = vrot.slane %v5901_v22, %v5704_v43  ;;  %v1866_v22 = vrot.slane %v5895_v27, %v5707_v41  ;;  %v1893_v57 = vrot.slane %v5909_v33, %v5707_v41 }
 0x3dc   :  { %v1867_v27 = vsel %vm593_vm6, %v1866_v22, %v1862_v6  ;;  %v1885_v38 = vsel %vm593_vm6, %v1884_v3, %v1880_v59 }
 0x3dd   :  { %v5905_v13 = vpop.xlane.xlu0 %1773  ;;  %v5931_v63 = vpop.xlane.xlu1 %1791 }
 0x3de   :  { %v1889_v36 = vrot.slane %v5905_v13, %v5704_v43  ;;  %v1876_v13 = vsel %vm593_vm6, %v1875_v58, %v1871_v29 }
 0x3e0   :  { %v1894_v33 = vsel %vm593_vm6, %v1893_v57, %v1889_v36 }
 0x3e1   :  { %v5922_v55 = vpop.xlane.xlu0 %1784  ;;  %v5970_v10 = vpop.xlane.xlu1 %1802 }
 0x3e2   :  { %v1898_v60 = vrot.slane %v5922_v55, %v5704_v43  ;;  %v1902_v55 = vrot.slane %v5931_v63, %v5707_v41 }
 0x3e4   :  { %v1903_v63 = vsel %vm593_vm6, %v1902_v55, %v1898_v60 }
 0x3e5   :  { %v5954_v5 = vpop.xlane.xlu0 %1795  ;;  %v1814_v40 = vpop.xlane.xlu1 %1813 }
 0x3e6   :  { %v1907_v49 = vrot.slane %v5954_v5, %v5704_v43  ;;  %v1911_v5 = vrot.slane %v5970_v10, %v5707_v41  ;;  %v1920_v30 = vrot.slane %v1814_v40, %v5707_v41 }
 0x3e9   :  { %v1807_v17 = vpop.xlane.xlu0 %1806 }
 0x3ea   :  { %v1916_v15 = vrot.slane %v1807_v17, %v5704_v43  ;;  %v1825_v24 = vpop.xlane.xlu1 %1824 }
 0x3eb   :  { %v1929_v52 = vrot.slane %v1825_v24, %v5707_v41 }
 0x3ec   :  { %v1921_v31 = vsel %vm593_vm6, %v1920_v30, %v1916_v15 }
 0x3ed   :  { %v1818_v2 = vpop.xlane.xlu0 %1817 }
 0x3f1   :  { %v1829_v17 = vpop.xlane.xlu0 %1828 }
 0x3f2   :  { %v1934_v29 = vrot.slane %v1829_v17, %v5704_v43 }
 0x41f   :  { %v802_v21 = vpop.f32.mrf.mxu1 }
 0x420   :  { %809 = vst.msk [vmem:[#allocation2] sm:$0xff] %vm7398_vm5, %v802_v21  ;;  %v1519_v21 = vsel %vm671_vm9, %v1471_v16, %v1518_v54  ;;  %v1925_v16 = vrot.slane %v1818_v2, %v5704_v43 }
 0x421   :  { %v4299_v32 = vpop.f32.mrf.mxu1  ;;  %v1520_v20 = vsel %vm673_vm10, %v1480_v35, %v1519_v21 }
 0x422   :  { %v1521_v32 = vsel %vm675_vm11, %v1489_v25, %v1520_v20  ;;  %v1516_v25 = vsel %vm593_vm6, %v1515_v0, %v1511_v23  ;;  %v1930_v21 = vsel %vm593_vm6, %v1929_v52, %v1925_v16 }
 0x423   :  { %v805_v44 = vpop.f32.mrf.mxu1  ;;  %v1522_v1 = vsel %vm677_vm12, %v1498_v8, %v1521_v32 }
 0x424   :  { %811 = vst.msk [vmem:[#allocation2 + $0x8] sm:$0x1] %vm7387_vm2, %v805_v44  ;;  %v1523_v56 = vsel %vm7395_vm13, %v1507_v19, %v1522_v1  ;;  %vm7391_vm2 = vcmask 188544  }
 0x425   :  { %v4300_v34 = vpop.f32.mrf.mxu1 }
 0x426   :  { %v1940_v34 = vsel %vm667_vm7, %v1876_v13, %v1867_v27 }
 0x427   :  { %v1144_v37 = vpop.f32.mrf.mxu1  ;;  %v1941_v7 = vsel %vm669_vm8, %v1885_v38, %v1940_v34 }
 0x428   :  { %v5997_v42 = vadd.f32 %v1144_v37, %v1101_v51  ;;  %v1912_v51 = vsel %vm593_vm6, %v1911_v5, %v1907_v49  ;;  %v1942_v54 = vsel %vm671_vm9, %v1894_v33, %v1941_v7 }
 0x429   :  { %v4305_v47 = vpop.f32.mrf.mxu1  ;;  %v1943_v8 = vsel %vm673_vm10, %v1903_v63, %v1942_v54 }
 0x42a   :  { %v1151_v46 = vsel %vm7392_vm14, %v5997_v42, -inf  ;;  %v1944_v40 = vsel %vm675_vm11, %v1912_v51, %v1943_v8  ;;  %v1836_v47 = vpop.xlane.xlu1 %1835 }
 0x42b   :  { %v1147_v53 = vpop.f32.mrf.mxu1  ;;  %1152 = vmax.xlane.f32.xlu0 %v1151_v46  ;;  %v1945_v19 = vsel %vm677_vm12, %v1921_v31, %v1944_v40  ;;  %v1938_v59 = vrot.slane %v1836_v47, %v5707_v41 }
 0x42c   :  { %v6019_v62 = vadd.f32 %v1147_v53, %v1094_v39  ;;  %v1946_v46 = vsel %vm7395_vm13, %v1930_v21, %v1945_v19 }
 0x42d   :  { %v4306_v44 = vpop.f32.mrf.mxu1  ;;  %v1939_v1 = vsel %vm593_vm6, %v1938_v59, %v1934_v29 }
 0x42e   :  { %v1154_v45 = vsel %vm7388_vm15, %v6019_v62, -inf }
 0x42f   :  { %v1566_v50 = vpop.f32.mrf.mxu1  ;;  %1155 = vmax.xlane.f32.xlu1 %v1154_v45 }
 0x430   :  { %v1567_v18 = vadd.f32 %v1566_v50, %v1523_v56 }
 0x431   :  { %v4317_v35 = vpop.f32.mrf.mxu1 }
 0x432   :  { %v1573_v10 = vsel %vm7392_vm14, %v1567_v18, -inf }
 0x433   :  { %v1569_v11 = vpop.f32.mrf.mxu1  ;;  %1574 = vmax.xlane.f32.xlu0 %v1573_v10 }
 0x434   :  { %v1570_v37 = vadd.f32 %v1569_v11, %v1516_v25 }
 0x435   :  { %v4318_v12 = vpop.f32.mrf.mxu1 }
 0x436   :  { %v1576_v20 = vsel %vm7388_vm15, %v1570_v37, -inf }
 0x437   :  { %v1989_v32 = vpop.f32.mrf.mxu1  ;;  %1577 = vmax.xlane.f32.xlu1 %v1576_v20 }
 0x438   :  { %v1990_v6 = vadd.f32 %v1989_v32, %v1946_v46 }
 0x439   :  { %v4329_v39 = vpop.f32.mrf.mxu1 }
 0x43a   :  { %v1996_v53 = vsel %vm7392_vm14, %v1990_v6, -inf }
 0x43b   :  { %v1992_v58 = vpop.f32.mrf.mxu1  ;;  %1997 = vmax.xlane.f32.xlu0 %v1996_v53 }
 0x43c   :  { %v1993_v36 = vadd.f32 %v1992_v58, %v1939_v1 }
 0x43d   :  { %v4330_v56 = vpop.f32.mrf.mxu1 }
 0x43e   :  { %v1999_v23 = vsel %vm7388_vm15, %v1993_v36, -inf }
 0x43f   :  { %2000 = vmax.xlane.f32.xlu1 %v1999_v23 }
 0x4b4   :  { %v1153_v22 = vpop.xlane.xlu0 %1152 }
 0x4b5   :  { %v1157_v3 = vsub.f32 %v5997_v42, %v1153_v22 }
 0x4b7   :  { %v1159_v60 = vmul.f32 1.442695, %v1157_v3  ;;  %v4511_v3 = vld [vmem:[%s7337_s3 + $0x28] sm:$0xff]  }
 0x4b8   :  { %v1156_v2 = vpop.xlane.xlu1 %1155 }
 0x4b9   :  { %4455 = vpow2.f32 %v1159_v60  ;;  %v1158_v44 = vsub.f32 %v6019_v62, %v1156_v2  ;;  %v4512_v60 = vld [vmem:[%s7337_s3 + $0x20] sm:$0xff]   ;;  %v4513_v2 = vld [vmem:[%s7337_s3 + $0x18] sm:$0xff]  }
 0x4bb   :  { %v1161_v13 = vmul.f32 1.442695, %v1158_v44  ;;  %v4514_v44 = vld [vmem:[%s7337_s3 + $0x10] sm:$0xff]  }
 0x4bc   :  { %v1575_v57 = vpop.xlane.xlu0 %1574 }
 0x4bd   :  { %4457 = vpow2.f32 %v1161_v13  ;;  %v1579_v49 = vsub.f32 %v1567_v18, %v1575_v57  ;;  %v4515_v13 = vld [vmem:[%s7337_s3 + $0x8] sm:$0xff]  }
 0x4be   :  { %v4444_v57 = vld [vmem:[%s7339_s1 + $0x8] sm:$0x1f]   ;;  %s4537_s1 = smov 16  }
 0x4bf   :  { %v1581_v45 = vmul.f32 1.442695, %v1579_v49  ;;  %v4516_v49 = vld [vmem:[%s7337_s3] sm:$0xff]  }
 0x4c0   :  { %v1578_v27 = vpop.xlane.xlu1 %1577 }
 0x4c1   :  { %4459 = vpow2.f32 %v1581_v45  ;;  %v1580_v38 = vsub.f32 %v1570_v37, %v1578_v27 }
 0x4c3   :  { %v1583_v55 = vmul.f32 1.442695, %v1580_v38 }
 0x4c4   :  { %v1998_v15 = vpop.xlane.xlu0 %1997 }
 0x4c5   :  { %4461 = vpow2.f32 %v1583_v55  ;;  %v2002_v24 = vsub.f32 %v1990_v6, %v1998_v15 }
 0x4c6   :  { %v4456_v50 = vpop.eup %4455 }
 0x4c7   :  { %v2004_v33 = vmul.f32 1.442695, %v2002_v24  ;;  %v1163_v42 = vsel %vm7392_vm14, %v4456_v50, 0.0 }
 0x4c8   :  { %1164 = vadd.xlane.f32.xlu0 %v1163_v42  ;;  %v2001_v35 = vpop.xlane.xlu1 %2000  ;;  %v4445_v42 = vld [vmem:[%s7342_s5 + $0x8] sm:$0xff]  }
 0x4c9   :  { %4463 = vpow2.f32 %v2004_v33  ;;  %v2003_v7 = vsub.f32 %v1993_v36, %v2001_v35  ;;  %4338 = vmatpush3.bf16.msra.mxu1 %v4445_v42  ;;  %v4145_v35 = vld [vmem:[%s7338_s0 + $0xc8] sm:$0x1] }
 0x4ca   :  { %v4458_v5 = vpop.eup %4457  ;;  %4339 = vmatprep.subr.bf16.mxu1 %v7517_v26 }
 0x4cb   :  { %v1166_v62 = vsel %vm7388_vm15, %v4458_v5, 0.0  ;;  %v2006_v51 = vmul.f32 1.442695, %v2003_v7  ;;  %v4147_v7 = vld [vmem:[%s7338_s0 + $0xd8] sm:$0x1] }
 0x4cc   :  { %1167 = vadd.xlane.f32.xlu1 %v1166_v62 }
 0x4cd   :  { %4465 = vpow2.f32 %v2006_v51 }
 0x4ce   :  { %v4460_v16 = vpop.eup %4459 }
 0x4cf   :  { %v1585_v18 = vsel %vm7392_vm14, %v4460_v16, 0.0 }
 0x4d0   :  { %1586 = vadd.xlane.f32.xlu0 %v1585_v18 }
 0x4d2   :  { %v4462_v0 = vpop.eup %4461 }
 0x4d3   :  { %v1588_v34 = vsel %vm7388_vm15, %v4462_v0, 0.0 }
 0x4d4   :  { %1589 = vadd.xlane.f32.xlu1 %v1588_v34  ;;  %v4139_v34 = vld [vmem:[%s7338_s0 + $0x98] sm:$0x1] }
 0x4d6   :  { %v4464_v63 = vpop.eup %4463 }
 0x4d7   :  { %v2008_v30 = vsel %vm7392_vm14, %v4464_v63, 0.0 }
 0x4d8   :  { %2009 = vadd.xlane.f32.xlu0 %v2008_v30  ;;  %v4143_v30 = vld [vmem:[%s7338_s0 + $0xb8] sm:$0x1] }
 0x4da   :  { %v4466_v52 = vpop.eup %4465 }
 0x4db   :  { %v2011_v10 = vsel %vm7388_vm15, %v4466_v52, 0.0  ;;  %vm7393_vm15 = vcmask 261312  }
 0x4e5   :  { %1596 = vrot.lane.b32.xlu1 %v7518_v4, %s4533_s19 }
 0x4ee   :  { %1174 = vrot.lane.b32.xlu0 %v7518_v4, %s4534_s20 }
 0x509   :  { %2012 = vadd.xlane.f32.xlu1 %v2011_v10  ;;  %v4149_v10 = vld [vmem:[%s7338_s0 + $0xe8] sm:$0x1] }
 0x51a   :  { %2019 = vrot.lane.b32.xlu1 %v7518_v4, %s4535_s21 }
 0x551   :  { %v1165_v54 = vpop.xlane.xlu0 %1164 }
 0x555   :  { %v1168_v25 = vpop.xlane.xlu1 %1167 }
 0x556   :  { %4467 = vrcp.f32 %v1168_v25  ;;  %v4517_v25 = vld [vmem:[%s7340_s4] ss:$0 sm:$0xff] }
 0x557   :  { %4469 = vrcp.f32 %v1165_v54 }
 0x559   :  { %v1587_v11 = vpop.xlane.xlu0 %1586 }
 0x55d   :  { %v1590_v31 = vpop.xlane.xlu1 %1589 }
 0x55e   :  { %4471 = vrcp.f32 %v1590_v31 }
 0x55f   :  { %4473 = vrcp.f32 %v1587_v11 }
 0x561   :  { %v2010_v17 = vpop.xlane.xlu0 %2009  ;;  %v1597_v47 = vpop.permute.xlu1 %1596 }
 0x562   :  { %v1602_v4 = vand.u32 %v1597_v47, %v5747_v14  ;;  %4475 = vrcp.f32 %v2010_v17  ;;  %v4155_v47 = vld [vmem:[%s7338_s0 + $0x118] sm:$0x1] }
 0x563   :  { %v4468_v37 = vpop.eup %4467 }
 0x564   :  { %v4470_v21 = vpop.eup %4469  ;;  %v1172_v12 = vmul.f32 %v4468_v37, %v4458_v5  ;;  %v4446_v5 = vld [vmem:[%s7342_s5] sm:$0xff]   ;;  %v4151_v37 = vld [vmem:[%s7338_s0 + $0xf8] sm:$0x1] }
 0x565   :  { %v1175_v8 = vpop.permute.xlu0 %1174  ;;  %v1171_v19 = vmul.f32 %v4470_v21, %v4456_v50  ;;  %4340 = vmatpush3.bf16.msra.mxu1 %v4446_v5 }
 0x566   :  { %v1180_v40 = vand.u32 %v1175_v8, %v5747_v14  ;;  %4361 = vmatprep.subr.bf16.mxu1 %v7517_v26  ;;  %v4141_v8 = vld [vmem:[%s7338_s0 + $0xa8] sm:$0x1] }
 0x567   :  { %v1173_v20 = vpack.c.bf16 %v1172_v12, %v1171_v19  ;;  %v4153_v12 = vld [vmem:[%s7338_s0 + $0x108] sm:$0x1]  ;;  %v4142_v19 = vld [vmem:[%s7338_s0 + $0xb0] sm:$0xff] }
 0x568   :  { %4308 = vmatpush3.bf16.msra.mxu0 %v1180_v40  ;;  %v4140_v40 = vld [vmem:[%s7338_s0 + $0xa0] sm:$0xff] }
 0x569   :  { %4319 = vmatprep.subr.bf16.mxu0 %v7517_v26 }
 0x56b   :  { %v4472_v29 = vpop.eup %4471  ;;  %4310 = vmatmul.mubr.msk.bf16.vlgmr.msra.gmra.mxu0 %vm7392_vm14, %v1173_v20  ;;  %v4144_v20 = vld [vmem:[%s7338_s0 + $0xc0] sm:$0xff] }
 0x56c   :  { %v4474_v46 = vpop.eup %4473  ;;  %4320 = vmatpush3.bf16.msra.mxu0 %v1602_v4  ;;  %4321 = vmatprep.mubr.msk.bf16.mxu0 %vm7396_vm0, %v7517_v26  ;;  %v1594_v32 = vmul.f32 %v4472_v29, %v4462_v0  ;;  %v4146_v4 = vld [vmem:[%s7338_s0 + $0xd0] sm:$0xff]  ;;  %v4148_v29 = vld [vmem:[%s7338_s0 + $0xe0] sm:$0xff] }
 0x56d   :  { %4331 = vmatprep.subr.bf16.mxu0 %v7517_v26  ;;  %v1593_v6 = vmul.f32 %v4474_v46, %v4460_v16 }
 0x56f   :  { %v1595_v59 = vpack.c.bf16 %v1594_v32, %v1593_v6  ;;  %v4476_v58 = vpop.eup %4475  ;;  %v4150_v32 = vld [vmem:[%s7338_s0 + $0xf0] sm:$0xff] }
 0x570   :  { %v2016_v56 = vmul.f32 %v4476_v58, %v4464_v63  ;;  %v4138_v63 = vld [vmem:[%s7338_s0 + $0x90] sm:$0xff] }
 0x573   :  { %4322 = vmatmul.mubr.msk.bf16.vlgmr.msra.gmra.mxu0 %vm7392_vm14, %v1595_v59  ;;  %v4152_v59 = vld [vmem:[%s7338_s0 + $0x100] sm:$0xff] }
 0x574   :  { %4333 = vmatprep.mubr.msk.bf16.mxu0 %vm7396_vm0, %v7517_v26 }
 0x592   :  { %v2013_v39 = vpop.xlane.xlu1 %2012 }
 0x593   :  { %4477 = vrcp.f32 %v2013_v39 }
 0x596   :  { %v2020_v53 = vpop.permute.xlu1 %2019 }
 0x597   :  { %v2025_v1 = vand.u32 %v2020_v53, %v5747_v14  ;;  %v4154_v53 = vld [vmem:[%s7338_s0 + $0x110] sm:$0xff] }
 0x599   :  { %4332 = vmatpush3.bf16.msra.mxu0 %v2025_v1 }
 0x59a   :  { %4345 = vmatprep.subr.bf16.mxu0 %v7517_v26 }
 0x5a0   :  { %v4478_v36 = vpop.eup %4477 }
 0x5a1   :  { %v2017_v23 = vmul.f32 %v4478_v36, %v4466_v52 }
 0x5a3   :  { %v2018_v22 = vpack.c.bf16 %v2017_v23, %v2016_v56 }
 0x5a5   :  { %4334 = vmatmul.mubr.msk.bf16.vlgmr.msra.gmra.mxu0 %vm7392_vm14, %v2018_v22 }
 0x5a6   :  { %4346 = vmatpush3.bf16.msra.mxu0 %v4511_v3  ;;  %4357 = vmatprep.mubr.msk.bf16.mxu0 %vm7396_vm0, %v7517_v26 }
 0x5a7   :  { %4347 = vmatprep.subr.bf16.mxu0 %v7517_v26 }
 0x5aa   :  { %4348 = vmatpush3.bf16.msra.mxu0 %v4512_v60  ;;  %v7560_v60 = vld [vmem:[#allocation4_spill] sm:$0xff] }
 0x5ab   :  { %4349 = vmatprep.subr.bf16.mxu0 %v7517_v26 }
 0x5ae   :  { %4350 = vmatpush3.bf16.msra.mxu0 %v4513_v2  ;;  %v7561_v2 = vld [vmem:[#allocation5_spill] sm:$0xff] }
 0x5af   :  { %4351 = vmatprep.subr.bf16.mxu0 %v7517_v26 }
 0x5b2   :  { %4352 = vmatpush3.bf16.msra.mxu0 %v4514_v44 }
 0x5b3   :  { %4353 = vmatprep.subr.bf16.mxu0 %v7517_v26 }
 0x5b6   :  { %4354 = vmatpush3.bf16.msra.mxu0 %v4515_v13 }
 0x5b7   :  { %4355 = vmatprep.subr.bf16.mxu0 %v7517_v26 }
 0x5ba   :  { %4356 = vmatpush3.bf16.msra.mxu0 %v4516_v49  ;;  %v7562_v49 = vld [vmem:[#allocation11_spill] sm:$0xff] }
 0x5bb   :  { %4379 = vmatprep.subr.bf16.mxu0 %v7517_v26 }
 0x5bd   :  { %4358 = vmatmul.mubr.msk.bf16.vlgmr.msra.gmra.mxu0 %vm100_vm1, %v4444_v57  ;;  %vm7389_vm1 = vcmask 122944  }
 0x5be   :  { %4381 = vmatprep.mubr.msk.bf16.mxu0 %vm7396_vm0, %v7517_v26 }
 0x62b   :  { %v1216_v45 = vpop.f32.mrf.mxu0 }
 0x62c   :  { %1225 = vrot.lane.b32.xlu0 %v1216_v45, %s4536_s2 }
 0x62d   :  { %v4311_v27 = vpop.f32.mrf.mxu0 }
 0x62e   :  { %v7563_v27 = vld [vmem:[#allocation12_spill] sm:$0xff] }
 0x62f   :  { %v1219_v38 = vpop.f32.mrf.mxu0 }
 0x630   :  { %1227 = vrot.lane.b32.xlu1 %v1219_v38, %s4536_s2 }
 0x631   :  { %v4312_v55 = vpop.f32.mrf.mxu0 }
 0x633   :  { %v1638_v15 = vpop.f32.mrf.mxu0 }
 0x634   :  { %1647 = vrot.lane.b32.xlu0 %v1638_v15, %s4537_s1  ;;  %v7564_v15 = vld [vmem:[#allocation13_spill] sm:$0xff] }
 0x635   :  { %v4323_v24 = vpop.f32.mrf.mxu0 }
 0x637   :  { %v1641_v50 = vpop.f32.mrf.mxu0 }
 0x638   :  { %1649 = vrot.lane.b32.xlu1 %v1641_v50, %s4537_s1 }
 0x639   :  { %v4324_v33 = vpop.f32.mrf.mxu0 }
 0x665   :  { %v2061_v62 = vpop.f32.mrf.mxu0 }
 0x666   :  { %2070 = vrot.lane.b32.xlu0 %v2061_v62, %s4538_s26 }
 0x667   :  { %v4335_v16 = vpop.f32.mrf.mxu0 }
 0x669   :  { %v2064_v18 = vpop.f32.mrf.mxu0 }
 0x66a   :  { %2072 = vrot.lane.b32.xlu1 %v2064_v18, %s4538_s26 }
 0x66b   :  { %v4336_v0 = vpop.f32.mrf.mxu0 }
 0x66e   :  { %2225 = vperm.xlu1 %4436, %v4139_v34  }
 0x672   :  { %2222 = vperm.xlu1 %4436, %v4138_v63  }
 0x676   :  { %2237 = vperm.xlu1 %4436, %v4143_v30  }
 0x67a   :  { %2243 = vperm.xlu1 %4436, %v4145_v35  }
 0x67d   :  { %v2194_v51 = vpop.f32.mrf.mxu0 }
 0x67e   :  { %2249 = vperm.xlu1 %4436, %v4147_v7   ;;  %v2195_v11 = vadd.f32 %v4517_v25, %v2194_v51 }
 0x67f   :  { %v4359_v52 = vpop.f32.mrf.mxu0 }
 0x681   :  { %v2197_v54 = vpop.f32.mrf.mxu0 }
 0x682   :  { %v2198_v31 = vadd.f32 %v4517_v25, %v2197_v54  ;;  %2255 = vperm.xlu1 %4436, %v4149_v10  }
 0x683   :  { %v4360_v17 = vpop.f32.mrf.mxu0 }
 0x684   :  { %v6166_v21 = vpack.c.bf16 %v2198_v31, %v2195_v11 }
 0x686   :  { %7559 = vst [vmem:[#allocation17_spill] sm:$0xff] %v6166_v21  ;;  %2591 = vrot.lane.b32.xlu0 %v6166_v21, %s4524_s14  ;;  %2261 = vperm.xlu1 %4436, %v4151_v37  }
 0x68a   :  { %2231 = vperm.xlu0 %4435, %v4141_v8   ;;  %2267 = vperm.xlu1 %4436, %v4153_v12  }
 0x68e   :  { %2228 = vperm.xlu0 %4435, %v4140_v40   ;;  %2273 = vperm.xlu1 %4436, %v4155_v47  }
 0x692   :  { %2234 = vperm.xlu0 %4435, %v4142_v19  }
 0x696   :  { %2240 = vperm.xlu0 %4435, %v4144_v20  }
 0x69a   :  { %2246 = vperm.xlu0 %4435, %v4146_v4  }
 0x69e   :  { %2252 = vperm.xlu0 %4435, %v4148_v29   ;;  %v1226_v46 = vpop.permute.xlu0 %1225 }
 0x69f   :  { %1231 = vst.msk [vmem:[#allocation2] sm:$0xff] %vm593_vm6, %v1226_v46 }
 0x6a2   :  { %2258 = vperm.xlu0 %4435, %v4150_v32   ;;  %v1228_v6 = vpop.permute.xlu1 %1227 }
 0x6a3   :  { %1233 = vst.msk [vmem:[#allocation2 + $0x8] sm:$0x1] %vm7389_vm1, %v1228_v6  ;;  %vm7394_vm1 = vcmask 254144  }
 0x6a6   :  { %2264 = vperm.xlu0 %4435, %v4152_v59   ;;  %v1648_v39 = vpop.permute.xlu0 %1647 }
 0x6a7   :  { %1654 = vst.msk [vmem:[#allocation2] sm:$0xff] %vm7390_vm3, %v1648_v39  ;;  %vm2101_vm3 = vcmask 261120  }
 0x6aa   :  { %2270 = vperm.xlu0 %4435, %v4154_v53   ;;  %v1650_v1 = vpop.permute.xlu1 %1649 }
 0x6ab   :  { %1656 = vst.msk [vmem:[#allocation2 + $0x8] sm:$0x1] %vm7391_vm2, %v1650_v1 }
 0x6d8   :  { %v2071_v58 = vpop.permute.xlu0 %2070 }
 0x6d9   :  { %2077 = vst.msk [vmem:[#allocation2] sm:$0xff] %vm7393_vm15, %v2071_v58 }
 0x6dc   :  { %v2073_v36 = vpop.permute.xlu1 %2072 }
 0x6dd   :  { %2079 = vst.msk [vmem:[#allocation2 + $0x8] sm:$0x1] %vm7394_vm1, %v2073_v36 }
 0x6e0   :  { %v2080_v56 = vld [vmem:[#allocation2] sm:$0xff] }
 0x6e4   :  { %v2081_v23 = vld [vmem:[#allocation2 + $0x8] sm:$0x1] }
 0x6e5   :  { %v2082_v22 = vpack.c.bf16 %v2081_v23, %v2080_v56 }
 0x6e7   :  { %4342 = vmatmul.mubr.msk.bf16.vlgmr.msra.gmra.mxu1 %vm2101_vm3, %v2082_v22 }
 0x6e8   :  { %4363 = vmatprep.mubr.msk.bf16.mxu1 %vm7396_vm0, %v7517_v26 }
 0x6e9   :  { %v2226_v3 = vpop.permute.xlu1 %2225 }
 0x6ea   :  { %vm2278_vm2 = vcmp.eq.s32.totalorder %v2226_v3, %v7519_v28  ;;  %vm2279_vm14 = vcmp.eq.s32.totalorder %v2226_v3, %v7560_v60  ;;  %vm2280_vm15 = vcmp.eq.s32.totalorder %v2226_v3, %v7561_v2 }
 0x6eb   :  { %v6216_v44 = vsel %vm2278_vm2, 1.0, %v7517_v26  ;;  %v6219_v13 = vsel %vm2279_vm14, 1.0, %v7517_v26  ;;  %v6222_v57 = vsel %vm2280_vm15, 1.0, %v7517_v26 }
 0x6ec   :  { %v2440_v45 = vmul.f32 %v6216_v44, %v7562_v49  ;;  %v2441_v38 = vmul.f32 %v6219_v13, %v7563_v27  ;;  %v2442_v24 = vmul.f32 %v6222_v57, %v7564_v15 }
 0x6ed   :  { %v2223_v55 = vpop.permute.xlu1 %2222 }
 0x6ee   :  { %vm2275_vm1 = vcmp.eq.s32.totalorder %v2223_v55, %v7519_v28  ;;  %vm2276_vm2 = vcmp.eq.s32.totalorder %v2223_v55, %v7560_v60  ;;  %vm2277_vm14 = vcmp.eq.s32.totalorder %v2223_v55, %v7561_v2  ;;  %v2495_v50 = vsel %vm467_vm4, %v2440_v45, 0.0 }
 0x6ef   :  { %v6235_v33 = vsel %vm2275_vm1, 1.0, %v7517_v26  ;;  %v6238_v42 = vsel %vm2276_vm2, 1.0, %v7517_v26  ;;  %v2496_v5 = vsel %vm467_vm4, %v2441_v38, 0.0  ;;  %v6242_v62 = vsel %vm2277_vm14, 1.0, %v7517_v26 }
 0x6f0   :  { %v2497_v16 = vadd.f32 %v2496_v5, %v2495_v50  ;;  %v2437_v18 = vmul.f32 %v6235_v33, %v7562_v49  ;;  %v2438_v0 = vmul.f32 %v6238_v42, %v7563_v27  ;;  %v2498_v63 = vsel %vm467_vm4, %v2442_v24, 0.0 }
 0x6f1   :  { %v2238_v34 = vpop.permute.xlu1 %2237  ;;  %v2439_v35 = vmul.f32 %v6242_v62, %v7564_v15 }
 0x6f2   :  { %vm2290_vm15 = vcmp.eq.s32.totalorder %v2238_v34, %v7519_v28  ;;  %vm2291_vm1 = vcmp.eq.s32.totalorder %v2238_v34, %v7560_v60  ;;  %v2499_v30 = vadd.f32 %v2498_v63, %v2497_v16  ;;  %v2491_v7 = vadd.f32 %v2438_v0, %v2437_v18 }
 0x6f3   :  { %v6254_v51 = vsel %vm2290_vm15, 1.0, %v7517_v26  ;;  %v6257_v52 = vsel %vm2291_vm1, 1.0, %v7517_v26  ;;  %vm2292_vm13 = vcmp.eq.s32.totalorder %v2238_v34, %v7561_v2 }
 0x6f4   :  { %2500 = vadd.xlane.f32.xlu0 %v2499_v30  ;;  %v2492_v54 = vadd.f32 %v2491_v7, %v2439_v35  ;;  %v2452_v17 = vmul.f32 %v6254_v51, %v7562_v49  ;;  %v2453_v37 = vmul.f32 %v6257_v52, %v7563_v27  ;;  %v6281_v19 = vsel %vm2292_vm13, 1.0, %v7517_v26 }
 0x6f5   :  { %v2244_v10 = vpop.permute.xlu1 %2243  ;;  %v2454_v36 = vmul.f32 %v6281_v19, %v7564_v15 }
 0x6f6   :  { %vm2296_vm2 = vcmp.eq.s32.totalorder %v2244_v10, %v7519_v28  ;;  %vm2297_vm14 = vcmp.eq.s32.totalorder %v2244_v10, %v7560_v60  ;;  %2493 = vadd.xlane.f32.xlu1 %v2492_v54  ;;  %vm2298_vm15 = vcmp.eq.s32.totalorder %v2244_v10, %v7561_v2  ;;  %v2517_v46 = vsel %vm467_vm4, %v2452_v17, 0.0 }
 0x6f7   :  { %v6262_v25 = vsel %vm2296_vm2, 1.0, %v7517_v26  ;;  %v6265_v11 = vsel %vm2297_vm14, 1.0, %v7517_v26  ;;  %v6292_v29 = vsel %vm2298_vm15, 1.0, %v7517_v26  ;;  %v2518_v32 = vsel %vm467_vm4, %v2453_v37, 0.0 }
 0x6f8   :  { %v2592_v31 = vpop.permute.xlu0 %2591  ;;  %v2458_v40 = vmul.f32 %v6262_v25, %v7562_v49  ;;  %v2459_v47 = vmul.f32 %v6265_v11, %v7563_v27  ;;  %v2519_v56 = vadd.f32 %v2518_v32, %v2517_v46  ;;  %v2460_v22 = vmul.f32 %v6292_v29, %v7564_v15 }
 0x6f9   :  { %v2705_v8 = vsel %vm7398_vm5, %v2592_v31, 0  ;;  %v2250_v12 = vpop.permute.xlu1 %2249  ;;  %v2520_v16 = vsel %vm467_vm4, %v2454_v36, 0.0 }
 0x6fa   :  { %4362 = vmatpush3.bf16.xpose.msra.mxu1 %v2705_v8  ;;  %vm2302_vm1 = vcmp.eq.s32.totalorder %v2250_v12, %v7519_v28  ;;  %vm2303_vm2 = vcmp.eq.s32.totalorder %v2250_v12, %v7560_v60  ;;  %vm2304_vm14 = vcmp.eq.s32.totalorder %v2250_v12, %v7561_v2  ;;  %v2528_v59 = vsel %vm467_vm4, %v2458_v40, 0.0 }
 0x6fb   :  { %v6285_v20 = vsel %vm2302_vm1, 1.0, %v7517_v26  ;;  %v6288_v4 = vsel %vm2303_vm2, 1.0, %v7517_v26  ;;  %4367 = vmatprep.subr.bf16.mxu1 %v7517_v26  ;;  %v2529_v39 = vsel %vm467_vm4, %v2459_v47, 0.0  ;;  %v6303_v58 = vsel %vm2304_vm14, 1.0, %v7517_v26 }
 0x6fc   :  { %v2464_v53 = vmul.f32 %v6285_v20, %v7562_v49  ;;  %v2465_v1 = vmul.f32 %v6288_v4, %v7563_v27  ;;  %7565 = vst [vmem:[#allocation18_spill] sm:$0xff] %v6303_v58  ;;  %v2530_v3 = vadd.f32 %v2529_v39, %v2528_v59  ;;  %v2466_v55 = vmul.f32 %v6303_v58, %v7564_v15 }
 0x6fd   :  { %v2256_v6 = vpop.permute.xlu1 %2255  ;;  %v6332_v18 = vadd.f32 %v2520_v16, %v2519_v56  ;;  %v2531_v34 = vsel %vm467_vm4, %v2460_v22, 0.0 }
 0x6fe   :  { %vm2308_vm13 = vcmp.eq.s32.totalorder %v2256_v6, %v7519_v28  ;;  %vm2309_vm15 = vcmp.eq.s32.totalorder %v2256_v6, %v7560_v60  ;;  %vm2310_vm1 = vcmp.eq.s32.totalorder %v2256_v6, %v7561_v2  ;;  %v2539_v24 = vsel %vm467_vm4, %v2464_v53, 0.0 }
 0x6ff   :  { %v6311_v23 = vsel %vm2308_vm13, 1.0, %v7517_v26  ;;  %v6316_v45 = vsel %vm2309_vm15, 1.0, %v7517_v26  ;;  %v2540_v50 = vsel %vm467_vm4, %v2465_v1, 0.0  ;;  %v6325_v5 = vsel %vm2310_vm1, 1.0, %v7517_v26 }
 0x700   :  { %7566 = vst [vmem:[#allocation19_spill] sm:$0xff] %v6325_v5  ;;  %v2470_v0 = vmul.f32 %v6311_v23, %v7562_v49  ;;  %v2541_v63 = vadd.f32 %v2540_v50, %v2539_v24  ;;  %v2471_v30 = vmul.f32 %v6316_v45, %v7563_v27  ;;  %v6343_v10 = vadd.f32 %v2531_v34, %v2530_v3 }
 0x701   :  { %4364 = vmatmul.mubr.msk.bf16.vlgmr.msra.gmra.mxu1 %vm7398_vm5, %v6166_v21  ;;  %v2262_v38 = vpop.permute.xlu1 %2261  ;;  %v2542_v54 = vsel %vm467_vm4, %v2466_v55, 0.0  ;;  %v2472_v31 = vmul.f32 %v6325_v5, %v7564_v15 }
 0x702   :  { %vm2314_vm2 = vcmp.eq.s32.totalorder %v2262_v38, %v7519_v28  ;;  %4369 = vmatprep.mubr.msk.bf16.mxu1 %vm7396_vm0, %v7517_v26  ;;  %vm2315_vm14 = vcmp.eq.s32.totalorder %v2262_v38, %v7560_v60  ;;  %vm2316_vm13 = vcmp.eq.s32.totalorder %v2262_v38, %v7561_v2  ;;  %v2550_v47 = vsel %vm467_vm4, %v2470_v0, 0.0 }
 0x703   :  { %v6341_v35 = vsel %vm2314_vm2, 1.0, %v7517_v26  ;;  %v6349_v17 = vsel %vm2315_vm14, 1.0, %v7517_v26  ;;  %v6355_v37 = vsel %vm2316_vm13, 1.0, %v7517_v26  ;;  %v6369_v6 = vadd.f32 %v2542_v54, %v2541_v63 }
 0x704   :  { %7567 = vst [vmem:[#allocation20_spill] sm:$0xff] %v6341_v35  ;;  %7568 = vst [vmem:[#allocation21_spill] sm:$0xff] %v6349_v17  ;;  %v2551_v59 = vsel %vm467_vm4, %v2471_v30, 0.0  ;;  %v2553_v1 = vsel %vm467_vm4, %v2472_v31, 0.0  ;;  %v6377_v36 = vmul.f32 %v6341_v35, %v7562_v49  ;;  %v6381_v56 = vmul.f32 %v6349_v17, %v7563_v27 }
 0x705   :  { %v2232_v7 = vpop.permute.xlu0 %2231  ;;  %7569 = vst [vmem:[#allocation22_spill] sm:$0xff] %v6355_v37  ;;  %v2268_v40 = vpop.permute.xlu1 %2267  ;;  %v2552_v38 = vadd.f32 %v2551_v59, %v2550_v47  ;;  %v6394_v55 = vmul.f32 %v6355_v37, %v7564_v15 }
 0x706   :  { %vm2284_vm15 = vcmp.eq.s32.totalorder %v2232_v7, %v7519_v28  ;;  %vm2285_vm1 = vcmp.eq.s32.totalorder %v2232_v7, %v7560_v60  ;;  %vm2286_vm0 = vcmp.eq.s32.totalorder %v2232_v7, %v7561_v2  ;;  %v2561_v35 = vsel %vm467_vm4, %v6377_v36, 0.0 }
 0x707   :  { %v6358_v8 = vsel %vm2284_vm15, 1.0, %v7517_v26  ;;  %v6361_v12 = vsel %vm2285_vm1, 1.0, %v7517_v26  ;;  %v6365_v46 = vsel %vm2286_vm0, 1.0, %v7517_v26  ;;  %vm2320_vm0 = vcmp.eq.s32.totalorder %v2268_v40, %v7519_v28 }
 0x708   :  { %v2446_v32 = vmul.f32 %v6358_v8, %v7562_v49  ;;  %v2447_v53 = vmul.f32 %v6361_v12, %v7563_v27  ;;  %v2448_v3 = vmul.f32 %v6365_v46, %v7564_v15  ;;  %vm2321_vm15 = vcmp.eq.s32.totalorder %v2268_v40, %v7560_v60 }
 0x709   :  { %v2229_v39 = vpop.permute.xlu0 %2228  ;;  %vm2322_vm1 = vcmp.eq.s32.totalorder %v2268_v40, %v7561_v2  ;;  %v6403_v16 = vsel %vm2320_vm0, 1.0, %v7517_v26  ;;  %v2562_v5 = vsel %vm467_vm4, %v6381_v56, 0.0 }
 0x70a   :  { %vm2281_vm2 = vcmp.eq.s32.totalorder %v2229_v39, %v7519_v28  ;;  %vm2282_vm14 = vcmp.eq.s32.totalorder %v2229_v39, %v7560_v60  ;;  %vm2283_vm13 = vcmp.eq.s32.totalorder %v2229_v39, %v7561_v2  ;;  %v2506_v50 = vsel %vm467_vm4, %v2446_v32, 0.0  ;;  %7570 = vst [vmem:[#allocation23_spill] sm:$0xff] %v6403_v16 }
 0x70b   :  { %v6388_v22 = vsel %vm2281_vm2, 1.0, %v7517_v26  ;;  %v6399_v24 = vsel %vm2282_vm14, 1.0, %v7517_v26  ;;  %v6406_v0 = vsel %vm2283_vm13, 1.0, %v7517_v26  ;;  %v2507_v63 = vsel %vm467_vm4, %v2447_v53, 0.0 }
 0x70c   :  { %v2443_v30 = vmul.f32 %v6388_v22, %v7562_v49  ;;  %v2508_v7 = vadd.f32 %v2507_v63, %v2506_v50  ;;  %v2509_v47 = vsel %vm467_vm4, %v2448_v3, 0.0  ;;  %v2444_v32 = vmul.f32 %v6399_v24, %v7563_v27  ;;  %v2274_v63 = vpop.permute.xlu1 %2273 }
 0x70d   :  { %v2235_v34 = vpop.permute.xlu0 %2234  ;;  %v6438_v3 = vsel %vm2322_vm1, 1.0, %v7517_v26  ;;  %vm2327_vm1 = vcmp.eq.s32.totalorder %v2274_v63, %v7560_v60  ;;  %v2482_v56 = vmul.f32 %v6403_v16, %v7562_v49 }
 0x70e   :  { %vm2287_vm2 = vcmp.eq.s32.totalorder %v2235_v34, %v7519_v28  ;;  %vm2288_vm5 = vcmp.eq.s32.totalorder %v2235_v34, %v7560_v60  ;;  %vm2289_vm14 = vcmp.eq.s32.totalorder %v2235_v34, %v7561_v2  ;;  %v2510_v39 = vadd.f32 %v2509_v47, %v2508_v7  ;;  %7573 = vst [vmem:[#allocation27_spill] sm:$0xff] %v6438_v3 }
 0x70f   :  { %v6415_v54 = vsel %vm2287_vm2, 1.0, %v7517_v26  ;;  %v6418_v31 = vsel %vm2288_vm5, 1.0, %v7517_v26  ;;  %v6424_v59 = vsel %vm2289_vm14, 1.0, %v7517_v26  ;;  %v6433_v34 = vsel %vm2321_vm15, 1.0, %v7517_v26 }
 0x710   :  { %7571 = vst [vmem:[#allocation24_spill] sm:$0xff] %v6418_v31  ;;  %v2449_v53 = vmul.f32 %v6415_v54, %v7562_v49  ;;  %v2450_v50 = vmul.f32 %v6418_v31, %v7563_v27  ;;  %7572 = vst [vmem:[#allocation25_spill] sm:$0xff] %v6433_v34  ;;  %v2445_v7 = vmul.f32 %v6406_v0, %v7564_v15  ;;  %2511 = vadd.xlane.f32.xlu1 %v2510_v39 }
 0x711   :  { %v2241_v14 = vpop.permute.xlu0 %2240  ;;  %v2502_v47 = vadd.f32 %v2444_v32, %v2443_v30  ;;  %v2451_v37 = vmul.f32 %v6424_v59, %v7564_v15  ;;  %vm2326_vm15 = vcmp.eq.s32.totalorder %v2274_v63, %v7519_v28  ;;  %vm2328_vm2 = vcmp.eq.s32.totalorder %v2274_v63, %v7561_v2 }
 0x712   :  { %vm2293_vm5 = vcmp.eq.s32.totalorder %v2241_v14, %v7519_v28  ;;  %vm2294_vm0 = vcmp.eq.s32.totalorder %v2241_v14, %v7560_v60  ;;  %vm2295_vm13 = vcmp.eq.s32.totalorder %v2241_v14, %v7561_v2  ;;  %v2513_v9 = vadd.f32 %v2450_v50, %v2449_v53 }
 0x713   :  { %v6446_v61 = vsel %vm2293_vm5, 1.0, %v7517_v26  ;;  %v6449_v40 = vsel %vm2294_vm0, 1.0, %v7517_v26  ;;  %v2503_v48 = vadd.f32 %v2502_v47, %v2445_v7  ;;  %v6455_v30 = vsel %vm2295_vm13, 1.0, %v7517_v26 }
 0x714   :  { %7574 = vst [vmem:[#allocation7_spill] sm:$0xff] %v6455_v30  ;;  %v2455_v32 = vmul.f32 %v6446_v61, %v7562_v49  ;;  %v2456_v14 = vmul.f32 %v6449_v40, %v7563_v27  ;;  %v2514_v53 = vadd.f32 %v2513_v9, %v2451_v37  ;;  %v2554_v50 = vadd.f32 %v2553_v1, %v2552_v38 }
 0x715   :  { %2504 = vadd.xlane.f32.xlu0 %v2503_v48  ;;  %v2247_v39 = vpop.permute.xlu0 %2246  ;;  %2522 = vadd.xlane.f32.xlu1 %v6332_v18  ;;  %v6468_v47 = vsel %vm2326_vm15, 1.0, %v7517_v26  ;;  %v2457_v9 = vmul.f32 %v6455_v30, %v7564_v15  ;;  %v6479_v18 = vsel %vm2327_vm1, 1.0, %v7517_v26  ;;  %v2563_v30 = vadd.f32 %v2562_v5, %v2561_v35 }
 0x716   :  { %vm2299_vm14 = vcmp.eq.s32.totalorder %v2247_v39, %v7519_v28  ;;  %vm2300_vm5 = vcmp.eq.s32.totalorder %v2247_v39, %v7560_v60  ;;  %vm2301_vm0 = vcmp.eq.s32.totalorder %v2247_v39, %v7561_v2  ;;  %v2524_v7 = vadd.f32 %v2456_v14, %v2455_v32  ;;  %7575 = vst [vmem:[#allocation30_spill] sm:$0xff] %v6468_v47 }
 0x717   :  { %v6471_v17 = vsel %vm2299_vm14, 1.0, %v7517_v26  ;;  %v6474_v48 = vsel %vm2300_vm5, 1.0, %v7517_v26  ;;  %7577 = vst [vmem:[#allocation31_spill] sm:$0xff] %v6479_v18  ;;  %v6482_v37 = vsel %vm2301_vm0, 1.0, %v7517_v26  ;;  %v6491_v32 = vsel %vm2328_vm2, 1.0, %v7517_v26 }
 0x718   :  { %7576 = vst [vmem:[#allocation3_spill] sm:$0xff] %v6474_v48  ;;  %7578 = vst [vmem:[#allocation32_spill] sm:$0xff] %v6482_v37  ;;  %v2461_v1 = vmul.f32 %v6471_v17, %v7562_v49  ;;  %v2462_v38 = vmul.f32 %v6474_v48, %v7563_v27  ;;  %v2525_v39 = vadd.f32 %v2524_v7, %v2457_v9 }
 0x719   :  { %7579 = vst [vmem:[#allocation33_spill] sm:$0xff] %v6491_v32  ;;  %2515 = vadd.xlane.f32.xlu0 %v2514_v53  ;;  %v2253_v14 = vpop.permute.xlu0 %2252  ;;  %2533 = vadd.xlane.f32.xlu1 %v6343_v10  ;;  %v2463_v36 = vmul.f32 %v6482_v37, %v7564_v15  ;;  %v2564_v37 = vsel %vm467_vm4, %v6394_v55, 0.0  ;;  %v2484_v16 = vmul.f32 %v6438_v3, %v7564_v15  ;;  %v2572_v55 = vsel %vm467_vm4, %v2482_v56, 0.0 }
 0x71a   :  { %vm2305_vm13 = vcmp.eq.s32.totalorder %v2253_v14, %v7519_v28  ;;  %vm2306_vm15 = vcmp.eq.s32.totalorder %v2253_v14, %v7560_v60  ;;  %vm2307_vm1 = vcmp.eq.s32.totalorder %v2253_v14, %v7561_v2  ;;  %v2535_v63 = vadd.f32 %v2462_v38, %v2461_v1 }
 0x71b   :  { %v6502_v58 = vsel %vm2305_vm13, 1.0, %v7517_v26  ;;  %v6505_v53 = vsel %vm2306_vm15, 1.0, %v7517_v26  ;;  %v6512_v10 = vsel %vm2307_vm1, 1.0, %v7517_v26  ;;  %v2483_v1 = vmul.f32 %v6433_v34, %v7563_v27 }
 0x71c   :  { %7580 = vst [vmem:[#allocation36_spill] sm:$0xff] %v6502_v58  ;;  %7581 = vst [vmem:[#allocation38_spill] sm:$0xff] %v6505_v53  ;;  %v2467_v7 = vmul.f32 %v6502_v58, %v7562_v49  ;;  %v2468_v9 = vmul.f32 %v6505_v53, %v7563_v27  ;;  %v2536_v14 = vadd.f32 %v2535_v63, %v2463_v36 }
 0x71d   :  { %7582 = vst [vmem:[#allocation8_spill] sm:$0xff] %v6512_v10  ;;  %2526 = vadd.xlane.f32.xlu0 %v2525_v39  ;;  %v2259_v38 = vpop.permute.xlu0 %2258  ;;  %2544 = vadd.xlane.f32.xlu1 %v6369_v6  ;;  %v2469_v35 = vmul.f32 %v6512_v10, %v7564_v15  ;;  %v2565_v3 = vadd.f32 %v2564_v37, %v2563_v30 }
 0x71e   :  { %vm2311_vm2 = vcmp.eq.s32.totalorder %v2259_v38, %v7519_v28  ;;  %vm2312_vm14 = vcmp.eq.s32.totalorder %v2259_v38, %v7560_v60  ;;  %vm2313_vm5 = vcmp.eq.s32.totalorder %v2259_v38, %v7561_v2  ;;  %v2546_v53 = vadd.f32 %v2468_v9, %v2467_v7 }
 0x71f   :  { %v6529_v39 = vsel %vm2311_vm2, 1.0, %v7517_v26  ;;  %v6532_v5 = vsel %vm2312_vm14, 1.0, %v7517_v26  ;;  %v6538_v6 = vsel %vm2313_vm5, 1.0, %v7517_v26  ;;  %v2573_v7 = vsel %vm467_vm4, %v2483_v1, 0.0 }
 0x720   :  { %7583 = vst [vmem:[#allocation10_spill] sm:$0xff] %v6532_v5  ;;  %7584 = vst [vmem:[#allocation9_spill] sm:$0xff] %v6538_v6  ;;  %v2473_v63 = vmul.f32 %v6529_v39, %v7562_v49  ;;  %v2474_v36 = vmul.f32 %v6532_v5, %v7563_v27  ;;  %v2547_v38 = vadd.f32 %v2546_v53, %v2469_v35  ;;  %vm2147_vm5 = vcmask 253952  }
 0x721   :  { %2537 = vadd.xlane.f32.xlu0 %v2536_v14  ;;  %v2265_v9 = vpop.permute.xlu0 %2264  ;;  %v2488_v34 = vmul.f32 %v6468_v47, %v7562_v49  ;;  %v2489_v56 = vmul.f32 %v6479_v18, %v7563_v27  ;;  %2555 = vadd.xlane.f32.xlu1 %v2554_v50  ;;  %v2475_v30 = vmul.f32 %v6538_v6, %v7564_v15  ;;  %v2575_v50 = vsel %vm467_vm4, %v2484_v16, 0.0 }
 0x722   :  { %vm2317_vm0 = vcmp.eq.s32.totalorder %v2265_v9, %v7519_v28  ;;  %vm2318_vm13 = vcmp.eq.s32.totalorder %v2265_v9, %v7560_v60  ;;  %vm2319_vm15 = vcmp.eq.s32.totalorder %v2265_v9, %v7561_v2  ;;  %v2557_v5 = vadd.f32 %v2474_v36, %v2473_v63 }
 0x723   :  { %v6553_v1 = vsel %vm2317_vm0, 1.0, %v7517_v26  ;;  %v6556_v53 = vsel %vm2318_vm13, 1.0, %v7517_v26  ;;  %v2574_v37 = vadd.f32 %v2573_v7, %v2572_v55  ;;  %v6561_v14 = vsel %vm2319_vm15, 1.0, %v7517_v26 }
 0x724   :  { %7585 = vst [vmem:[#allocation39_spill] sm:$0xff] %v6553_v1  ;;  %7586 = vst [vmem:[#allocation40_spill] sm:$0xff] %v6556_v53  ;;  %v2479_v35 = vmul.f32 %v6553_v1, %v7562_v49  ;;  %v2480_v63 = vmul.f32 %v6556_v53, %v7563_v27  ;;  %v2558_v9 = vadd.f32 %v2557_v5, %v2475_v30  ;;  %v2583_v6 = vsel %vm467_vm4, %v2488_v34, 0.0 }
 0x725   :  { %7587 = vst [vmem:[#allocation41_spill] sm:$0xff] %v6561_v14  ;;  %2548 = vadd.xlane.f32.xlu0 %v2547_v38  ;;  %v2271_v36 = vpop.permute.xlu0 %2270  ;;  %v2490_v18 = vmul.f32 %v6491_v32, %v7564_v15  ;;  %v2584_v55 = vsel %vm467_vm4, %v2489_v56, 0.0  ;;  %2566 = vadd.xlane.f32.xlu1 %v2565_v3  ;;  %v2576_v38 = vadd.f32 %v2575_v50, %v2574_v37  ;;  %vm7591_vm0 = vcmask 1047559  }
 0x726   :  { %vm2323_vm1 = vcmp.eq.s32.totalorder %v2271_v36, %v7519_v28  ;;  %vm2324_vm2 = vcmp.eq.s32.totalorder %v2271_v36, %v7560_v60  ;;  %vm2325_vm14 = vcmp.eq.s32.totalorder %v2271_v36, %v7561_v2  ;;  %v2568_v16 = vadd.f32 %v2480_v63, %v2479_v35 }
 0x727   :  { %v6576_v7 = vsel %vm2323_vm1, 1.0, %v7517_v26  ;;  %v6579_v5 = vsel %vm2324_vm2, 1.0, %v7517_v26  ;;  %v2481_v34 = vmul.f32 %v6561_v14, %v7564_v15  ;;  %v6584_v56 = vsel %vm2325_vm14, 1.0, %v7517_v26 }
 0x728   :  { %7588 = vst [vmem:[#allocation42_spill] sm:$0xff] %v6576_v7  ;;  %7589 = vst [vmem:[#allocation43_spill] sm:$0xff] %v6579_v5  ;;  %v2585_v3 = vadd.f32 %v2584_v55, %v2583_v6  ;;  %v2485_v28 = vmul.f32 %v6576_v7, %v7562_v49  ;;  %v2486_v60 = vmul.f32 %v6579_v5, %v7563_v27  ;;  %v2586_v35 = vsel %vm467_vm4, %v2490_v18, 0.0 }
 0x729   :  { %7590 = vst [vmem:[#allocation44_spill] sm:$0xff] %v6584_v56  ;;  %2559 = vadd.xlane.f32.xlu0 %v2558_v9  ;;  %v2569_v2 = vadd.f32 %v2568_v16, %v2481_v34  ;;  %2577 = vadd.xlane.f32.xlu1 %v2576_v38  ;;  %v2487_v37 = vmul.f32 %v6584_v56, %v7564_v15  ;;  %v4130_v16 = vld [vmem:[%s7343_s6] ss:$0 sm:$0xff]  ;;  %vm7592_vm13 = vcmask 72704   ;;  %vm7593_vm15 = vcmask 65536  }
 0x72a   :  { %v2579_v30 = vadd.f32 %v2486_v60, %v2485_v28  ;;  %v2587_v50 = vadd.f32 %v2586_v35, %v2585_v3  ;;  %vm7595_vm1 = vmmov %vm7592_vm13  ;;  %vm7660_vm14 = vcmask 64512  }
 0x72b   :  { %vm7597_vm2 = vmmov %vm7593_vm15 }
 0x72c   :  { %v2580_v63 = vadd.f32 %v2579_v30, %v2487_v37 }
 0x72d   :  { %2570 = vadd.xlane.f32.xlu0 %v2569_v2  ;;  %2588 = vadd.xlane.f32.xlu1 %v2587_v50 }
 0x731   :  { %2581 = vadd.xlane.f32.xlu0 %v2580_v63 }
 0x77d   :  { %v2501_v36 = vpop.xlane.xlu0 %2500 }
 0x77e   :  { %v2618_v14 = vrot.slane %v2501_v36, %v5707_v41 }
 0x77f   :  { %v2494_v6 = vpop.xlane.xlu1 %2493 }
 0x780   :  { %v2614_v56 = vrot.slane %v2494_v6, %v5704_v43 }
 0x799   :  { %v2512_v49 = vpop.xlane.xlu1 %2511 }
 0x79e   :  { %v2505_v55 = vpop.xlane.xlu0 %2504  ;;  %v2523_v26 = vpop.xlane.xlu1 %2522 }
 0x7a2   :  { %v2516_v27 = vpop.xlane.xlu0 %2515  ;;  %v2534_v9 = vpop.xlane.xlu1 %2533 }
 0x7a3   :  { %v2645_v5 = vrot.slane %v2534_v9, %v5707_v41 }
 0x7a6   :  { %v2527_v18 = vpop.xlane.xlu0 %2526  ;;  %v2545_v38 = vpop.xlane.xlu1 %2544 }
 0x7a7   :  { %v2139_v34 = vpop.f32.mrf.mxu1  ;;  %v2654_v6 = vrot.slane %v2545_v38, %v5707_v41 }
 0x7a8   :  { %v2140_v15 = vadd.f32 %v4130_v16, %v2139_v34  ;;  %v2623_v34 = vrot.slane %v2505_v55, %v5704_v43 }
 0x7a9   :  { %v4343_v3 = vpop.f32.mrf.mxu1 }
 0x7aa   :  { %v2538_v28 = vpop.xlane.xlu0 %2537  ;;  %2146 = vst.msk [vmem:[%s7344_s7] sm:$0xff] %vm2101_vm3, %v2140_v15  ;;  %v2556_v30 = vpop.xlane.xlu1 %2555  ;;  %v2632_v3 = vrot.slane %v2516_v27, %v5704_v43  ;;  %v2627_v15 = vrot.slane %v2512_v49, %v5707_v41 }
 0x7ab   :  { %v2142_v60 = vpop.f32.mrf.mxu1  ;;  %v2663_v7 = vrot.slane %v2556_v30, %v5707_v41 }
 0x7ac   :  { %v2143_v2 = vadd.f32 %v4130_v16, %v2142_v60  ;;  %v2641_v16 = vrot.slane %v2527_v18, %v5704_v43  ;;  %v2636_v60 = vrot.slane %v2523_v26, %v5707_v41  ;;  %v2619_v26 = vsel %vm593_vm6, %v2618_v14, %v2614_v56 }
 0x7ad   :  { %v4344_v35 = vpop.f32.mrf.mxu1 }
 0x7ae   :  { %v2549_v37 = vpop.xlane.xlu0 %2548  ;;  %2148 = vst.msk [vmem:[%s7344_s7 + $0x8] sm:$0x1] %vm2147_vm5, %v2143_v2  ;;  %v2567_v63 = vpop.xlane.xlu1 %2566  ;;  %v2650_v35 = vrot.slane %v2538_v28, %v5704_v43  ;;  %v2628_v2 = vsel %vm593_vm6, %v2627_v15, %v2623_v34  ;;  %v2637_v27 = vsel %vm593_vm6, %v2636_v60, %v2632_v3  ;;  %v2646_v28 = vsel %vm593_vm6, %v2645_v5, %v2641_v16 }
 0x7af   :  { %v2659_v55 = vrot.slane %v2549_v37, %v5704_v43  ;;  %v2692_v34 = vsel %vm667_vm7, %v2628_v2, %v2619_v26  ;;  %v2672_v37 = vrot.slane %v2567_v63, %v5707_v41 }
 0x7b0   :  { %v2655_v9 = vsel %vm593_vm6, %v2654_v6, %v2650_v35  ;;  %v2693_v3 = vsel %vm669_vm8, %v2637_v27, %v2692_v34 }
 0x7b1   :  { %v2664_v38 = vsel %vm593_vm6, %v2663_v7, %v2659_v55  ;;  %v2694_v14 = vsel %vm671_vm9, %v2646_v28, %v2693_v3 }
 0x7b2   :  { %v2560_v50 = vpop.xlane.xlu0 %2559  ;;  %v2578_v18 = vpop.xlane.xlu1 %2577  ;;  %v2695_v56 = vsel %vm673_vm10, %v2655_v9, %v2694_v14 }
 0x7b3   :  { %v2668_v49 = vrot.slane %v2560_v50, %v5704_v43  ;;  %v2681_v50 = vrot.slane %v2578_v18, %v5707_v41  ;;  %v2696_v15 = vsel %vm675_vm11, %v2664_v38, %v2695_v56 }
 0x7b5   :  { %v2673_v5 = vsel %vm593_vm6, %v2672_v37, %v2668_v49 }
 0x7b6   :  { %v2571_v32 = vpop.xlane.xlu0 %2570  ;;  %v2589_v16 = vpop.xlane.xlu1 %2588  ;;  %v2697_v63 = vsel %vm677_vm12, %v2673_v5, %v2696_v15 }
 0x7b7   :  { %v2677_v36 = vrot.slane %v2571_v32, %v5704_v43  ;;  %v2690_v55 = vrot.slane %v2589_v16, %v5707_v41  ;;  %v7599_v16 = vld [vmem:[#allocation15_spill] sm:$0xff] }
 0x7b9   :  { %v2682_v32 = vsel %vm593_vm6, %v2681_v50, %v2677_v36 }
 0x7ba   :  { %v2582_v30 = vpop.xlane.xlu0 %2581  ;;  %v2698_v7 = vsel %vm7591_vm0, %v2682_v32, %v2697_v63  ;;  %v7598_v32 = vld [vmem:[#allocation14_spill] sm:$0xff]  ;;  %v2824_v63 = vmul.f32 %v6238_v42, %v7599_v16  ;;  %vm7661_vm0 = vmmov %vm7595_vm1 }
 0x7bb   :  { %v2686_v60 = vrot.slane %v2582_v30, %v5704_v43  ;;  %v2823_v15 = vmul.f32 %v6235_v33, %v7598_v32  ;;  %v2853_v41 = vmul.f32 %v6502_v58, %v7598_v32 }
 0x7bd   :  { %v2691_v49 = vsel %vm593_vm6, %v2690_v55, %v2686_v60  ;;  %v2826_v60 = vmul.f32 %v6216_v44, %v7598_v32  ;;  %v2827_v55 = vmul.f32 %v6219_v13, %v7599_v16 }
 0x7c1   :  { %v2741_v35 = vpop.f32.mrf.mxu1 }
 0x7c2   :  { %v2742_v2 = vadd.f32 %v2741_v35, %v2698_v7  ;;  %v2877_v7 = vadd.f32 %v2824_v63, %v2823_v15  ;;  %v2829_v35 = vmul.f32 %v6388_v22, %v7598_v32  ;;  %v2836_v15 = vmul.f32 %v6418_v31, %v7599_v16 }
 0x7c3   :  { %v4365_v27 = vpop.f32.mrf.mxu1 }
 0x7c4   :  { %v2748_v6 = vsel %vm7592_vm13, %v2742_v2, -inf  ;;  %v2832_v27 = vmul.f32 %v6358_v8, %v7598_v32  ;;  %vm7662_vm13 = vmmov 0  }
 0x7c5   :  { %v2744_v18 = vpop.f32.mrf.mxu1  ;;  %2749 = vmax.xlane.f32.xlu0 %v2748_v6  ;;  %v2833_v6 = vmul.f32 %v6361_v12, %v7599_v16 }
 0x7c6   :  { %v2745_v26 = vadd.f32 %v2744_v18, %v2691_v49  ;;  %v7600_v49 = vld [vmem:[#allocation16_spill] sm:$0xff] }
 0x7c7   :  { %v4366_v28 = vpop.f32.mrf.mxu1  ;;  %v2825_v18 = vmul.f32 %v6242_v62, %v7600_v49  ;;  %v2834_v63 = vmul.f32 %v6365_v46, %v7600_v49 }
 0x7c8   :  { %v2751_v36 = vsel %vm7593_vm15, %v2745_v26, -inf  ;;  %v2839_v28 = vmul.f32 %v6257_v52, %v7599_v16  ;;  %vm7663_vm15 = vmmov %vm7660_vm14 }
 0x7c9   :  { %2752 = vmax.xlane.f32.xlu1 %v2751_v36  ;;  %v2878_v36 = vadd.f32 %v2877_v7, %v2825_v18  ;;  %v2845_v18 = vmul.f32 %v6265_v11, %v7599_v16 }
 0x84e   :  { %v2750_v34 = vpop.xlane.xlu0 %2749 }
 0x84f   :  { %v2754_v9 = vsub.f32 %v2742_v2, %v2750_v34  ;;  %v2830_v2 = vmul.f32 %v6399_v24, %v7599_v16 }
 0x851   :  { %v2756_v37 = vmul.f32 1.442695, %v2754_v9  ;;  %v2888_v34 = vadd.f32 %v2830_v2, %v2829_v35  ;;  %v2881_v9 = vsel %vm467_vm4, %v2826_v60, 0.0  ;;  %v2904_v35 = vsel %vm467_vm4, %v2839_v28, 0.0 }
 0x852   :  { %v2753_v3 = vpop.xlane.xlu1 %2752  ;;  %v2837_v28 = vmul.f32 %v6424_v59, %v7600_v49 }
 0x853   :  { %4479 = vpow2.f32 %v2756_v37  ;;  %v2755_v38 = vsub.f32 %v2745_v26, %v2753_v3  ;;  %v2838_v26 = vmul.f32 %v6254_v51, %v7598_v32  ;;  %v2882_v37 = vsel %vm467_vm4, %v2827_v55, 0.0 }
 0x854   :  { %v2892_v3 = vsel %vm467_vm4, %v2832_v27, 0.0  ;;  %v2883_v60 = vadd.f32 %v2882_v37, %v2881_v9  ;;  %v2840_v27 = vmul.f32 %v6281_v19, %v7600_v49 }
 0x855   :  { %v2758_v50 = vmul.f32 1.442695, %v2755_v38  ;;  %v2893_v38 = vsel %vm467_vm4, %v2833_v6, 0.0  ;;  %v2903_v7 = vsel %vm467_vm4, %v2838_v26, 0.0  ;;  %v2844_v6 = vmul.f32 %v6262_v25, %v7598_v32 }
 0x856   :  { %v2894_v55 = vadd.f32 %v2893_v38, %v2892_v3  ;;  %v2895_v26 = vsel %vm467_vm4, %v2834_v63, 0.0  ;;  %v2842_v38 = vmul.f32 %v6449_v40, %v7599_v16  ;;  %v2915_v63 = vsel %vm467_vm4, %v2845_v18, 0.0 }
 0x857   :  { %4481 = vpow2.f32 %v2758_v50  ;;  %v2831_v50 = vmul.f32 %v6406_v0, %v7600_v49 }
 0x858   :  { %v2896_v3 = vadd.f32 %v2895_v26, %v2894_v55  ;;  %v2848_v55 = vmul.f32 %v6474_v48, %v7599_v16  ;;  %v7601_v26 = vld [vmem:[#allocation7_spill] sm:$0xff] }
 0x859   :  { %v2889_v2 = vadd.f32 %v2888_v34, %v2831_v50  ;;  %v2841_v34 = vmul.f32 %v6446_v61, %v7598_v32  ;;  %v2850_v50 = vmul.f32 %v6285_v20, %v7598_v32 }
 0x860   :  { %v6640_v14 = vpop.eup %4479 }
 0x861   :  { %7594 = vst [vmem:[#allocation45_spill] sm:$0xff] %v6640_v14  ;;  %v2760_v5 = vsel %vm7595_vm1, %v6640_v14, 0.0  ;;  %vm7664_vm1 = vmmov %vm7660_vm14 }
 0x862   :  { %2761 = vadd.xlane.f32.xlu0 %v2760_v5  ;;  %v2828_v5 = vmul.f32 %v6222_v57, %v7600_v49 }
 0x864   :  { %v6644_v56 = vpop.eup %4481 }
 0x865   :  { %7596 = vst [vmem:[#allocation4_spill] sm:$0xff] %v6644_v56  ;;  %v2763_v30 = vsel %vm7597_vm2, %v6644_v56, 0.0  ;;  %v7605_v56 = vld [vmem:[#allocation19_spill] sm:$0xff]  ;;  %vm7666_vm2 = vmmov %vm7664_vm1 }
 0x866   :  { %2764 = vadd.xlane.f32.xlu1 %v2763_v30  ;;  %v2835_v30 = vmul.f32 %v6415_v54, %v7598_v32  ;;  %v2858_v14 = vmul.f32 %v7605_v56, %v7600_v49 }
 0x868   :  { %v2899_v9 = vadd.f32 %v2836_v15, %v2835_v30  ;;  %v2906_v30 = vsel %vm467_vm4, %v2840_v27, 0.0  ;;  %v2914_v15 = vsel %vm467_vm4, %v2844_v6, 0.0  ;;  %v2856_v27 = vmul.f32 %v6311_v23, %v7598_v32 }
 0x869   :  { %v2857_v6 = vmul.f32 %v6316_v45, %v7599_v16  ;;  %v2916_v18 = vadd.f32 %v2915_v63, %v2914_v15  ;;  %v7603_v15 = vld [vmem:[#allocation38_spill] sm:$0xff] }
 0x86b   :  { %v2937_v63 = vsel %vm467_vm4, %v2857_v6, 0.0 }
 0x877   :  { %2978 = vrot.lane.b32.xlu1 %v6166_v21, %s4530_s16 }
 0x878   :  { %2771 = vrot.lane.b32.xlu0 %v6166_v21, %s4525_s11 }
 0x87b   :  { %2976 = vrot.lane.b32.xlu1 %v6166_v21, %s4527_s12 }
 0x87c   :  { %3372 = vrot.lane.b32.xlu0 %v6166_v21, %s4528_s13 }
 0x87f   :  { %3370 = vrot.lane.b32.xlu1 %v6166_v21, %s4531_s17 }
 0x880   :  { %3766 = vrot.lane.b32.xlu0 %v6166_v21, %s4529_s15 }
 0x883   :  { %3764 = vrot.lane.b32.xlu1 %v6166_v21, %s4532_s18  ;;  %v2905_v21 = vadd.f32 %v2904_v35, %v2903_v7  ;;  %v2900_v7 = vadd.f32 %v2899_v9, %v2837_v28  ;;  %v2846_v35 = vmul.f32 %v6292_v29, %v7600_v49 }
 0x885   :  { %v2917_v28 = vsel %vm467_vm4, %v2846_v35, 0.0 }
 0x886   :  { %v2918_v43 = vadd.f32 %v2917_v28, %v2916_v18  ;;  %v7609_v28 = vld [vmem:[#allocation23_spill] sm:$0xff] }
 0x887   :  { %v2868_v56 = vmul.f32 %v7609_v28, %v7598_v32  ;;  %v7619_v28 = vld [vmem:[#allocation26_spill] sm:$0xff] }
 0x89f   :  { %2879 = vadd.xlane.f32.xlu0 %v2878_v36  ;;  %v2884_v36 = vsel %vm467_vm4, %v2828_v5, 0.0  ;;  %v2851_v5 = vmul.f32 %v6288_v4, %v7599_v16 }
 0x8a0   :  { %v2885_v37 = vadd.f32 %v2884_v36, %v2883_v60  ;;  %v2907_v60 = vadd.f32 %v2906_v30, %v2905_v21  ;;  %v2910_v36 = vadd.f32 %v2842_v38, %v2841_v34  ;;  %v2925_v21 = vsel %vm467_vm4, %v2850_v50, 0.0 }
 0x8a1   :  { %v2926_v9 = vsel %vm467_vm4, %v2851_v5, 0.0  ;;  %v2854_v34 = vmul.f32 %v7603_v15, %v7599_v16  ;;  %v2936_v5 = vsel %vm467_vm4, %v2856_v27, 0.0 }
 0x8a2   :  { %v2927_v38 = vadd.f32 %v2926_v9, %v2925_v21  ;;  %v2859_v21 = vmul.f32 %v6529_v39, %v7598_v32  ;;  %v7608_v9 = vld [vmem:[#allocation10_spill] sm:$0xff] }
 0x8a3   :  { %2890 = vadd.xlane.f32.xlu0 %v2889_v2  ;;  %v2847_v2 = vmul.f32 %v6471_v17, %v7598_v32  ;;  %v2932_v27 = vadd.f32 %v2854_v34, %v2853_v41 }
 0x8a5   :  { %v2921_v50 = vadd.f32 %v2848_v55, %v2847_v2  ;;  %v2938_v55 = vadd.f32 %v2937_v63, %v2936_v5  ;;  %v7611_v5 = vld [vmem:[#allocation22_spill] sm:$0xff] }
 0x8a6   :  { %v2864_v63 = vmul.f32 %v7611_v5, %v7600_v49 }
 0x8a7   :  { %2897 = vadd.xlane.f32.xlu0 %v2896_v3  ;;  %2886 = vadd.xlane.f32.xlu1 %v2885_v37  ;;  %v2843_v37 = vmul.f32 %v7601_v26, %v7600_v49  ;;  %v7602_v3 = vld [vmem:[#allocation18_spill] sm:$0xff]  ;;  %v7607_v26 = vld [vmem:[#allocation21_spill] sm:$0xff] }
 0x8a8   :  { %v2852_v30 = vmul.f32 %v7602_v3, %v7600_v49  ;;  %v7606_v3 = vld [vmem:[#allocation20_spill] sm:$0xff]  ;;  %v2863_v15 = vmul.f32 %v7607_v26, %v7599_v16 }
 0x8a9   :  { %v2862_v58 = vmul.f32 %v7606_v3, %v7598_v32 }
 0x8aa   :  { %v2928_v2 = vsel %vm467_vm4, %v2852_v30, 0.0  ;;  %v2939_v30 = vsel %vm467_vm4, %v2858_v14, 0.0  ;;  %v2948_v34 = vsel %vm467_vm4, %v2863_v15, 0.0  ;;  %v2874_v14 = vmul.f32 %v6468_v47, %v7598_v32  ;;  %v7615_v47 = vld [vmem:[#allocation42_spill] sm:$0xff] }
 0x8ab   :  { %2908 = vadd.xlane.f32.xlu0 %v2907_v60  ;;  %2901 = vadd.xlane.f32.xlu1 %v2900_v7  ;;  %v2911_v60 = vadd.f32 %v2910_v36, %v2843_v37  ;;  %v7604_v7 = vld [vmem:[#allocation32_spill] sm:$0xff]  ;;  %v2929_v6 = vadd.f32 %v2928_v2, %v2927_v38  ;;  %v2855_v36 = vmul.f32 %v6512_v10, %v7600_v49  ;;  %v2947_v41 = vsel %vm467_vm4, %v2862_v58, 0.0  ;;  %v7612_v58 = vld [vmem:[#allocation31_spill] sm:$0xff] }
 0x8ac   :  { %v2849_v35 = vmul.f32 %v7604_v7, %v7600_v49  ;;  %v2860_v37 = vmul.f32 %v7608_v9, %v7599_v16  ;;  %v2940_v38 = vadd.f32 %v2939_v30, %v2938_v55  ;;  %v2866_v2 = vmul.f32 %v6556_v53, %v7599_v16  ;;  %v7614_v53 = vld [vmem:[#allocation27_spill] sm:$0xff] }
 0x8ad   :  { %v2949_v15 = vadd.f32 %v2948_v34, %v2947_v41  ;;  %v2958_v55 = vsel %vm467_vm4, %v2868_v56, 0.0  ;;  %v2950_v30 = vsel %vm467_vm4, %v2864_v63, 0.0  ;;  %v2871_v5 = vmul.f32 %v7615_v47, %v7598_v32  ;;  %v7616_v41 = vld [vmem:[#allocation43_spill] sm:$0xff]  ;;  %v7620_v47 = vld [vmem:[#allocation29_spill] sm:$0xff] }
 0x8ae   :  { %v2922_v18 = vadd.f32 %v2921_v50, %v2849_v35  ;;  %v2933_v50 = vadd.f32 %v2932_v27, %v2855_v36  ;;  %v2865_v35 = vmul.f32 %v6553_v1, %v7598_v32  ;;  %v2870_v1 = vmul.f32 %v7614_v53, %v7600_v49 }
 0x8af   :  { %2919 = vadd.xlane.f32.xlu0 %v2918_v43  ;;  %2912 = vadd.xlane.f32.xlu1 %v2911_v60  ;;  %v7610_v43 = vld [vmem:[#allocation25_spill] sm:$0xff]  ;;  %v3220_v32 = vmul.f32 %v6216_v44, %v7619_v28 }
 0x8b0   :  { %v2869_v60 = vmul.f32 %v7610_v43, %v7599_v16  ;;  %v2875_v43 = vmul.f32 %v7612_v58, %v7599_v16  ;;  %v2954_v56 = vadd.f32 %v2866_v2, %v2865_v35  ;;  %v7618_v58 = vld [vmem:[#allocation33_spill] sm:$0xff]  ;;  %v2961_v35 = vsel %vm467_vm4, %v2870_v1, 0.0 }
 0x8b1   :  { %v2876_v53 = vmul.f32 %v7618_v58, %v7600_v49 }
 0x8b2   :  { %v2959_v27 = vsel %vm467_vm4, %v2869_v60, 0.0  ;;  %v2969_v60 = vsel %vm467_vm4, %v2874_v14, 0.0  ;;  %v2970_v34 = vsel %vm467_vm4, %v2875_v43, 0.0 }
 0x8b3   :  { %2930 = vadd.xlane.f32.xlu0 %v2929_v6  ;;  %2923 = vadd.xlane.f32.xlu1 %v2922_v18  ;;  %v2943_v6 = vadd.f32 %v2860_v37, %v2859_v21  ;;  %v7613_v18 = vld [vmem:[#allocation9_spill] sm:$0xff]  ;;  %v2872_v21 = vmul.f32 %v7616_v41, %v7599_v16  ;;  %v2960_v37 = vadd.f32 %v2959_v27, %v2958_v55  ;;  %v2972_v1 = vsel %vm467_vm4, %v2876_v53, 0.0 }
 0x8b4   :  { %v2861_v36 = vmul.f32 %v7613_v18, %v7600_v49  ;;  %v2951_v18 = vadd.f32 %v2950_v30, %v2949_v15  ;;  %v3221_v16 = vmul.f32 %v6219_v13, %v7620_v47  ;;  %v2971_v2 = vadd.f32 %v2970_v34, %v2969_v60 }
 0x8b5   :  { %v2965_v43 = vadd.f32 %v2872_v21, %v2871_v5  ;;  %v2962_v14 = vadd.f32 %v2961_v35, %v2960_v37  ;;  %v3217_v27 = vmul.f32 %v6235_v33, %v7619_v28  ;;  %v3226_v30 = vmul.f32 %v6358_v8, %v7619_v28 }
 0x8b6   :  { %v3275_v5 = vsel %vm467_vm4, %v3220_v32, 0.0  ;;  %v3276_v21 = vsel %vm467_vm4, %v3221_v16, 0.0  ;;  %v3223_v34 = vmul.f32 %v6388_v22, %v7619_v28  ;;  %v3232_v53 = vmul.f32 %v6254_v51, %v7619_v28 }
 0x8b7   :  { %2941 = vadd.xlane.f32.xlu0 %v2940_v38  ;;  %2934 = vadd.xlane.f32.xlu1 %v2933_v50  ;;  %v2944_v38 = vadd.f32 %v2943_v6, %v2861_v36  ;;  %v7617_v50 = vld [vmem:[#allocation41_spill] sm:$0xff]  ;;  %v7621_v6 = vld [vmem:[#allocation44_spill] sm:$0xff]  ;;  %v3218_v36 = vmul.f32 %v6238_v42, %v7620_v47  ;;  %v3277_v32 = vadd.f32 %v3276_v21, %v3275_v5  ;;  %v3286_v35 = vsel %vm467_vm4, %v3226_v30, 0.0 }
 0x8b8   :  { %v2867_v63 = vmul.f32 %v7617_v50, %v7600_v49  ;;  %v2873_v55 = vmul.f32 %v7621_v6, %v7600_v49  ;;  %v2973_v49 = vadd.f32 %v2972_v1, %v2971_v2 }
 0x8b9   :  { %v3271_v16 = vadd.f32 %v3218_v36, %v3217_v27  ;;  %v3230_v27 = vmul.f32 %v6418_v31, %v7620_v47  ;;  %v3239_v31 = vmul.f32 %v6265_v11, %v7620_v47 }
 0x8ba   :  { %v2955_v15 = vadd.f32 %v2954_v56, %v2867_v63  ;;  %v2966_v37 = vadd.f32 %v2965_v43, %v2873_v55  ;;  %v7622_v56 = vld [vmem:[#allocation28_spill] sm:$0xff]  ;;  %v3233_v63 = vmul.f32 %v6257_v52, %v7620_v47  ;;  %v3229_v55 = vmul.f32 %v6415_v54, %v7619_v28 }
 0x8bb   :  { %2952 = vadd.xlane.f32.xlu0 %v2951_v18  ;;  %2945 = vadd.xlane.f32.xlu1 %v2944_v38  ;;  %v3227_v18 = vmul.f32 %v6361_v12, %v7620_v47  ;;  %v3222_v60 = vmul.f32 %v6222_v57, %v7622_v56  ;;  %v3224_v38 = vmul.f32 %v6399_v24, %v7620_v47 }
 0x8bc   :  { %v3219_v43 = vmul.f32 %v6242_v62, %v7622_v56  ;;  %v3298_v1 = vsel %vm467_vm4, %v3233_v63, 0.0 }
 0x8bd   :  { %v3287_v2 = vsel %vm467_vm4, %v3227_v18, 0.0  ;;  %v3282_v30 = vadd.f32 %v3224_v38, %v3223_v34  ;;  %v3297_v18 = vsel %vm467_vm4, %v3232_v53, 0.0  ;;  %v3293_v53 = vadd.f32 %v3230_v27, %v3229_v55 }
 0x8be   :  { %v3288_v36 = vadd.f32 %v3287_v2, %v3286_v35  ;;  %v3272_v21 = vadd.f32 %v3271_v16, %v3219_v43  ;;  %v3299_v38 = vadd.f32 %v3298_v1, %v3297_v18  ;;  %v3231_v16 = vmul.f32 %v6424_v59, %v7622_v56 }
 0x8bf   :  { %2963 = vadd.xlane.f32.xlu0 %v2962_v14  ;;  %2956 = vadd.xlane.f32.xlu1 %v2955_v15  ;;  %v3278_v14 = vsel %vm467_vm4, %v3222_v60, 0.0  ;;  %v3228_v15 = vmul.f32 %v6365_v46, %v7622_v56  ;;  %v3238_v60 = vmul.f32 %v6262_v25, %v7619_v28  ;;  %v3235_v35 = vmul.f32 %v6446_v61, %v7619_v28 }
 0x8c0   :  { %v3279_v5 = vadd.f32 %v3278_v14, %v3277_v32  ;;  %v3236_v2 = vmul.f32 %v6449_v40, %v7620_v47  ;;  %v3244_v43 = vmul.f32 %v6285_v20, %v7619_v28  ;;  %v3245_v14 = vmul.f32 %v6288_v4, %v7620_v47 }
 0x8c1   :  { %v3289_v34 = vsel %vm467_vm4, %v3228_v15, 0.0  ;;  %v3308_v55 = vsel %vm467_vm4, %v3238_v60, 0.0  ;;  %v3309_v27 = vsel %vm467_vm4, %v3239_v31, 0.0  ;;  %v3240_v18 = vmul.f32 %v6292_v29, %v7622_v56 }
 0x8c2   :  { %v3290_v63 = vadd.f32 %v3289_v34, %v3288_v36  ;;  %v3241_v1 = vmul.f32 %v6471_v17, %v7619_v28  ;;  %v3310_v31 = vadd.f32 %v3309_v27, %v3308_v55  ;;  %v3319_v60 = vsel %vm467_vm4, %v3244_v43, 0.0  ;;  %v7626_v55 = vld [vmem:[#allocation38_spill] sm:$0xff] }
 0x8c3   :  { %2974 = vadd.xlane.f32.xlu0 %v2973_v49  ;;  %2967 = vadd.xlane.f32.xlu1 %v2966_v37  ;;  %v3225_v49 = vmul.f32 %v6406_v0, %v7622_v56  ;;  %v3234_v37 = vmul.f32 %v6281_v19, %v7622_v56  ;;  %v3320_v34 = vsel %vm467_vm4, %v3245_v14, 0.0 }
 0x8c5   :  { %v3283_v32 = vadd.f32 %v3282_v30, %v3225_v49  ;;  %v3300_v15 = vsel %vm467_vm4, %v3234_v37, 0.0  ;;  %v3294_v30 = vadd.f32 %v3293_v53, %v3231_v16  ;;  %v3251_v49 = vmul.f32 %v6316_v45, %v7620_v47 }
 0x8c6   :  { %v3301_v36 = vadd.f32 %v3300_v15, %v3299_v38  ;;  %v3304_v37 = vadd.f32 %v3236_v2, %v3235_v35  ;;  %v7623_v38 = vld [vmem:[#allocation7_spill] sm:$0xff]  ;;  %v7625_v15 = vld [vmem:[#allocation36_spill] sm:$0xff]  ;;  %v3248_v35 = vmul.f32 %v7626_v55, %v7620_v47  ;;  %v3321_v2 = vadd.f32 %v3320_v34, %v3319_v60 }
 0x8c7   :  { %3280 = vadd.xlane.f32.xlu0 %v3279_v5  ;;  %3273 = vadd.xlane.f32.xlu1 %v3272_v21  ;;  %v3242_v5 = vmul.f32 %v6474_v48, %v7620_v47  ;;  %v3250_v21 = vmul.f32 %v6311_v23, %v7619_v28  ;;  %v3237_v53 = vmul.f32 %v7623_v38, %v7622_v56  ;;  %v3331_v27 = vsel %vm467_vm4, %v3251_v49, 0.0 }
 0x8c8   :  { %v3247_v48 = vmul.f32 %v7625_v15, %v7619_v28  ;;  %v3243_v15 = vmul.f32 %v7604_v7, %v7622_v56  ;;  %v3253_v60 = vmul.f32 %v6529_v39, %v7619_v28  ;;  %v3254_v34 = vmul.f32 %v7608_v9, %v7620_v47 }
 0x8c9   :  { %v3315_v43 = vadd.f32 %v3242_v5, %v3241_v1  ;;  %v3330_v14 = vsel %vm467_vm4, %v3250_v21, 0.0  ;;  %v3249_v21 = vmul.f32 %v6512_v10, %v7622_v56  ;;  %v7632_v10 = vld [vmem:[#allocation40_spill] sm:$0xff] }
 0x8ca   :  { %v3332_v5 = vadd.f32 %v3331_v27, %v3330_v14  ;;  %v3326_v49 = vadd.f32 %v3248_v35, %v3247_v48  ;;  %v7629_v14 = vld [vmem:[#allocation25_spill] sm:$0xff] }
 0x8cb   :  { %3291 = vadd.xlane.f32.xlu0 %v3290_v63  ;;  %3284 = vadd.xlane.f32.xlu1 %v3283_v32  ;;  %v3311_v63 = vsel %vm467_vm4, %v3240_v18, 0.0  ;;  %v7624_v32 = vld [vmem:[#allocation18_spill] sm:$0xff]  ;;  %v3257_v18 = vmul.f32 %v7607_v26, %v7620_v47  ;;  %v3263_v27 = vmul.f32 %v7629_v14, %v7620_v47 }
 0x8cc   :  { %v3246_v16 = vmul.f32 %v7624_v32, %v7622_v56  ;;  %v3312_v38 = vadd.f32 %v3311_v63, %v3310_v31  ;;  %v7627_v32 = vld [vmem:[#allocation19_spill] sm:$0xff]  ;;  %v3327_v35 = vadd.f32 %v3326_v49, %v3249_v21 }
 0x8cd   :  { %v3252_v55 = vmul.f32 %v7627_v32, %v7622_v56  ;;  %v7628_v63 = vld [vmem:[#allocation23_spill] sm:$0xff]  ;;  %v3353_v14 = vsel %vm467_vm4, %v3263_v27, 0.0  ;;  %v7637_v27 = vld [vmem:[#allocation42_spill] sm:$0xff] }
 0x8ce   :  { %v3322_v1 = vsel %vm467_vm4, %v3246_v16, 0.0  ;;  %v3262_v16 = vmul.f32 %v7628_v63, %v7619_v28  ;;  %v3260_v63 = vmul.f32 %v7632_v10, %v7620_v47 }
 0x8cf   :  { %3302 = vadd.xlane.f32.xlu0 %v3301_v36  ;;  %3295 = vadd.xlane.f32.xlu1 %v3294_v30  ;;  %v3305_v36 = vadd.f32 %v3304_v37, %v3237_v53  ;;  %v3256_v30 = vmul.f32 %v7606_v3, %v7619_v28  ;;  %v3323_v31 = vadd.f32 %v3322_v1, %v3321_v2  ;;  %v3333_v48 = vsel %vm467_vm4, %v3252_v55, 0.0  ;;  %v7630_v2 = vld [vmem:[#allocation22_spill] sm:$0xff] }
 0x8d0   :  { %v3316_v37 = vadd.f32 %v3315_v43, %v3243_v15  ;;  %v3334_v15 = vadd.f32 %v3333_v48, %v3332_v5  ;;  %v3258_v43 = vmul.f32 %v7630_v2, %v7622_v56  ;;  %v3337_v1 = vadd.f32 %v3254_v34, %v3253_v60  ;;  %v7633_v55 = vld [vmem:[#allocation30_spill] sm:$0xff]  ;;  %v7634_v5 = vld [vmem:[#allocation31_spill] sm:$0xff] }
 0x8d1   :  { %v3341_v53 = vsel %vm467_vm4, %v3256_v30, 0.0  ;;  %v7631_v30 = vld [vmem:[#allocation39_spill] sm:$0xff]  ;;  %v3352_v9 = vsel %vm467_vm4, %v3262_v16, 0.0  ;;  %v3269_v21 = vmul.f32 %v7634_v5, %v7620_v47  ;;  %v3265_v48 = vmul.f32 %v7637_v27, %v7619_v28 }
 0x8d2   :  { %v3344_v49 = vsel %vm467_vm4, %v3258_v43, 0.0  ;;  %v7636_v34 = vld [vmem:[#allocation27_spill] sm:$0xff]  ;;  %v3261_v43 = vmul.f32 %v7617_v50, %v7622_v56 }
 0x8d3   :  { %3313 = vadd.xlane.f32.xlu0 %v3312_v38  ;;  %3306 = vadd.xlane.f32.xlu1 %v3305_v36  ;;  %v3342_v38 = vsel %vm467_vm4, %v3257_v18, 0.0  ;;  %v3259_v18 = vmul.f32 %v7631_v30, %v7619_v28  ;;  %v7638_v30 = vld [vmem:[#allocation34_spill] sm:$0xff] }
 0x8d4   :  { %v3343_v36 = vadd.f32 %v3342_v38, %v3341_v53  ;;  %v3264_v53 = vmul.f32 %v7636_v34, %v7622_v56  ;;  %v3354_v38 = vadd.f32 %v3353_v14, %v3352_v9  ;;  %v3614_v34 = vmul.f32 %v6216_v44, %v7638_v30  ;;  %v7639_v9 = vld [vmem:[#allocation35_spill] sm:$0xff] }
 0x8d5   :  { %v3348_v16 = vadd.f32 %v3260_v63, %v3259_v18  ;;  %v3615_v63 = vmul.f32 %v6219_v13, %v7639_v9  ;;  %v3612_v44 = vmul.f32 %v6238_v42, %v7639_v9  ;;  %v3620_v13 = vmul.f32 %v6358_v8, %v7638_v30 }
 0x8d6   :  { %v3345_v10 = vadd.f32 %v3344_v49, %v3343_v36  ;;  %v3617_v8 = vmul.f32 %v6388_v22, %v7638_v30 }
 0x8d7   :  { %3324 = vadd.xlane.f32.xlu0 %v3323_v31  ;;  %3317 = vadd.xlane.f32.xlu1 %v3316_v37  ;;  %v3268_v31 = vmul.f32 %v7633_v55, %v7619_v28  ;;  %v7635_v37 = vld [vmem:[#allocation9_spill] sm:$0xff]  ;;  %v3266_v55 = vmul.f32 %v7616_v41, %v7620_v47  ;;  %v3355_v28 = vsel %vm467_vm4, %v3264_v53, 0.0  ;;  %v3270_v47 = vmul.f32 %v7618_v58, %v7622_v56 }
 0x8d8   :  { %v3255_v60 = vmul.f32 %v7635_v37, %v7622_v56  ;;  %v3356_v14 = vadd.f32 %v3355_v28, %v3354_v38  ;;  %v3349_v36 = vadd.f32 %v3348_v16, %v3261_v43  ;;  %v3670_v49 = vsel %vm467_vm4, %v3615_v63, 0.0  ;;  %v7641_v43 = vld [vmem:[#allocation24_spill] sm:$0xff] }
 0x8d9   :  { %v3359_v18 = vadd.f32 %v3266_v55, %v3265_v48  ;;  %v7640_v55 = vld [vmem:[#allocation37_spill] sm:$0xff]  ;;  %v3624_v63 = vmul.f32 %v7641_v43, %v7639_v9 }
 0x8da   :  { %v3338_v5 = vadd.f32 %v3337_v1, %v3255_v60  ;;  %v3616_v42 = vmul.f32 %v6222_v57, %v7640_v55  ;;  %v3613_v48 = vmul.f32 %v6242_v62, %v7640_v55  ;;  %v3626_v57 = vmul.f32 %v6254_v51, %v7638_v30 }
 0x8db   :  { %3335 = vadd.xlane.f32.xlu0 %v3334_v15  ;;  %3328 = vadd.xlane.f32.xlu1 %v3327_v35  ;;  %v3363_v15 = vsel %vm467_vm4, %v3268_v31, 0.0  ;;  %v3364_v35 = vsel %vm467_vm4, %v3269_v21, 0.0  ;;  %v3611_v31 = vmul.f32 %v6235_v33, %v7638_v30  ;;  %v3669_v21 = vsel %vm467_vm4, %v3614_v34, 0.0 }
 0x8dc   :  { %v3365_v1 = vadd.f32 %v3364_v35, %v3363_v15  ;;  %v3366_v33 = vsel %vm467_vm4, %v3270_v47, 0.0  ;;  %v3680_v34 = vsel %vm467_vm4, %v3620_v13, 0.0  ;;  %v3627_v15 = vmul.f32 %v6257_v52, %v7639_v9 }
 0x8dd   :  { %v3665_v38 = vadd.f32 %v3612_v44, %v3611_v31  ;;  %v3672_v22 = vsel %vm467_vm4, %v3616_v42, 0.0  ;;  %v3623_v35 = vmul.f32 %v6415_v54, %v7638_v30  ;;  %v3632_v51 = vmul.f32 %v6262_v25, %v7638_v30 }
 0x8de   :  { %v3367_v60 = vadd.f32 %v3366_v33, %v3365_v1  ;;  %v3633_v52 = vmul.f32 %v6265_v11, %v7639_v9  ;;  %v3691_v54 = vsel %vm467_vm4, %v3626_v57, 0.0  ;;  %v3692_v1 = vsel %vm467_vm4, %v3627_v15, 0.0 }
 0x8df   :  { %3346 = vadd.xlane.f32.xlu0 %v3345_v10  ;;  %3339 = vadd.xlane.f32.xlu1 %v3338_v5  ;;  %v3621_v10 = vmul.f32 %v6361_v12, %v7639_v9  ;;  %v3267_v5 = vmul.f32 %v7621_v6, %v7622_v56  ;;  %v3618_v12 = vmul.f32 %v6399_v24, %v7639_v9 }
 0x8e0   :  { %v3671_v56 = vadd.f32 %v3670_v49, %v3669_v21  ;;  %v3622_v24 = vmul.f32 %v6365_v46, %v7640_v55  ;;  %v3628_v46 = vmul.f32 %v6281_v19, %v7640_v55  ;;  %v3687_v31 = vadd.f32 %v3624_v63, %v3623_v35  ;;  %v7645_v35 = vld [vmem:[#allocation18_spill] sm:$0xff] }
 0x8e1   :  { %v3360_v53 = vadd.f32 %v3359_v18, %v3267_v5  ;;  %v3681_v16 = vsel %vm467_vm4, %v3621_v10, 0.0  ;;  %v3676_v28 = vadd.f32 %v3618_v12, %v3617_v8  ;;  %v3638_v11 = vmul.f32 %v6285_v20, %v7638_v30 }
 0x8e2   :  { %v3682_v62 = vadd.f32 %v3681_v16, %v3680_v34  ;;  %v3673_v47 = vadd.f32 %v3672_v22, %v3671_v56  ;;  %v3683_v25 = vsel %vm467_vm4, %v3622_v24, 0.0  ;;  %v3639_v44 = vmul.f32 %v6288_v4, %v7639_v9  ;;  %v7644_v22 = vld [vmem:[#allocation7_spill] sm:$0xff] }
 0x8e3   :  { %3357 = vadd.xlane.f32.xlu0 %v3356_v14  ;;  %3350 = vadd.xlane.f32.xlu1 %v3349_v36  ;;  %v3666_v14 = vadd.f32 %v3665_v38, %v3613_v48  ;;  %v3619_v36 = vmul.f32 %v6406_v0, %v7640_v55  ;;  %v3702_v19 = vsel %vm467_vm4, %v3632_v51, 0.0  ;;  %v3703_v10 = vsel %vm467_vm4, %v3633_v52, 0.0  ;;  %v7643_v48 = vld [vmem:[#allocation3_spill] sm:$0xff]  ;;  %v7647_v51 = vld [vmem:[#allocation38_spill] sm:$0xff] }
 0x8e4   :  { %v3684_v0 = vadd.f32 %v3683_v25, %v3682_v62  ;;  %v3693_v5 = vadd.f32 %v3692_v1, %v3691_v54  ;;  %v3625_v21 = vmul.f32 %v6424_v59, %v7640_v55  ;;  %v3629_v49 = vmul.f32 %v6446_v61, %v7638_v30  ;;  %v7642_v61 = vld [vmem:[#allocation47_spill] sm:$0xff]  ;;  %v7646_v62 = vld [vmem:[#allocation36_spill] sm:$0xff] }
 0x8e5   :  { %v3677_v13 = vadd.f32 %v3676_v28, %v3619_v36  ;;  %v3630_v33 = vmul.f32 %v6449_v40, %v7639_v9  ;;  %v3694_v20 = vsel %vm467_vm4, %v3628_v46, 0.0  ;;  %v3634_v4 = vmul.f32 %v6292_v29, %v7640_v55 }
 0x8e6   :  { %v3704_v8 = vadd.f32 %v3703_v10, %v3702_v19  ;;  %v3713_v59 = vsel %vm467_vm4, %v3638_v11, 0.0  ;;  %v3714_v12 = vsel %vm467_vm4, %v3639_v44, 0.0  ;;  %v3644_v40 = vmul.f32 %v6311_v23, %v7638_v30  ;;  %v7650_v10 = vld [vmem:[#allocation23_spill] sm:$0xff] }
 0x8e7   :  { %3368 = vadd.xlane.f32.xlu0 %v3367_v60  ;;  %3361 = vadd.xlane.f32.xlu1 %v3360_v53  ;;  %v3688_v53 = vadd.f32 %v3687_v31, %v3625_v21  ;;  %v3645_v38 = vmul.f32 %v6316_v45, %v7639_v9  ;;  %v3695_v29 = vadd.f32 %v3694_v20, %v3693_v5  ;;  %v3705_v15 = vsel %vm467_vm4, %v3634_v4, 0.0 }
 0x8e8   :  { %v3698_v34 = vadd.f32 %v3630_v33, %v3629_v49  ;;  %v3635_v16 = vmul.f32 %v6471_v17, %v7638_v30  ;;  %v3636_v57 = vmul.f32 %v7643_v48, %v7639_v9  ;;  %v3631_v24 = vmul.f32 %v7644_v22, %v7640_v55  ;;  %v7652_v33 = vld [vmem:[#allocation25_spill] sm:$0xff] }
 0x8e9   :  { %v3706_v23 = vadd.f32 %v3705_v15, %v3704_v8  ;;  %v3640_v45 = vmul.f32 %v7645_v35, %v7640_v55  ;;  %v3715_v43 = vadd.f32 %v3714_v12, %v3713_v59  ;;  %v3724_v63 = vsel %vm467_vm4, %v3644_v40, 0.0  ;;  %v7653_v40 = vld [vmem:[#allocation39_spill] sm:$0xff]  ;;  %v7657_v15 = vld [vmem:[#allocation4_spill] sm:$0xff] }
 0x8ea   :  { %v3725_v17 = vsel %vm467_vm4, %v3645_v38, 0.0  ;;  %v3641_v28 = vmul.f32 %v7646_v62, %v7638_v30  ;;  %v3642_v52 = vmul.f32 %v7647_v51, %v7639_v9  ;;  %v3709_v36 = vadd.f32 %v3636_v57, %v3635_v16  ;;  %v7655_v16 = vld [vmem:[#allocation30_spill] sm:$0xff]  ;;  %v7656_v57 = vld [vmem:[#allocation45_spill] sm:$0xff] }
 0x8eb   :  { %3674 = vadd.xlane.f32.xlu0 %v3673_v47  ;;  %v2762_v18 = vpop.xlane.xlu0 %2761  ;;  %3667 = vadd.xlane.f32.xlu1 %v3666_v14  ;;  %v7648_v47 = vmov 0.0   ;;  %v3699_v14 = vadd.f32 %v3698_v34, %v3631_v24  ;;  %v3650_v46 = vmul.f32 %v7606_v3, %v7638_v30  ;;  %v3651_v54 = vmul.f32 %v7607_v26, %v7639_v9  ;;  %v7649_v3 = vld [vmem:[#allocation10_spill] sm:$0xff] }
 0x8ec   :  { %4483 = vrcp.f32 %v2762_v18  ;;  %v3646_v1 = vmul.f32 %v7627_v32, %v7640_v55  ;;  %v3716_v18 = vsel %vm467_vm4, %v3640_v45, 0.0  ;;  %v3637_v25 = vmul.f32 %v7604_v7, %v7640_v55  ;;  %v7651_v7 = vld [vmem:[#allocation8_spill] sm:$0xff] }
 0x8ed   :  { %v3726_v31 = vadd.f32 %v3725_v17, %v3724_v63  ;;  %v3717_v11 = vadd.f32 %v3716_v18, %v3715_v43  ;;  %v3720_v44 = vadd.f32 %v3642_v52, %v3641_v28  ;;  %v3735_v19 = vsel %vm467_vm4, %v3650_v46, 0.0  ;;  %v7659_v17 = vld [vmem:[#allocation27_spill] sm:$0xff] }
 0x8ee   :  { %v3710_v26 = vadd.f32 %v3709_v36, %v3637_v25  ;;  %v3736_v32 = vsel %vm467_vm4, %v3651_v54, 0.0  ;;  %v3656_v5 = vmul.f32 %v7650_v10, %v7638_v30  ;;  %v3727_v21 = vsel %vm467_vm4, %v3646_v1, 0.0  ;;  %v4519_v10 = vld [vmem:[%s7342_s5] sm:$0xff]  }
 0x8ef   :  { %3685 = vadd.xlane.f32.xlu0 %v3684_v0  ;;  %v2772_v42 = vpop.permute.xlu0 %2771  ;;  %3678 = vadd.xlane.f32.xlu1 %v3677_v13  ;;  %v2765_v60 = vpop.xlane.xlu1 %2764  ;;  %v3647_v0 = vmul.f32 %v6529_v39, %v7638_v30  ;;  %v3648_v13 = vmul.f32 %v7649_v3, %v7639_v9  ;;  %v3643_v49 = vmul.f32 %v7651_v7, %v7640_v55 }
 0x8f0   :  { %v2777_v56 = vand.u32 %v2772_v42, %v7642_v61  ;;  %4485 = vrcp.f32 %v2765_v60  ;;  %v3657_v20 = vmul.f32 %v7652_v33, %v7639_v9  ;;  %v3728_v4 = vadd.f32 %v3727_v21, %v3726_v31  ;;  %v7668_v33 = vld [vmem:[#allocation6_spill] sm:$0xff] }
 0x8f1   :  { %v3652_v42 = vmul.f32 %v7630_v2, %v7640_v55  ;;  %v3721_v60 = vadd.f32 %v3720_v44, %v3643_v49  ;;  %v3649_v8 = vmul.f32 %v7635_v37, %v7640_v55  ;;  %v3731_v59 = vadd.f32 %v3648_v13, %v3647_v0  ;;  %v7658_v37 = vld [vmem:[#allocation31_spill] sm:$0xff] }
 0x8f2   :  { %4368 = vmatpush3.bf16.msra.mxu1 %v2777_v56  ;;  %v3746_v56 = vsel %vm467_vm4, %v3656_v5, 0.0  ;;  %v3653_v38 = vmul.f32 %v7653_v40, %v7638_v30  ;;  %v3662_v48 = vmul.f32 %v7655_v16, %v7638_v30  ;;  %v3747_v24 = vsel %vm467_vm4, %v3657_v20, 0.0 }
 0x8f3   :  { %3696 = vadd.xlane.f32.xlu0 %v3695_v29  ;;  %3689 = vadd.xlane.f32.xlu1 %v3688_v53  ;;  %v3737_v53 = vadd.f32 %v3736_v32, %v3735_v19  ;;  %v7654_v29 = vld [vmem:[#allocation40_spill] sm:$0xff]  ;;  %v2979_v35 = vpop.permute.xlu1 %2978  ;;  %v3738_v43 = vsel %vm467_vm4, %v3652_v42, 0.0  ;;  %v3732_v63 = vadd.f32 %v3731_v59, %v3649_v8  ;;  %v3658_v62 = vmul.f32 %v7659_v17, %v7640_v55 }
 0x8f4   :  { %4373 = vmatprep.subr.bf16.mxu1 %v7648_v47  ;;  %v3654_v34 = vmul.f32 %v7654_v29, %v7639_v9  ;;  %v3748_v51 = vadd.f32 %v3747_v24, %v3746_v56  ;;  %v3092_v36 = vsel %vm7660_vm14, %v2979_v35, 0  ;;  %v3659_v54 = vmul.f32 %v7637_v27, %v7638_v30  ;;  %vm7667_vm14 = vmmov %vm7664_vm1 }
 0x8f5   :  { %v3739_v28 = vadd.f32 %v3738_v43, %v3737_v53  ;;  %v3660_v1 = vmul.f32 %v7616_v41, %v7639_v9  ;;  %v3749_v18 = vsel %vm467_vm4, %v3658_v62, 0.0  ;;  %v3655_v25 = vmul.f32 %v7617_v50, %v7640_v55 }
 0x8f6   :  { %v3742_v52 = vadd.f32 %v3654_v34, %v3653_v38  ;;  %v3664_v31 = vmul.f32 %v7618_v58, %v7640_v55  ;;  %v3661_v50 = vmul.f32 %v7621_v6, %v7640_v55  ;;  %v4518_v55 = vld [vmem:[%s7342_s5 + $0x8] sm:$0xff]  }
 0x8f7   :  { %3707 = vadd.xlane.f32.xlu0 %v3706_v23  ;;  %3700 = vadd.xlane.f32.xlu1 %v3699_v14  ;;  %v3663_v23 = vmul.f32 %v7658_v37, %v7639_v9  ;;  %v3757_v14 = vsel %vm467_vm4, %v3662_v48, 0.0  ;;  %v3753_v41 = vadd.f32 %v3660_v1, %v3659_v54  ;;  %v3373_v9 = vpop.permute.xlu0 %3372  ;;  %v2977_v0 = vpop.permute.xlu1 %2976 }
 0x8f8   :  { %v3743_v27 = vadd.f32 %v3742_v52, %v3655_v25  ;;  %v3760_v44 = vsel %vm467_vm4, %v3664_v31, 0.0  ;;  %v3486_v13 = vsel %vm7663_vm15, %v3373_v9, 0  ;;  %vm7671_vm15 = vcmask 57344  }
 0x8f9   :  { %v4484_v39 = vpop.eup %4483  ;;  %v3758_v46 = vsel %vm467_vm4, %v3663_v23, 0.0  ;;  %v3754_v58 = vadd.f32 %v3753_v41, %v3661_v50  ;;  %vm7665_vm4 = vmmov %vm7664_vm1 }
 0x8fa   :  { %v2768_v2 = vmul.f32 %v4484_v39, %v7656_v57  ;;  %v3759_v30 = vadd.f32 %v3758_v46, %v3757_v14 }
 0x8fb   :  { %3718 = vadd.xlane.f32.xlu0 %v3717_v11  ;;  %3711 = vadd.xlane.f32.xlu1 %v3710_v26  ;;  %v3750_v11 = vadd.f32 %v3749_v18, %v3748_v51  ;;  %v3767_v26 = vpop.permute.xlu0 %3766  ;;  %v3371_v19 = vpop.permute.xlu1 %3370 }
 0x8fc   :  { %v3761_v3 = vadd.f32 %v3760_v44, %v3759_v30  ;;  %v3880_v32 = vsel %vm7665_vm4, %v3767_v26, 0  ;;  %vm7673_vm4 = vcmask 72704  }
 0x8fd   :  { %v4486_v12 = vpop.eup %4485 }
 0x8fe   :  { %v2769_v22 = vmul.f32 %v4486_v12, %v7657_v15 }
 0x8ff   :  { %3729 = vadd.xlane.f32.xlu0 %v3728_v4  ;;  %3722 = vadd.xlane.f32.xlu1 %v3721_v60  ;;  %v3765_v6 = vpop.permute.xlu1 %3764  ;;  %v7669_v4 = vld [vmem:[#allocation46_spill] sm:$0xff] }
 0x900   :  { %v2770_v45 = vpack.c.bf16 %v2769_v22, %v2768_v2 }
 0x902   :  { %4370 = vmatmul.mubr.msk.bf16.vlgmr.msra.gmra.mxu1 %vm7661_vm0, %v2770_v45  ;;  %vm7670_vm0 = vmmov %vm7664_vm1 }
 0x903   :  { %4374 = vmatpush3.bf16.xpose.msra.mxu1 %v3092_v36  ;;  %3740 = vadd.xlane.f32.xlu0 %v3739_v28 }
 0x904   :  { %3733 = vadd.xlane.f32.xlu1 %v3732_v63  ;;  %4375 = vmatprep.mubr.msk.bf16.mxu1 %vm7662_vm13, %v7648_v47 }
 0x905   :  { %4385 = vmatprep.subr.bf16.mxu1 %v7648_v47 }
 0x907   :  { %3751 = vadd.xlane.f32.xlu0 %v3750_v11 }
 0x908   :  { %3744 = vadd.xlane.f32.xlu1 %v3743_v27 }
 0x90a   :  { %4376 = vmatmul.mubr.msk.bf16.vlgmr.msra.gmra.mxu1 %vm7664_vm1, %v2977_v0  ;;  %vm7672_vm1 = vcmask 1047559  }
 0x90b   :  { %4386 = vmatpush3.bf16.xpose.msra.mxu1 %v3486_v13  ;;  %3762 = vadd.xlane.f32.xlu0 %v3761_v3 }
 0x90c   :  { %3755 = vadd.xlane.f32.xlu1 %v3754_v58  ;;  %4387 = vmatprep.mubr.msk.bf16.mxu1 %vm7662_vm13, %v7648_v47 }
 0x90d   :  { %4397 = vmatprep.subr.bf16.mxu1 %v7648_v47 }
 0x912   :  { %4388 = vmatmul.mubr.msk.bf16.vlgmr.msra.gmra.mxu1 %vm7666_vm2, %v3371_v19  ;;  %vm7674_vm2 = vmmov %vm7672_vm1 }
 0x913   :  { %4398 = vmatpush3.bf16.xpose.msra.mxu1 %v3880_v32  ;;  %4399 = vmatprep.mubr.msk.bf16.mxu1 %vm7662_vm13, %v7648_v47 }
 0x914   :  { %4409 = vmatprep.subr.bf16.mxu1 %v7648_v47 }
 0x91a   :  { %4400 = vmatmul.mubr.msk.bf16.vlgmr.msra.gmra.mxu1 %vm7667_vm14, %v3765_v6  ;;  %vm7675_vm14 = vcmask 65536  }
 0x91b   :  { %4410 = vmatpush3.bf16.msra.mxu1 %v4518_v55  ;;  %4413 = vmatprep.mubr.msk.bf16.mxu1 %vm7662_vm13, %v7648_v47 }
 0x91c   :  { %4411 = vmatprep.subr.bf16.mxu1 %v7648_v47 }
 0x91f   :  { %4412 = vmatpush3.bf16.msra.mxu1 %v4519_v10 }
 0x928   :  { %v2880_v5 = vpop.xlane.xlu0 %2879 }
 0x929   :  { %v3001_v20 = vrot.slane %v2880_v5, %v7668_v33 }
 0x92c   :  { %v2891_v21 = vpop.xlane.xlu0 %2890 }
 0x92d   :  { %v3010_v39 = vrot.slane %v2891_v21, %v7668_v33 }
 0x930   :  { %v2898_v7 = vpop.xlane.xlu0 %2897  ;;  %v2887_v49 = vpop.xlane.xlu1 %2886 }
 0x931   :  { %v3014_v42 = vrot.slane %v2898_v7, %v7669_v4  ;;  %v3005_v60 = vrot.slane %v2887_v49, %v7669_v4 }
 0x933   :  { %v3015_v53 = vsel %vm593_vm6, %v3014_v42, %v3010_v39  ;;  %v3006_v8 = vsel %vm593_vm6, %v3005_v60, %v3001_v20 }
 0x934   :  { %v3079_v59 = vsel %vm667_vm7, %v3015_v53, %v3006_v8  ;;  %v2909_v12 = vpop.xlane.xlu0 %2908  ;;  %v2902_v56 = vpop.xlane.xlu1 %2901 }
 0x935   :  { %v3023_v40 = vrot.slane %v2909_v12, %v7669_v4  ;;  %v3019_v38 = vrot.slane %v2902_v56, %v7668_v33 }
 0x937   :  { %v3024_v29 = vsel %vm593_vm6, %v3023_v40, %v3019_v38 }
 0x938   :  { %v3080_v34 = vsel %vm669_vm8, %v3024_v29, %v3079_v59  ;;  %v2920_v16 = vpop.xlane.xlu0 %2919  ;;  %v2913_v48 = vpop.xlane.xlu1 %2912 }
 0x939   :  { %v3032_v57 = vrot.slane %v2920_v16, %v7669_v4  ;;  %v3028_v2 = vrot.slane %v2913_v48, %v7668_v33 }
 0x93b   :  { %v3033_v15 = vsel %vm593_vm6, %v3032_v57, %v3028_v2 }
 0x93c   :  { %v3081_v22 = vsel %vm671_vm9, %v3033_v15, %v3080_v34  ;;  %v2931_v24 = vpop.xlane.xlu0 %2930  ;;  %v2924_v37 = vpop.xlane.xlu1 %2923 }
 0x93d   :  { %v3041_v23 = vrot.slane %v2931_v24, %v7669_v4  ;;  %v3037_v35 = vrot.slane %v2924_v37, %v7668_v33 }
 0x93f   :  { %v3042_v45 = vsel %vm593_vm6, %v3041_v23, %v3037_v35 }
 0x940   :  { %v3082_v43 = vsel %vm673_vm10, %v3042_v45, %v3081_v22  ;;  %v2942_v63 = vpop.xlane.xlu0 %2941  ;;  %v2935_v17 = vpop.xlane.xlu1 %2934 }
 0x941   :  { %v3050_v49 = vrot.slane %v2942_v63, %v7669_v4  ;;  %v3046_v20 = vrot.slane %v2935_v17, %v7668_v33 }
 0x943   :  { %v3051_v60 = vsel %vm593_vm6, %v3050_v49, %v3046_v20 }
 0x944   :  { %v2953_v62 = vpop.xlane.xlu0 %2952  ;;  %v2946_v28 = vpop.xlane.xlu1 %2945  ;;  %v3083_v35 = vsel %vm675_vm11, %v3051_v60, %v3082_v43 }
 0x945   :  { %v3059_v53 = vrot.slane %v2953_v62, %v7669_v4  ;;  %v3055_v8 = vrot.slane %v2946_v28, %v7668_v33 }
 0x947   :  { %v3060_v45 = vsel %vm593_vm6, %v3059_v53, %v3055_v8 }
 0x948   :  { %v7115_v51 = vpop.xlane.xlu0 %2963  ;;  %v7117_v52 = vpop.xlane.xlu1 %2956 }
 0x949   :  { %v3068_v56 = vrot.slane %v7115_v51, %v7669_v4  ;;  %v3064_v40 = vrot.slane %v7117_v52, %v7668_v33 }
 0x94b   :  { %v3069_v43 = vsel %vm593_vm6, %v3068_v56, %v3064_v40 }
 0x94c   :  { %v7119_v14 = vpop.xlane.xlu0 %2974  ;;  %v7121_v36 = vpop.xlane.xlu1 %2967 }
 0x950   :  { %v7123_v46 = vpop.xlane.xlu0 %3280  ;;  %v7125_v54 = vpop.xlane.xlu1 %3273 }
 0x951   :  { %v3399_v16 = vrot.slane %v7123_v46, %v7669_v4  ;;  %v3395_v48 = vrot.slane %v7125_v54, %v7668_v33  ;;  %v3077_v54 = vrot.slane %v7119_v14, %v7669_v4 }
 0x954   :  { %v3292_v1 = vpop.xlane.xlu0 %3291  ;;  %v3285_v18 = vpop.xlane.xlu1 %3284 }
 0x955   :  { %v3408_v59 = vrot.slane %v3292_v1, %v7669_v4  ;;  %v3404_v12 = vrot.slane %v3285_v18, %v7668_v33  ;;  %v3073_v1 = vrot.slane %v7121_v36, %v7668_v33  ;;  %v3400_v18 = vsel %vm593_vm6, %v3399_v16, %v3395_v48 }
 0x957   :  { %v3409_v63 = vsel %vm593_vm6, %v3408_v59, %v3404_v12  ;;  %v3078_v8 = vsel %vm593_vm6, %v3077_v54, %v3073_v1 }
 0x958   :  { %v3303_v25 = vpop.xlane.xlu0 %3302  ;;  %v3296_v31 = vpop.xlane.xlu1 %3295 }
 0x959   :  { %v3417_v38 = vrot.slane %v3303_v25, %v7669_v4  ;;  %v3413_v29 = vrot.slane %v3296_v31, %v7668_v33  ;;  %v3473_v31 = vsel %vm667_vm7, %v3409_v63, %v3400_v18 }
 0x95b   :  { %v3418_v28 = vsel %vm593_vm6, %v3417_v38, %v3413_v29 }
 0x95c   :  { %v3314_v11 = vpop.xlane.xlu0 %3313  ;;  %v3307_v30 = vpop.xlane.xlu1 %3306 }
 0x95d   :  { %v3426_v57 = vrot.slane %v3314_v11, %v7669_v4  ;;  %v3422_v2 = vrot.slane %v3307_v30, %v7668_v33 }
 0x95f   :  { %v3427_v25 = vsel %vm593_vm6, %v3426_v57, %v3422_v2 }
 0x960   :  { %v3325_v27 = vpop.xlane.xlu0 %3324  ;;  %v3318_v41 = vpop.xlane.xlu1 %3317 }
 0x961   :  { %v3435_v22 = vrot.slane %v3325_v27, %v7669_v4  ;;  %v3431_v24 = vrot.slane %v3318_v41, %v7668_v33  ;;  %v3474_v41 = vsel %vm669_vm8, %v3418_v28, %v3473_v31 }
 0x963   :  { %v3436_v11 = vsel %vm593_vm6, %v3435_v22, %v3431_v24 }
 0x964   :  { %v7127_v9 = vpop.xlane.xlu0 %3335  ;;  %v3329_v44 = vpop.xlane.xlu1 %3328 }
 0x965   :  { %v3444_v17 = vrot.slane %v7127_v9, %v7669_v4  ;;  %v3440_v62 = vrot.slane %v3329_v44, %v7668_v33  ;;  %v3084_v44 = vsel %vm677_vm12, %v3060_v45, %v3083_v35 }
 0x966   :  { %v3085_v20 = vsel %vm7672_vm1, %v3069_v43, %v3084_v44 }
 0x967   :  { %v3445_v36 = vsel %vm593_vm6, %v3444_v17, %v3440_v62 }
 0x968   :  { %v7129_v50 = vpop.xlane.xlu0 %3346  ;;  %v7131_v0 = vpop.xlane.xlu1 %3339 }
 0x969   :  { %v3453_v51 = vrot.slane %v7129_v50, %v7669_v4  ;;  %v3449_v52 = vrot.slane %v7131_v0, %v7668_v33  ;;  %v3475_v50 = vsel %vm671_vm9, %v3427_v25, %v3474_v41 }
 0x96b   :  { %v3454_v0 = vsel %vm593_vm6, %v3453_v51, %v3449_v52 }
 0x96c   :  { %v7133_v3 = vpop.xlane.xlu0 %3357  ;;  %v7135_v13 = vpop.xlane.xlu1 %3350 }
 0x96d   :  { %v3462_v30 = vrot.slane %v7133_v3, %v7669_v4  ;;  %v3458_v27 = vrot.slane %v7135_v13, %v7668_v33  ;;  %v3476_v3 = vsel %vm673_vm10, %v3436_v11, %v3475_v50 }
 0x96e   :  { %v3477_v12 = vsel %vm675_vm11, %v3445_v36, %v3476_v3 }
 0x96f   :  { %v3463_v59 = vsel %vm593_vm6, %v3462_v30, %v3458_v27  ;;  %v3478_v29 = vsel %vm677_vm12, %v3454_v0, %v3477_v12 }
 0x970   :  { %v7137_v58 = vpop.xlane.xlu0 %3368  ;;  %v7139_v26 = vpop.xlane.xlu1 %3361 }
 0x974   :  { %v7141_v19 = vpop.xlane.xlu0 %3674  ;;  %v7143_v32 = vpop.xlane.xlu1 %3667 }
 0x975   :  { %v3789_v16 = vrot.slane %v7143_v32, %v7668_v33  ;;  %v3471_v32 = vrot.slane %v7137_v58, %v7669_v4 }
 0x978   :  { %v7145_v6 = vpop.xlane.xlu0 %3685  ;;  %v7147_v55 = vpop.xlane.xlu1 %3678 }
 0x979   :  { %v3802_v56 = vrot.slane %v7145_v6, %v7669_v4  ;;  %v3798_v40 = vrot.slane %v7147_v55, %v7668_v33 }
 0x97c   :  { %v7149_v10 = vpop.xlane.xlu0 %3696  ;;  %v7151_v5 = vpop.xlane.xlu1 %3689 }
 0x97d   :  { %v3811_v48 = vrot.slane %v7149_v10, %v7669_v4  ;;  %v3807_v6 = vrot.slane %v7151_v5, %v7668_v33  ;;  %v3467_v10 = vrot.slane %v7139_v26, %v7668_v33 }
 0x97f   :  { %v3472_v11 = vsel %vm593_vm6, %v3471_v32, %v3467_v10 }
 0x980   :  { %v7153_v21 = vpop.xlane.xlu0 %3707  ;;  %v7155_v7 = vpop.xlane.xlu1 %3700 }
 0x981   :  { %v3820_v55 = vrot.slane %v7153_v21, %v7669_v4  ;;  %v3816_v2 = vrot.slane %v7155_v7, %v7668_v33  ;;  %v3803_v7 = vsel %vm593_vm6, %v3802_v56, %v3798_v40 }
 0x983   :  { %v3821_v28 = vsel %vm593_vm6, %v3820_v55, %v3816_v2 }
 0x984   :  { %v7159_v39 = vpop.xlane.xlu0 %3718  ;;  %v7161_v42 = vpop.xlane.xlu1 %3711 }
 0x985   :  { %v3829_v5 = vrot.slane %v7159_v39, %v7669_v4  ;;  %v3825_v21 = vrot.slane %v7161_v42, %v7668_v33  ;;  %v3812_v39 = vsel %vm593_vm6, %v3811_v48, %v3807_v6 }
 0x988   :  { %v7180_v15 = vpop.xlane.xlu0 %3729  ;;  %v7185_v37 = vpop.xlane.xlu1 %3722 }
 0x989   :  { %v3838_v45 = vrot.slane %v7180_v15, %v7669_v4  ;;  %v3834_v63 = vrot.slane %v7185_v37, %v7668_v33 }
 0x98b   :  { %v3839_v1 = vsel %vm593_vm6, %v3838_v45, %v3834_v63 }
 0x98c   :  { %v3741_v9 = vpop.xlane.xlu0 %3740 }
 0x98d   :  { %v3734_v49 = vpop.xlane.xlu1 %3733  ;;  %v3847_v17 = vrot.slane %v3741_v9, %v7669_v4 }
 0x98e   :  { %v3843_v42 = vrot.slane %v3734_v49, %v7668_v33 }
 0x990   :  { %v3752_v22 = vpop.xlane.xlu0 %3751  ;;  %v3848_v31 = vsel %vm593_vm6, %v3847_v17, %v3843_v42 }
 0x991   :  { %v3856_v15 = vrot.slane %v3752_v22, %v7669_v4 }
 0x9c2   :  { %v2813_v34 = vpop.f32.mrf.mxu1 }
 0x9c3   :  { %2821 = vst.msk [vmem:[#allocation2 + $0x10] sm:$0xff] %vm7670_vm0, %v2813_v34  ;;  %v3793_v34 = vrot.slane %v7141_v19, %v7669_v4  ;;  %v3479_v19 = vsel %vm7674_vm2, %v3463_v59, %v3478_v29  ;;  %vm7676_vm0 = vmmov %vm7673_vm4 }
 0x9c4   :  { %v4371_v23 = vpop.f32.mrf.mxu1 }
 0x9c5   :  { %v3745_v23 = vpop.xlane.xlu1 %3744  ;;  %v3794_v26 = vsel %vm593_vm6, %v3793_v34, %v3789_v16 }
 0x9c6   :  { %v2816_v46 = vpop.f32.mrf.mxu1  ;;  %v3852_v51 = vrot.slane %v3745_v23, %v7668_v33  ;;  %v3867_v52 = vsel %vm667_vm7, %v3803_v7, %v3794_v26  ;;  %vm7677_vm7 = vmmov %vm7675_vm14 }
 0x9c7   :  { %2822 = vst.msk [vmem:[#allocation2 + $0x18] sm:$0x1] %vm7671_vm15, %v2816_v46  ;;  %v3830_v46 = vsel %vm593_vm6, %v3829_v5, %v3825_v21  ;;  %v3868_v54 = vsel %vm669_vm8, %v3812_v39, %v3867_v52  ;;  %vm7678_vm8 = vmmov %vm7672_vm1 }
 0x9c8   :  { %v4372_v14 = vpop.f32.mrf.mxu1  ;;  %v3869_v25 = vsel %vm671_vm9, %v3821_v28, %v3868_v54  ;;  %v3857_v9 = vsel %vm593_vm6, %v3856_v15, %v3852_v51  ;;  %vm7679_vm9 = vmmov %vm7676_vm0 }
 0x9c9   :  { %v3870_v27 = vsel %vm673_vm10, %v3830_v46, %v3869_v25  ;;  %v3763_v14 = vpop.xlane.xlu0 %3762  ;;  %v3756_v41 = vpop.xlane.xlu1 %3755  ;;  %vm7680_vm10 = vmmov %vm7677_vm7 }
 0x9ca   :  { %v3128_v60 = vpop.f32.mrf.mxu1  ;;  %v3871_v50 = vsel %vm675_vm11, %v3839_v1, %v3870_v27  ;;  %vm7682_vm11 = vmmov %vm7676_vm0 }
 0x9cb   :  { %v7219_v53 = vadd.f32 %v3128_v60, %v3085_v20  ;;  %v3872_v0 = vsel %vm677_vm12, %v3848_v31, %v3871_v50  ;;  %v3865_v20 = vrot.slane %v3763_v14, %v7669_v4  ;;  %v3861_v60 = vrot.slane %v3756_v41, %v7668_v33  ;;  %v7681_v4 = vld [vmem:[#allocation17_spill] sm:$0xff]  ;;  %vm7683_vm12 = vmmov %vm7677_vm7 }
 0x9cc   :  { %v4377_v13 = vpop.f32.mrf.mxu1  ;;  %v3873_v3 = vsel %vm7678_vm8, %v3857_v9, %v3872_v0  ;;  %vm7684_vm15 = vmmov %vm7676_vm0  ;;  %vm7691_vm8 = vcmask 195712  }
 0x9cd   :  { %v3135_v38 = vsel %vm7673_vm4, %v7219_v53, -inf  ;;  %v3866_v56 = vsel %vm593_vm6, %v3865_v20, %v3861_v60  ;;  %vm7685_vm1 = vmmov %vm7677_vm7 }
 0x9ce   :  { %v3131_v57 = vpop.f32.mrf.mxu1  ;;  %3136 = vmax.xlane.f32.xlu1 %v3135_v38  ;;  %vm7686_vm4 = vmmov %vm7676_vm0 }
 0x9cf   :  { %v7243_v24 = vadd.f32 %v3131_v57, %v3078_v8  ;;  %vm7687_vm2 = vmmov %vm7685_vm1 }
 0x9d0   :  { %v4378_v35 = vpop.f32.mrf.mxu1 }
 0x9d1   :  { %v3138_v58 = vsel %vm7675_vm14, %v7243_v24, -inf  ;;  %vm7688_vm14 = vmmov %vm7676_vm0 }
 0x9d2   :  { %v3522_v62 = vpop.f32.mrf.mxu1  ;;  %3139 = vmax.xlane.f32.xlu0 %v3138_v58 }
 0x9d3   :  { %v3523_v37 = vadd.f32 %v3522_v62, %v3479_v19 }
 0x9d4   :  { %v4389_v43 = vpop.f32.mrf.mxu1 }
 0x9d5   :  { %v3529_v18 = vsel %vm7676_vm0, %v3523_v37, -inf }
 0x9d6   :  { %v3525_v30 = vpop.f32.mrf.mxu1  ;;  %3530 = vmax.xlane.f32.xlu1 %v3529_v18 }
 0x9d7   :  { %v3526_v36 = vadd.f32 %v3525_v30, %v3472_v11 }
 0x9d8   :  { %v4390_v44 = vpop.f32.mrf.mxu1 }
 0x9d9   :  { %v3532_v49 = vsel %vm7677_vm7, %v3526_v36, -inf  ;;  %vm7689_vm7 = vmmov %vm7676_vm0 }
 0x9da   :  { %v3916_v13 = vpop.f32.mrf.mxu1  ;;  %3533 = vmax.xlane.f32.xlu0 %v3532_v49 }
 0x9db   :  { %v3917_v8 = vadd.f32 %v3916_v13, %v3873_v3 }
 0x9dc   :  { %v4401_v59 = vpop.f32.mrf.mxu1 }
 0x9dd   :  { %v3923_v12 = vsel %vm7679_vm9, %v3917_v8, -inf  ;;  %vm7692_vm9 = vcmask 188544  }
 0x9de   :  { %v3919_v40 = vpop.f32.mrf.mxu1  ;;  %3924 = vmax.xlane.f32.xlu1 %v3923_v12 }
 0x9df   :  { %v3920_v38 = vadd.f32 %v3919_v40, %v3866_v56 }
 0x9e0   :  { %v4402_v29 = vpop.f32.mrf.mxu1 }
 0x9e1   :  { %v3926_v34 = vsel %vm7680_vm10, %v3920_v38, -inf  ;;  %vm7693_vm10 = vcmask 261312  }
 0x9e2   :  { %3927 = vmax.xlane.f32.xlu0 %v3926_v34 }
 0x9ef   :  { %3158 = vrot.lane.b32.xlu1 %v7681_v4, %s4534_s20 }
 0xa57   :  { %v3137_v33 = vpop.xlane.xlu1 %3136 }
 0xa58   :  { %v3141_v16 = vsub.f32 %v7219_v53, %v3137_v33 }
 0xa5a   :  { %v3143_v48 = vmul.f32 1.442695, %v3141_v16 }
 0xa5b   :  { %v3140_v6 = vpop.xlane.xlu0 %3139 }
 0xa5c   :  { %4487 = vpow2.f32 %v3143_v48  ;;  %v3142_v57 = vsub.f32 %v7243_v24, %v3140_v6 }
 0xa5e   :  { %v3145_v55 = vmul.f32 1.442695, %v3142_v57 }
 0xa5f   :  { %v3531_v2 = vpop.xlane.xlu1 %3530 }
 0xa60   :  { %4489 = vpow2.f32 %v3145_v55  ;;  %v3535_v22 = vsub.f32 %v3523_v37, %v3531_v2 }
 0xa62   :  { %v3537_v19 = vmul.f32 1.442695, %v3535_v22 }
 0xa63   :  { %v3534_v32 = vpop.xlane.xlu0 %3533 }
 0xa64   :  { %4491 = vpow2.f32 %v3537_v19  ;;  %v3536_v10 = vsub.f32 %v3526_v36, %v3534_v32 }
 0xa66   :  { %v3539_v5 = vmul.f32 1.442695, %v3536_v10 }
 0xa67   :  { %v3925_v21 = vpop.xlane.xlu1 %3924 }
 0xa68   :  { %4493 = vpow2.f32 %v3539_v5  ;;  %v3929_v23 = vsub.f32 %v3917_v8, %v3925_v21 }
 0xa69   :  { %v4488_v35 = vpop.eup %4487 }
 0xa6a   :  { %v3931_v7 = vmul.f32 1.442695, %v3929_v23  ;;  %v3147_v53 = vsel %vm7682_vm11, %v4488_v35, 0.0  ;;  %vm7694_vm11 = vcmask 254144  }
 0xa6b   :  { %v3928_v45 = vpop.xlane.xlu0 %3927  ;;  %3148 = vadd.xlane.f32.xlu1 %v3147_v53  ;;  %v3159_v63 = vpop.permute.xlu1 %3158 }
 0xa6c   :  { %4495 = vpow2.f32 %v3931_v7  ;;  %v3930_v24 = vsub.f32 %v3920_v38, %v3928_v45  ;;  %v3164_v58 = vand.u32 %v3159_v63, %v7642_v61  ;;  %v4520_v7 = vld [vmem:[%s7343_s6] ss:$0 sm:$0xff] }
 0xa6d   :  { %v4490_v26 = vpop.eup %4489 }
 0xa6e   :  { %v3933_v39 = vmul.f32 1.442695, %v3930_v24  ;;  %4380 = vmatpush3.bf16.msra.mxu0 %v3164_v58  ;;  %v3150_v17 = vsel %vm7683_vm12, %v4490_v26, 0.0 }
 0xa6f   :  { %3151 = vadd.xlane.f32.xlu0 %v3150_v17  ;;  %4391 = vmatprep.subr.bf16.mxu0 %v7648_v47 }
 0xa70   :  { %4497 = vpow2.f32 %v3933_v39 }
 0xa71   :  { %v4492_v42 = vpop.eup %4491 }
 0xa72   :  { %v3541_v62 = vsel %vm7684_vm15, %v4492_v42, 0.0 }
 0xa73   :  { %3542 = vadd.xlane.f32.xlu1 %v3541_v62 }
 0xa75   :  { %v4494_v28 = vpop.eup %4493 }
 0xa76   :  { %v3544_v15 = vsel %vm7685_vm1, %v4494_v28, 0.0 }
 0xa77   :  { %3545 = vadd.xlane.f32.xlu0 %v3544_v15 }
 0xa79   :  { %v4496_v51 = vpop.eup %4495 }
 0xa7a   :  { %v3935_v37 = vsel %vm7686_vm4, %v4496_v51, 0.0 }
 0xa7b   :  { %3936 = vadd.xlane.f32.xlu1 %v3935_v37 }
 0xa7d   :  { %v4498_v52 = vpop.eup %4497 }
 0xa7e   :  { %v3938_v46 = vsel %vm7687_vm2, %v4498_v52, 0.0 }
 0xa7f   :  { %3939 = vadd.xlane.f32.xlu0 %v3938_v46 }
 0xa8c   :  { %3946 = vrot.lane.b32.xlu1 %v7681_v4, %s4535_s21 }
 0xa95   :  { %3552 = vrot.lane.b32.xlu0 %v7681_v4, %s4533_s19 }
 0xaf4   :  { %v3149_v43 = vpop.xlane.xlu1 %3148 }
 0xaf5   :  { %4499 = vrcp.f32 %v3149_v43 }
 0xaf8   :  { %v3152_v54 = vpop.xlane.xlu0 %3151 }
 0xaf9   :  { %4501 = vrcp.f32 %v3152_v54 }
 0xafc   :  { %v3543_v1 = vpop.xlane.xlu1 %3542 }
 0xafd   :  { %4503 = vrcp.f32 %v3543_v1 }
 0xb00   :  { %v3546_v18 = vpop.xlane.xlu0 %3545 }
 0xb01   :  { %4505 = vrcp.f32 %v3546_v18 }
 0xb02   :  { %v4500_v25 = vpop.eup %4499 }
 0xb03   :  { %v3155_v30 = vmul.f32 %v4500_v25, %v4488_v35 }
 0xb04   :  { %v3937_v31 = vpop.xlane.xlu1 %3936 }
 0xb05   :  { %4507 = vrcp.f32 %v3937_v31 }
 0xb06   :  { %v4502_v11 = vpop.eup %4501 }
 0xb07   :  { %v3156_v27 = vmul.f32 %v4502_v11, %v4490_v26 }
 0xb08   :  { %v3940_v14 = vpop.xlane.xlu0 %3939  ;;  %v3947_v0 = vpop.permute.xlu1 %3946 }
 0xb09   :  { %4509 = vrcp.f32 %v3940_v14  ;;  %v3157_v41 = vpack.c.bf16 %v3156_v27, %v3155_v30  ;;  %v3952_v3 = vand.u32 %v3947_v0, %v7642_v61 }
 0xb0a   :  { %v4504_v36 = vpop.eup %4503 }
 0xb0b   :  { %4382 = vmatmul.mubr.msk.bf16.vlgmr.msra.gmra.mxu0 %vm7688_vm14, %v3157_v41  ;;  %v3549_v49 = vmul.f32 %v4504_v36, %v4492_v42 }
 0xb0c   :  { %v3553_v9 = vpop.permute.xlu0 %3552  ;;  %4393 = vmatprep.mubr.msk.bf16.mxu0 %vm7662_vm13, %v7648_v47 }
 0xb0d   :  { %v3558_v44 = vand.u32 %v3553_v9, %v7642_v61 }
 0xb0e   :  { %v4506_v50 = vpop.eup %4505 }
 0xb0f   :  { %4392 = vmatpush3.bf16.msra.mxu0 %v3558_v44  ;;  %v3550_v20 = vmul.f32 %v4506_v50, %v4494_v28 }
 0xb10   :  { %4403 = vmatprep.subr.bf16.mxu0 %v7648_v47 }
 0xb11   :  { %v3551_v60 = vpack.c.bf16 %v3550_v20, %v3549_v49 }
 0xb12   :  { %v4508_v13 = vpop.eup %4507 }
 0xb13   :  { %4394 = vmatmul.mubr.msk.bf16.vlgmr.msra.gmra.mxu0 %vm7676_vm0, %v3551_v60  ;;  %v3943_v59 = vmul.f32 %v4508_v13, %v4496_v51 }
 0xb14   :  { %4404 = vmatpush3.bf16.msra.mxu0 %v3952_v3  ;;  %4405 = vmatprep.mubr.msk.bf16.mxu0 %vm7662_vm13, %v7648_v47  ;;  %vm7690_vm13 = vcmask 122944  }
 0xb16   :  { %v4510_v8 = vpop.eup %4509 }
 0xb17   :  { %v3944_v12 = vmul.f32 %v4510_v8, %v4498_v52 }
 0xb19   :  { %v3945_v56 = vpack.c.bf16 %v3944_v12, %v3943_v59 }
 0xb1b   :  { %4406 = vmatmul.mubr.msk.bf16.vlgmr.msra.gmra.mxu0 %vm7689_vm7, %v3945_v56 }
 0xbcb   :  { %v3200_v40 = vpop.f32.mrf.mxu0 }
 0xbcc   :  { %3209 = vrot.lane.b32.xlu1 %v3200_v40, %s4536_s2 }
 0xbcd   :  { %v4383_v38 = vpop.f32.mrf.mxu0 }
 0xbcf   :  { %v3203_v29 = vpop.f32.mrf.mxu0 }
 0xbd0   :  { %3211 = vrot.lane.b32.xlu0 %v3203_v29, %s4536_s2 }
 0xbd1   :  { %v4384_v61 = vpop.f32.mrf.mxu0 }
 0xbd3   :  { %v3594_v34 = vpop.f32.mrf.mxu0 }
 0xbd4   :  { %3603 = vrot.lane.b32.xlu1 %v3594_v34, %s4537_s1 }
 0xbd5   :  { %v4395_v4 = vpop.f32.mrf.mxu0 }
 0xbd7   :  { %v3597_v33 = vpop.f32.mrf.mxu0 }
 0xbd8   :  { %3605 = vrot.lane.b32.xlu0 %v3597_v33, %s4537_s1 }
 0xbd9   :  { %v4396_v47 = vpop.f32.mrf.mxu0 }
 0xbdb   :  { %v3988_v16 = vpop.f32.mrf.mxu0 }
 0xbdc   :  { %3997 = vrot.lane.b32.xlu1 %v3988_v16, %s4538_s26 }
 0xbdd   :  { %v4407_v48 = vpop.f32.mrf.mxu0 }
 0xbdf   :  { %v3991_v6 = vpop.f32.mrf.mxu0 }
 0xbe0   :  { %3999 = vrot.lane.b32.xlu0 %v3991_v6, %s4538_s26 }
 0xbe1   :  { %v4408_v57 = vpop.f32.mrf.mxu0 }
 0xc3e   :  { %v3210_v55 = vpop.permute.xlu1 %3209 }
 0xc3f   :  { %3215 = vst.msk [vmem:[#allocation2 + $0x10] sm:$0xff] %vm593_vm6, %v3210_v55 }
 0xc42   :  { %v3212_v2 = vpop.permute.xlu0 %3211 }
 0xc43   :  { %3216 = vst.msk [vmem:[#allocation2 + $0x18] sm:$0x1] %vm7690_vm13, %v3212_v2 }
 0xc46   :  { %v3604_v22 = vpop.permute.xlu1 %3603 }
 0xc47   :  { %3609 = vst.msk [vmem:[#allocation2 + $0x10] sm:$0xff] %vm7691_vm8, %v3604_v22 }
 0xc4a   :  { %v3606_v19 = vpop.permute.xlu0 %3605 }
 0xc4b   :  { %3610 = vst.msk [vmem:[#allocation2 + $0x18] sm:$0x1] %vm7692_vm9, %v3606_v19 }
 0xc4e   :  { %v3998_v32 = vpop.permute.xlu1 %3997 }
 0xc4f   :  { %4003 = vst.msk [vmem:[#allocation2 + $0x10] sm:$0xff] %vm7693_vm10, %v3998_v32 }
 0xc52   :  { %v4000_v10 = vpop.permute.xlu0 %3999 }
 0xc53   :  { %4004 = vst.msk [vmem:[#allocation2 + $0x18] sm:$0x1] %vm7694_vm11, %v4000_v10 }
 0xc56   :  { %v4005_v5 = vld [vmem:[#allocation2 + $0x10] sm:$0xff] }
 0xc5a   :  { %v4006_v21 = vld [vmem:[#allocation2 + $0x18] sm:$0x1] }
 0xc5b   :  { %v4007_v23 = vpack.c.bf16 %v4006_v21, %v4005_v5 }
 0xc5d   :  { %4414 = vmatmul.mubr.msk.bf16.vlgmr.msra.gmra.mxu1 %vm2101_vm3, %v4007_v23 }
 0xd1d   :  { %v4045_v35 = vpop.f32.mrf.mxu1 }
 0xd1e   :  { %v4046_v53 = vadd.f32 %v4520_v7, %v4045_v35 }
 0xd1f   :  { %v4415_v45 = vpop.f32.mrf.mxu1 }
 0xd20   :  { %4219 = vst.msk [vmem:[%s7344_s7 + $0x10] sm:$0xff] %vm2101_vm3, %v4046_v53 }
 0xd21   :  { %v4048_v63 = vpop.f32.mrf.mxu1 }
 0xd22   :  { %v4049_v24 = vadd.f32 %v4520_v7, %v4048_v63 }
 0xd23   :  { %v4416_v58 = vpop.f32.mrf.mxu1 }
 0xd24   :  { %4220 = vst.msk [vmem:[%s7344_s7 + $0x18] sm:$0x1] %vm2147_vm5, %v4049_v24 }

</bundles_post_ra>
